<compile_context>
chip_gen: v7x
topology: tpu7x:2x2x1
jax: 0.10.0
libtpu: 0.0.40
codegen_flags: <defaults>
</compile_context>

<pallas_src>
import functools

import jax
import jax.numpy as jnp
from jax.experimental import pallas as pl
from jax.experimental.pallas import tpu as pltpu

EPS = 1e-5
LANE = 128


# ---------------------------------------------------------------------------
# Fused kernel: conv1 (+bn1 scale) -> +shift1 -> relu -> conv2 (+bn2 scale)
#               -> +shift2 -> +identity -> relu
# ---------------------------------------------------------------------------
def basic_block_kernel(x_ref, w1_ref, w2_ref, s1_ref, s2_ref, mask_ref,
                       o_ref, out1_scr, *, H, W):
    Wp = W + 2              # padded width (wide-flat row stride)
    Mout = H * Wp           # output rows in wide-flat form

    x = x_ref[0]            # (Min, Cp) float32, VMEM resident

    # ---- conv1 (bn1 scale folded into w1): 9 shifted K=Cp matmuls ----------
    acc1 = None
    for t in range(9):
        kh, kw = divmod(t, 3)
        off = kh * Wp + kw
        lhs = x[off:off + Mout, :].astype(jnp.bfloat16)
        d = jnp.dot(lhs, w1_ref[t], preferred_element_type=jnp.float32)
        acc1 = d if acc1 is None else acc1 + d

    # bn1 shift + ReLU; zero the invalid "wide" columns so they behave as
    # conv2's zero padding once restaged with a halo below.
    out1 = jnp.maximum(acc1 + s1_ref[...], 0.0) * mask_ref[...]

    # Stage out1 in VMEM with a 1-pixel zero halo (never touches HBM).
    out1_scr[...] = jnp.zeros_like(out1_scr)
    out1_scr[Wp + 1:Wp + 1 + Mout, :] = out1

    # ---- conv2 (bn2 scale folded into w2) ----------------------------------
    acc2 = None
    for t in range(9):
        kh, kw = divmod(t, 3)
        off = kh * Wp + kw
        lhs = out1_scr[off:off + Mout, :].astype(jnp.bfloat16)
        d = jnp.dot(lhs, w2_ref[t], preferred_element_type=jnp.float32)
        acc2 = d if acc2 is None else acc2 + d

    # bn2 shift + residual (exact f32 identity) + ReLU
    identity = x[Wp + 1:Wp + 1 + Mout, :]          # Cp == Pp (no downsample)
    o_ref[0] = jnp.maximum(acc2 + s2_ref[...] + identity, 0.0)


# ---------------------------------------------------------------------------
# Plain-JAX glue: BN folding into weights, padding, layout
# ---------------------------------------------------------------------------
def fold_conv_bn(w_oihw, bn, Cp, Pp):
    """(O,I,3,3) conv weight + BN params -> (9, Cp, Pp) bf16 taps, (1,Pp) shift."""
    gamma, beta, mean, var = bn
    scale = gamma / jnp.sqrt(var + EPS)            # (O,)
    shift = beta - mean * scale                    # (O,)
    O, I, KH, KW = w_oihw.shape
    w = jnp.transpose(w_oihw, (2, 3, 1, 0)).reshape(KH * KW, I, O)
    w = w * scale[None, None, :]                   # fold BN scale into weights
    w = jnp.pad(w, ((0, 0), (0, Cp - I), (0, Pp - O))).astype(jnp.bfloat16)
    shift = jnp.pad(shift, (0, Pp - O)).reshape(1, Pp).astype(jnp.float32)
    return w, shift


def basic_block_forward(x_nchw, params):
    N, Cin, H, W = x_nchw.shape
    planes = params["w1"].shape[0]
    assert Cin == planes, "stride=1 / downsample=None path requires inplanes == planes"

    Cp = max(LANE, ((Cin + LANE - 1) // LANE) * LANE)
    Pp = Cp                                        # residual add needs Cp == Pp

    Wp = W + 2
    Min = (H + 3) * Wp                             # 1 top + 2 bottom rows of slack
    Mout = H * Wp

    # NCHW -> NHWC, spatial zero-pad (1 top, 2 bottom, 1 left, 1 right),
    # channel pad to lane multiple, flatten (h, w) -> wide-flat rows.
    x_nhwc = jnp.transpose(x_nchw, (0, 2, 3, 1)).astype(jnp.float32)
    x_pad = jnp.pad(x_nhwc, ((0, 0), (1, 2), (1, 1), (0, Cp - Cin)))
    x_flat = x_pad.reshape(N, Min, Cp)

    w1t, s1 = fold_conv_bn(params["w1"], params["bn1"], Cp, Pp)
    w2t, s2 = fold_conv_bn(params["w2"], params["bn2"], Cp, Pp)

    # validity mask over the wide-flat output rows: (row % Wp) < W
    col = jnp.arange(Mout, dtype=jnp.int32) % Wp
    mask = (col < W).astype(jnp.float32)[:, None]  # (Mout, 1)

    kernel = functools.partial(basic_block_kernel, H=H, W=W)

    flops = 2 * 9 * 2 * N * Mout * Cp * Pp
    bytes_accessed = (N * Min * Cp * 4 + N * Mout * Pp * 4
                      + 2 * 9 * Cp * Pp * 2 + 2 * Pp * 4 + Mout * 4)

    out_flat = pl.pallas_call(
        kernel,
        out_shape=jax.ShapeDtypeStruct((N, Mout, Pp), jnp.float32),
        grid_spec=pltpu.PrefetchScalarGridSpec(
            num_scalar_prefetch=0,
            grid=(N,),
            in_specs=[
                pl.BlockSpec((1, Min, Cp), lambda n: (n, 0, 0)),   # x tile
                pl.BlockSpec((9, Cp, Pp), lambda n: (0, 0, 0)),    # w1 taps
                pl.BlockSpec((9, Cp, Pp), lambda n: (0, 0, 0)),    # w2 taps
                pl.BlockSpec((1, Pp), lambda n: (0, 0)),           # shift1
                pl.BlockSpec((1, Pp), lambda n: (0, 0)),           # shift2
                pl.BlockSpec((Mout, 1), lambda n: (0, 0)),         # column mask
            ],
            out_specs=pl.BlockSpec((1, Mout, Pp), lambda n: (n, 0, 0)),
            scratch_shapes=[pltpu.VMEM((Min, Pp), jnp.float32)],   # out1 + halo
        ),
        compiler_params=pltpu.CompilerParams(
            dimension_semantics=("parallel",),
            vmem_limit_bytes=32 * 1024 * 1024,
        ),
        cost_estimate=pl.CostEstimate(
            flops=flops, transcendentals=0, bytes_accessed=bytes_accessed),
    )(x_flat, w1t, w2t, s1, s2, mask)

    out = out_flat.reshape(N, H, Wp, Pp)[:, :, :W, :planes]
    return jnp.transpose(out, (0, 3, 1, 2))        # back to NCHW


# ---------------------------------------------------------------------------
# Pure-JAX reference (correctness check)
# ---------------------------------------------------------------------------
def ref_forward(x, params):
    def conv(x, w):
        return jax.lax.conv_general_dilated(
            x, w, window_strides=(1, 1), padding=((1, 1), (1, 1)),
            dimension_numbers=("NCHW", "OIHW", "NCHW"))

    def bn(x, p):
        g, b, m, v = p
        return (g[None, :, None, None] * (x - m[None, :, None, None])
                / jnp.sqrt(v + EPS)[None, :, None, None] + b[None, :, None, None])

    out = jax.nn.relu(bn(conv(x, params["w1"]), params["bn1"]))
    out = bn(conv(out, params["w2"]), params["bn2"]) + x
    return jax.nn.relu(out)


if __name__ == "__main__":
    key = jax.random.PRNGKey(0)
    k_x, k_w1, k_w2, k_g1, k_b1, k_g2, k_b2, k_m1, k_m2 = jax.random.split(key, 9)

    N, inplanes, H, W = 2, 4, 16, 16
    planes = 4  # stride=1, downsample=None => planes == inplanes

    x = jax.random.normal(k_x, (N, inplanes, H, W), dtype=jnp.float32)

    params = {
        "w1": 0.1 * jax.random.normal(k_w1, (planes, inplanes, 3, 3), jnp.float32),
        "w2": 0.1 * jax.random.normal(k_w2, (planes, planes, 3, 3), jnp.float32),
        # bn = (gamma, beta, running_mean, running_var)
        "bn1": (1.0 + 0.1 * jax.random.normal(k_g1, (planes,), jnp.float32),
                0.1 * jax.random.normal(k_b1, (planes,), jnp.float32),
                0.1 * jax.random.normal(k_m1, (planes,), jnp.float32),
                jnp.ones((planes,), jnp.float32)),
        "bn2": (1.0 + 0.1 * jax.random.normal(k_g2, (planes,), jnp.float32),
                0.1 * jax.random.normal(k_b2, (planes,), jnp.float32),
                0.1 * jax.random.normal(k_m2, (planes,), jnp.float32),
                jnp.ones((planes,), jnp.float32)),
    }

    out = jax.block_until_ready(basic_block_forward(x, params))
    ref = jax.block_until_ready(ref_forward(x, params))

    assert out.shape == (N, planes, H, W), out.shape
    # bf16 matmul inputs (f32 accumulation) => tolerance widened vs pure-f32.
    max_err = float(jnp.abs(out - ref).max())
    assert jnp.allclose(out, ref, atol=2e-2, rtol=2e-2), max_err

    print("KERNEL_OK")
</pallas_src>

<mosaic_0001>
module attributes {stable_mosaic.version = 11 : i64} {
  func.func @basic_block_kernel(%arg0: i32, %arg1: memref<1x342x128xf32, #tpu.memory_space<vmem>>, %arg2: memref<9x128x128xbf16, #tpu.memory_space<vmem>>, %arg3: memref<9x128x128xbf16, #tpu.memory_space<vmem>>, %arg4: memref<1x128xf32, #tpu.memory_space<vmem>>, %arg5: memref<1x128xf32, #tpu.memory_space<vmem>>, %arg6: memref<288x1xf32, #tpu.memory_space<vmem>>, %arg7: memref<1x288x128xf32, #tpu.memory_space<vmem>>, %arg8: memref<342x128xf32, #tpu.memory_space<vmem>>) attributes {dimension_semantics = [#tpu.dimension_semantics<parallel>], iteration_bounds = array<i64: 2>, scalar_prefetch = 0 : i64, scratch_operands = 1 : i64, tpu.core_type = #tpu.core_type<tc>, window_params = [{transform_indices = @transform_0, window_bounds = array<i64: 1, 342, 128>}, {pipeline_mode = #tpu.pipeline_mode<synchronous>, transform_indices = @transform_1, window_bounds = array<i64: 9, 128, 128>}, {pipeline_mode = #tpu.pipeline_mode<synchronous>, transform_indices = @transform_2, window_bounds = array<i64: 9, 128, 128>}, {pipeline_mode = #tpu.pipeline_mode<synchronous>, transform_indices = @transform_3, window_bounds = array<i64: 1, 128>}, {pipeline_mode = #tpu.pipeline_mode<synchronous>, transform_indices = @transform_4, window_bounds = array<i64: 1, 128>}, {pipeline_mode = #tpu.pipeline_mode<synchronous>, transform_indices = @transform_5, window_bounds = array<i64: 288, 1>}, {transform_indices = @transform_6, window_bounds = array<i64: 1, 288, 128>}]} {
    %c0 = arith.constant 0 : index
    %c0_0 = arith.constant 0 : index
    %c0_1 = arith.constant 0 : index
    %0 = vector.load %arg1[%c0, %c0_0, %c0_1] : memref<1x342x128xf32, #tpu.memory_space<vmem>>, vector<1x342x128xf32>
    %1 = vector.shape_cast %0 : vector<1x342x128xf32> to vector<342x128xf32>
    %2 = vector.extract_strided_slice %1 {offsets = [0, 0], sizes = [288, 128], strides = [1, 1]} : vector<342x128xf32> to vector<288x128xf32>
    %3 = arith.truncf %2 : vector<288x128xf32> to vector<288x128xbf16>
    %c0_2 = arith.constant 0 : index
    %c0_3 = arith.constant 0 : index
    %c0_4 = arith.constant 0 : index
    %4 = vector.load %arg2[%c0_2, %c0_3, %c0_4] : memref<9x128x128xbf16, #tpu.memory_space<vmem>>, vector<1x128x128xbf16>
    %5 = vector.shape_cast %4 : vector<1x128x128xbf16> to vector<128x128xbf16>
    %cst = arith.constant dense<0.000000e+00> : vector<288x128xf32>
    %6 = tpu.matmul %3, %5, %cst {dimension_numbers = #tpu.dot_dimension_numbers<[1], [0], [0], [1], [0, 0, 1, 1], [], []>} : vector<288x128xbf16>, vector<128x128xbf16>, vector<288x128xf32> -> vector<288x128xf32>
    %7 = vector.extract_strided_slice %1 {offsets = [1, 0], sizes = [288, 128], strides = [1, 1]} : vector<342x128xf32> to vector<288x128xf32>
    %8 = arith.truncf %7 : vector<288x128xf32> to vector<288x128xbf16>
    %c1 = arith.constant 1 : index
    %c0_5 = arith.constant 0 : index
    %c0_6 = arith.constant 0 : index
    %9 = vector.load %arg2[%c1, %c0_5, %c0_6] : memref<9x128x128xbf16, #tpu.memory_space<vmem>>, vector<1x128x128xbf16>
    %10 = vector.shape_cast %9 : vector<1x128x128xbf16> to vector<128x128xbf16>
    %cst_7 = arith.constant dense<0.000000e+00> : vector<288x128xf32>
    %11 = tpu.matmul %8, %10, %cst_7 {dimension_numbers = #tpu.dot_dimension_numbers<[1], [0], [0], [1], [0, 0, 1, 1], [], []>} : vector<288x128xbf16>, vector<128x128xbf16>, vector<288x128xf32> -> vector<288x128xf32>
    %12 = arith.addf %6, %11 : vector<288x128xf32>
    %13 = vector.extract_strided_slice %1 {offsets = [2, 0], sizes = [288, 128], strides = [1, 1]} : vector<342x128xf32> to vector<288x128xf32>
    %14 = arith.truncf %13 : vector<288x128xf32> to vector<288x128xbf16>
    %c2 = arith.constant 2 : index
    %c0_8 = arith.constant 0 : index
    %c0_9 = arith.constant 0 : index
    %15 = vector.load %arg2[%c2, %c0_8, %c0_9] : memref<9x128x128xbf16, #tpu.memory_space<vmem>>, vector<1x128x128xbf16>
    %16 = vector.shape_cast %15 : vector<1x128x128xbf16> to vector<128x128xbf16>
    %cst_10 = arith.constant dense<0.000000e+00> : vector<288x128xf32>
    %17 = tpu.matmul %14, %16, %cst_10 {dimension_numbers = #tpu.dot_dimension_numbers<[1], [0], [0], [1], [0, 0, 1, 1], [], []>} : vector<288x128xbf16>, vector<128x128xbf16>, vector<288x128xf32> -> vector<288x128xf32>
    %18 = arith.addf %12, %17 : vector<288x128xf32>
    %19 = vector.extract_strided_slice %1 {offsets = [18, 0], sizes = [288, 128], strides = [1, 1]} : vector<342x128xf32> to vector<288x128xf32>
    %20 = arith.truncf %19 : vector<288x128xf32> to vector<288x128xbf16>
    %c3 = arith.constant 3 : index
    %c0_11 = arith.constant 0 : index
    %c0_12 = arith.constant 0 : index
    %21 = vector.load %arg2[%c3, %c0_11, %c0_12] : memref<9x128x128xbf16, #tpu.memory_space<vmem>>, vector<1x128x128xbf16>
    %22 = vector.shape_cast %21 : vector<1x128x128xbf16> to vector<128x128xbf16>
    %cst_13 = arith.constant dense<0.000000e+00> : vector<288x128xf32>
    %23 = tpu.matmul %20, %22, %cst_13 {dimension_numbers = #tpu.dot_dimension_numbers<[1], [0], [0], [1], [0, 0, 1, 1], [], []>} : vector<288x128xbf16>, vector<128x128xbf16>, vector<288x128xf32> -> vector<288x128xf32>
    %24 = arith.addf %18, %23 : vector<288x128xf32>
    %25 = vector.extract_strided_slice %1 {offsets = [19, 0], sizes = [288, 128], strides = [1, 1]} : vector<342x128xf32> to vector<288x128xf32>
    %26 = arith.truncf %25 : vector<288x128xf32> to vector<288x128xbf16>
    %c4 = arith.constant 4 : index
    %c0_14 = arith.constant 0 : index
    %c0_15 = arith.constant 0 : index
    %27 = vector.load %arg2[%c4, %c0_14, %c0_15] : memref<9x128x128xbf16, #tpu.memory_space<vmem>>, vector<1x128x128xbf16>
    %28 = vector.shape_cast %27 : vector<1x128x128xbf16> to vector<128x128xbf16>
    %cst_16 = arith.constant dense<0.000000e+00> : vector<288x128xf32>
    %29 = tpu.matmul %26, %28, %cst_16 {dimension_numbers = #tpu.dot_dimension_numbers<[1], [0], [0], [1], [0, 0, 1, 1], [], []>} : vector<288x128xbf16>, vector<128x128xbf16>, vector<288x128xf32> -> vector<288x128xf32>
    %30 = arith.addf %24, %29 : vector<288x128xf32>
    %31 = vector.extract_strided_slice %1 {offsets = [20, 0], sizes = [288, 128], strides = [1, 1]} : vector<342x128xf32> to vector<288x128xf32>
    %32 = arith.truncf %31 : vector<288x128xf32> to vector<288x128xbf16>
    %c5 = arith.constant 5 : index
    %c0_17 = arith.constant 0 : index
    %c0_18 = arith.constant 0 : index
    %33 = vector.load %arg2[%c5, %c0_17, %c0_18] : memref<9x128x128xbf16, #tpu.memory_space<vmem>>, vector<1x128x128xbf16>
    %34 = vector.shape_cast %33 : vector<1x128x128xbf16> to vector<128x128xbf16>
    %cst_19 = arith.constant dense<0.000000e+00> : vector<288x128xf32>
    %35 = tpu.matmul %32, %34, %cst_19 {dimension_numbers = #tpu.dot_dimension_numbers<[1], [0], [0], [1], [0, 0, 1, 1], [], []>} : vector<288x128xbf16>, vector<128x128xbf16>, vector<288x128xf32> -> vector<288x128xf32>
    %36 = arith.addf %30, %35 : vector<288x128xf32>
    %37 = vector.extract_strided_slice %1 {offsets = [36, 0], sizes = [288, 128], strides = [1, 1]} : vector<342x128xf32> to vector<288x128xf32>
    %38 = arith.truncf %37 : vector<288x128xf32> to vector<288x128xbf16>
    %c6 = arith.constant 6 : index
    %c0_20 = arith.constant 0 : index
    %c0_21 = arith.constant 0 : index
    %39 = vector.load %arg2[%c6, %c0_20, %c0_21] : memref<9x128x128xbf16, #tpu.memory_space<vmem>>, vector<1x128x128xbf16>
    %40 = vector.shape_cast %39 : vector<1x128x128xbf16> to vector<128x128xbf16>
    %cst_22 = arith.constant dense<0.000000e+00> : vector<288x128xf32>
    %41 = tpu.matmul %38, %40, %cst_22 {dimension_numbers = #tpu.dot_dimension_numbers<[1], [0], [0], [1], [0, 0, 1, 1], [], []>} : vector<288x128xbf16>, vector<128x128xbf16>, vector<288x128xf32> -> vector<288x128xf32>
    %42 = arith.addf %36, %41 : vector<288x128xf32>
    %43 = vector.extract_strided_slice %1 {offsets = [37, 0], sizes = [288, 128], strides = [1, 1]} : vector<342x128xf32> to vector<288x128xf32>
    %44 = arith.truncf %43 : vector<288x128xf32> to vector<288x128xbf16>
    %c7 = arith.constant 7 : index
    %c0_23 = arith.constant 0 : index
    %c0_24 = arith.constant 0 : index
    %45 = vector.load %arg2[%c7, %c0_23, %c0_24] : memref<9x128x128xbf16, #tpu.memory_space<vmem>>, vector<1x128x128xbf16>
    %46 = vector.shape_cast %45 : vector<1x128x128xbf16> to vector<128x128xbf16>
    %cst_25 = arith.constant dense<0.000000e+00> : vector<288x128xf32>
    %47 = tpu.matmul %44, %46, %cst_25 {dimension_numbers = #tpu.dot_dimension_numbers<[1], [0], [0], [1], [0, 0, 1, 1], [], []>} : vector<288x128xbf16>, vector<128x128xbf16>, vector<288x128xf32> -> vector<288x128xf32>
    %48 = arith.addf %42, %47 : vector<288x128xf32>
    %49 = vector.extract_strided_slice %1 {offsets = [38, 0], sizes = [288, 128], strides = [1, 1]} : vector<342x128xf32> to vector<288x128xf32>
    %50 = arith.truncf %49 : vector<288x128xf32> to vector<288x128xbf16>
    %c8 = arith.constant 8 : index
    %c0_26 = arith.constant 0 : index
    %c0_27 = arith.constant 0 : index
    %51 = vector.load %arg2[%c8, %c0_26, %c0_27] : memref<9x128x128xbf16, #tpu.memory_space<vmem>>, vector<1x128x128xbf16>
    %52 = vector.shape_cast %51 : vector<1x128x128xbf16> to vector<128x128xbf16>
    %cst_28 = arith.constant dense<0.000000e+00> : vector<288x128xf32>
    %53 = tpu.matmul %50, %52, %cst_28 {dimension_numbers = #tpu.dot_dimension_numbers<[1], [0], [0], [1], [0, 0, 1, 1], [], []>} : vector<288x128xbf16>, vector<128x128xbf16>, vector<288x128xf32> -> vector<288x128xf32>
    %54 = arith.addf %48, %53 : vector<288x128xf32>
    %c0_29 = arith.constant 0 : index
    %c0_30 = arith.constant 0 : index
    %55 = vector.load %arg4[%c0_29, %c0_30] : memref<1x128xf32, #tpu.memory_space<vmem>>, vector<1x128xf32>
    %56 = vector.broadcast %55 : vector<1x128xf32> to vector<288x128xf32>
    %57 = arith.addf %54, %56 : vector<288x128xf32>
    %cst_31 = arith.constant 0.000000e+00 : f32
    %58 = vector.broadcast %cst_31 : f32 to vector<288x128xf32>
    %59 = arith.maximumf %57, %58 : vector<288x128xf32>
    %c0_32 = arith.constant 0 : index
    %c0_33 = arith.constant 0 : index
    %60 = vector.load %arg6[%c0_32, %c0_33] : memref<288x1xf32, #tpu.memory_space<vmem>>, vector<288x1xf32>
    %61 = vector.broadcast %60 : vector<288x1xf32> to vector<288x128xf32>
    %62 = arith.mulf %59, %61 : vector<288x128xf32>
    %cst_34 = arith.constant 0.000000e+00 : f32
    %63 = vector.broadcast %cst_34 : f32 to vector<342x128xf32>
    %c0_35 = arith.constant 0 : index
    %c0_36 = arith.constant 0 : index
    %64 = vector.load %arg8[%c0_35, %c0_36] : memref<342x128xf32, #tpu.memory_space<vmem>>, vector<342x128xf32>
    tpu.vector_store %arg8[%c0_35, %c0_36], %63 {strides = array<i32>} : memref<342x128xf32, #tpu.memory_space<vmem>>, vector<342x128xf32>,
    %c19 = arith.constant 19 : index
    %c0_37 = arith.constant 0 : index
    %65 = vector.load %arg8[%c19, %c0_37] : memref<342x128xf32, #tpu.memory_space<vmem>>, vector<288x128xf32>
    tpu.vector_store %arg8[%c19, %c0_37], %62 {strides = array<i32>} : memref<342x128xf32, #tpu.memory_space<vmem>>, vector<288x128xf32>,
    %c0_38 = arith.constant 0 : index
    %c0_39 = arith.constant 0 : index
    %66 = vector.load %arg8[%c0_38, %c0_39] : memref<342x128xf32, #tpu.memory_space<vmem>>, vector<288x128xf32>
    %67 = arith.truncf %66 : vector<288x128xf32> to vector<288x128xbf16>
    %c0_40 = arith.constant 0 : index
    %c0_41 = arith.constant 0 : index
    %c0_42 = arith.constant 0 : index
    %68 = vector.load %arg3[%c0_40, %c0_41, %c0_42] : memref<9x128x128xbf16, #tpu.memory_space<vmem>>, vector<1x128x128xbf16>
    %69 = vector.shape_cast %68 : vector<1x128x128xbf16> to vector<128x128xbf16>
    %cst_43 = arith.constant dense<0.000000e+00> : vector<288x128xf32>
    %70 = tpu.matmul %67, %69, %cst_43 {dimension_numbers = #tpu.dot_dimension_numbers<[1], [0], [0], [1], [0, 0, 1, 1], [], []>} : vector<288x128xbf16>, vector<128x128xbf16>, vector<288x128xf32> -> vector<288x128xf32>
    %c1_44 = arith.constant 1 : index
    %c0_45 = arith.constant 0 : index
    %71 = vector.load %arg8[%c1_44, %c0_45] : memref<342x128xf32, #tpu.memory_space<vmem>>, vector<288x128xf32>
    %72 = arith.truncf %71 : vector<288x128xf32> to vector<288x128xbf16>
    %c1_46 = arith.constant 1 : index
    %c0_47 = arith.constant 0 : index
    %c0_48 = arith.constant 0 : index
    %73 = vector.load %arg3[%c1_46, %c0_47, %c0_48] : memref<9x128x128xbf16, #tpu.memory_space<vmem>>, vector<1x128x128xbf16>
    %74 = vector.shape_cast %73 : vector<1x128x128xbf16> to vector<128x128xbf16>
    %cst_49 = arith.constant dense<0.000000e+00> : vector<288x128xf32>
    %75 = tpu.matmul %72, %74, %cst_49 {dimension_numbers = #tpu.dot_dimension_numbers<[1], [0], [0], [1], [0, 0, 1, 1], [], []>} : vector<288x128xbf16>, vector<128x128xbf16>, vector<288x128xf32> -> vector<288x128xf32>
    %76 = arith.addf %70, %75 : vector<288x128xf32>
    %c2_50 = arith.constant 2 : index
    %c0_51 = arith.constant 0 : index
    %77 = vector.load %arg8[%c2_50, %c0_51] : memref<342x128xf32, #tpu.memory_space<vmem>>, vector<288x128xf32>
    %78 = arith.truncf %77 : vector<288x128xf32> to vector<288x128xbf16>
    %c2_52 = arith.constant 2 : index
    %c0_53 = arith.constant 0 : index
    %c0_54 = arith.constant 0 : index
    %79 = vector.load %arg3[%c2_52, %c0_53, %c0_54] : memref<9x128x128xbf16, #tpu.memory_space<vmem>>, vector<1x128x128xbf16>
    %80 = vector.shape_cast %79 : vector<1x128x128xbf16> to vector<128x128xbf16>
    %cst_55 = arith.constant dense<0.000000e+00> : vector<288x128xf32>
    %81 = tpu.matmul %78, %80, %cst_55 {dimension_numbers = #tpu.dot_dimension_numbers<[1], [0], [0], [1], [0, 0, 1, 1], [], []>} : vector<288x128xbf16>, vector<128x128xbf16>, vector<288x128xf32> -> vector<288x128xf32>
    %82 = arith.addf %76, %81 : vector<288x128xf32>
    %c18 = arith.constant 18 : index
    %c0_56 = arith.constant 0 : index
    %83 = vector.load %arg8[%c18, %c0_56] : memref<342x128xf32, #tpu.memory_space<vmem>>, vector<288x128xf32>
    %84 = arith.truncf %83 : vector<288x128xf32> to vector<288x128xbf16>
    %c3_57 = arith.constant 3 : index
    %c0_58 = arith.constant 0 : index
    %c0_59 = arith.constant 0 : index
    %85 = vector.load %arg3[%c3_57, %c0_58, %c0_59] : memref<9x128x128xbf16, #tpu.memory_space<vmem>>, vector<1x128x128xbf16>
    %86 = vector.shape_cast %85 : vector<1x128x128xbf16> to vector<128x128xbf16>
    %cst_60 = arith.constant dense<0.000000e+00> : vector<288x128xf32>
    %87 = tpu.matmul %84, %86, %cst_60 {dimension_numbers = #tpu.dot_dimension_numbers<[1], [0], [0], [1], [0, 0, 1, 1], [], []>} : vector<288x128xbf16>, vector<128x128xbf16>, vector<288x128xf32> -> vector<288x128xf32>
    %88 = arith.addf %82, %87 : vector<288x128xf32>
    %c19_61 = arith.constant 19 : index
    %c0_62 = arith.constant 0 : index
    %89 = vector.load %arg8[%c19_61, %c0_62] : memref<342x128xf32, #tpu.memory_space<vmem>>, vector<288x128xf32>
    %90 = arith.truncf %89 : vector<288x128xf32> to vector<288x128xbf16>
    %c4_63 = arith.constant 4 : index
    %c0_64 = arith.constant 0 : index
    %c0_65 = arith.constant 0 : index
    %91 = vector.load %arg3[%c4_63, %c0_64, %c0_65] : memref<9x128x128xbf16, #tpu.memory_space<vmem>>, vector<1x128x128xbf16>
    %92 = vector.shape_cast %91 : vector<1x128x128xbf16> to vector<128x128xbf16>
    %cst_66 = arith.constant dense<0.000000e+00> : vector<288x128xf32>
    %93 = tpu.matmul %90, %92, %cst_66 {dimension_numbers = #tpu.dot_dimension_numbers<[1], [0], [0], [1], [0, 0, 1, 1], [], []>} : vector<288x128xbf16>, vector<128x128xbf16>, vector<288x128xf32> -> vector<288x128xf32>
    %94 = arith.addf %88, %93 : vector<288x128xf32>
    %c20 = arith.constant 20 : index
    %c0_67 = arith.constant 0 : index
    %95 = vector.load %arg8[%c20, %c0_67] : memref<342x128xf32, #tpu.memory_space<vmem>>, vector<288x128xf32>
    %96 = arith.truncf %95 : vector<288x128xf32> to vector<288x128xbf16>
    %c5_68 = arith.constant 5 : index
    %c0_69 = arith.constant 0 : index
    %c0_70 = arith.constant 0 : index
    %97 = vector.load %arg3[%c5_68, %c0_69, %c0_70] : memref<9x128x128xbf16, #tpu.memory_space<vmem>>, vector<1x128x128xbf16>
    %98 = vector.shape_cast %97 : vector<1x128x128xbf16> to vector<128x128xbf16>
    %cst_71 = arith.constant dense<0.000000e+00> : vector<288x128xf32>
    %99 = tpu.matmul %96, %98, %cst_71 {dimension_numbers = #tpu.dot_dimension_numbers<[1], [0], [0], [1], [0, 0, 1, 1], [], []>} : vector<288x128xbf16>, vector<128x128xbf16>, vector<288x128xf32> -> vector<288x128xf32>
    %100 = arith.addf %94, %99 : vector<288x128xf32>
    %c36 = arith.constant 36 : index
    %c0_72 = arith.constant 0 : index
    %101 = vector.load %arg8[%c36, %c0_72] : memref<342x128xf32, #tpu.memory_space<vmem>>, vector<288x128xf32>
    %102 = arith.truncf %101 : vector<288x128xf32> to vector<288x128xbf16>
    %c6_73 = arith.constant 6 : index
    %c0_74 = arith.constant 0 : index
    %c0_75 = arith.constant 0 : index
    %103 = vector.load %arg3[%c6_73, %c0_74, %c0_75] : memref<9x128x128xbf16, #tpu.memory_space<vmem>>, vector<1x128x128xbf16>
    %104 = vector.shape_cast %103 : vector<1x128x128xbf16> to vector<128x128xbf16>
    %cst_76 = arith.constant dense<0.000000e+00> : vector<288x128xf32>
    %105 = tpu.matmul %102, %104, %cst_76 {dimension_numbers = #tpu.dot_dimension_numbers<[1], [0], [0], [1], [0, 0, 1, 1], [], []>} : vector<288x128xbf16>, vector<128x128xbf16>, vector<288x128xf32> -> vector<288x128xf32>
    %106 = arith.addf %100, %105 : vector<288x128xf32>
    %c37 = arith.constant 37 : index
    %c0_77 = arith.constant 0 : index
    %107 = vector.load %arg8[%c37, %c0_77] : memref<342x128xf32, #tpu.memory_space<vmem>>, vector<288x128xf32>
    %108 = arith.truncf %107 : vector<288x128xf32> to vector<288x128xbf16>
    %c7_78 = arith.constant 7 : index
    %c0_79 = arith.constant 0 : index
    %c0_80 = arith.constant 0 : index
    %109 = vector.load %arg3[%c7_78, %c0_79, %c0_80] : memref<9x128x128xbf16, #tpu.memory_space<vmem>>, vector<1x128x128xbf16>
    %110 = vector.shape_cast %109 : vector<1x128x128xbf16> to vector<128x128xbf16>
    %cst_81 = arith.constant dense<0.000000e+00> : vector<288x128xf32>
    %111 = tpu.matmul %108, %110, %cst_81 {dimension_numbers = #tpu.dot_dimension_numbers<[1], [0], [0], [1], [0, 0, 1, 1], [], []>} : vector<288x128xbf16>, vector<128x128xbf16>, vector<288x128xf32> -> vector<288x128xf32>
    %112 = arith.addf %106, %111 : vector<288x128xf32>
    %c38 = arith.constant 38 : index
    %c0_82 = arith.constant 0 : index
    %113 = vector.load %arg8[%c38, %c0_82] : memref<342x128xf32, #tpu.memory_space<vmem>>, vector<288x128xf32>
    %114 = arith.truncf %113 : vector<288x128xf32> to vector<288x128xbf16>
    %c8_83 = arith.constant 8 : index
    %c0_84 = arith.constant 0 : index
    %c0_85 = arith.constant 0 : index
    %115 = vector.load %arg3[%c8_83, %c0_84, %c0_85] : memref<9x128x128xbf16, #tpu.memory_space<vmem>>, vector<1x128x128xbf16>
    %116 = vector.shape_cast %115 : vector<1x128x128xbf16> to vector<128x128xbf16>
    %cst_86 = arith.constant dense<0.000000e+00> : vector<288x128xf32>
    %117 = tpu.matmul %114, %116, %cst_86 {dimension_numbers = #tpu.dot_dimension_numbers<[1], [0], [0], [1], [0, 0, 1, 1], [], []>} : vector<288x128xbf16>, vector<128x128xbf16>, vector<288x128xf32> -> vector<288x128xf32>
    %118 = arith.addf %112, %117 : vector<288x128xf32>
    %119 = vector.extract_strided_slice %1 {offsets = [19, 0], sizes = [288, 128], strides = [1, 1]} : vector<342x128xf32> to vector<288x128xf32>
    %c0_87 = arith.constant 0 : index
    %c0_88 = arith.constant 0 : index
    %120 = vector.load %arg5[%c0_87, %c0_88] : memref<1x128xf32, #tpu.memory_space<vmem>>, vector<1x128xf32>
    %121 = vector.broadcast %120 : vector<1x128xf32> to vector<288x128xf32>
    %122 = arith.addf %118, %121 : vector<288x128xf32>
    %123 = arith.addf %122, %119 : vector<288x128xf32>
    %cst_89 = arith.constant 0.000000e+00 : f32
    %124 = vector.broadcast %cst_89 : f32 to vector<288x128xf32>
    %125 = arith.maximumf %123, %124 : vector<288x128xf32>
    %c0_90 = arith.constant 0 : index
    %c0_91 = arith.constant 0 : index
    %c0_92 = arith.constant 0 : index
    %126 = vector.load %arg7[%c0_90, %c0_91, %c0_92] : memref<1x288x128xf32, #tpu.memory_space<vmem>>, vector<1x288x128xf32>
    %127 = vector.shape_cast %126 : vector<1x288x128xf32> to vector<288x128xf32>
    %128 = vector.shape_cast %125 : vector<288x128xf32> to vector<1x288x128xf32>
    tpu.vector_store %arg7[%c0_90, %c0_91, %c0_92], %128 {strides = array<i32>} : memref<1x288x128xf32, #tpu.memory_space<vmem>>, vector<1x288x128xf32>,
    return
  }
  func.func @transform_0(%arg0: i32) -> (i32, i32, i32) {
    %c0_i32 = arith.constant 0 : i32
    %c0_i32_0 = arith.constant 0 : i32
    %c0_i32_1 = arith.constant 0 : i32
    return %arg0, %c0_i32, %c0_i32_0 : i32, i32, i32
  }
  func.func @transform_1(%arg0: i32) -> (i32, i32, i32) {
    %c0_i32 = arith.constant 0 : i32
    %c0_i32_0 = arith.constant 0 : i32
    %c0_i32_1 = arith.constant 0 : i32
    %c0_i32_2 = arith.constant 0 : i32
    return %c0_i32, %c0_i32_0, %c0_i32_1 : i32, i32, i32
  }
  func.func @transform_2(%arg0: i32) -> (i32, i32, i32) {
    %c0_i32 = arith.constant 0 : i32
    %c0_i32_0 = arith.constant 0 : i32
    %c0_i32_1 = arith.constant 0 : i32
    %c0_i32_2 = arith.constant 0 : i32
    return %c0_i32, %c0_i32_0, %c0_i32_1 : i32, i32, i32
  }
  func.func @transform_3(%arg0: i32) -> (i32, i32) {
    %c0_i32 = arith.constant 0 : i32
    %c0_i32_0 = arith.constant 0 : i32
    %c0_i32_1 = arith.constant 0 : i32
    return %c0_i32, %c0_i32_0 : i32, i32
  }
  func.func @transform_4(%arg0: i32) -> (i32, i32) {
    %c0_i32 = arith.constant 0 : i32
    %c0_i32_0 = arith.constant 0 : i32
    %c0_i32_1 = arith.constant 0 : i32
    return %c0_i32, %c0_i32_0 : i32, i32
  }
  func.func @transform_5(%arg0: i32) -> (i32, i32) {
    %c0_i32 = arith.constant 0 : i32
    %c0_i32_0 = arith.constant 0 : i32
    %c0_i32_1 = arith.constant 0 : i32
    return %c0_i32, %c0_i32_0 : i32, i32
  }
  func.func @transform_6(%arg0: i32) -> (i32, i32, i32) {
    %c0_i32 = arith.constant 0 : i32
    %c0_i32_0 = arith.constant 0 : i32
    %c0_i32_1 = arith.constant 0 : i32
    return %arg0, %c0_i32, %c0_i32_0 : i32, i32, i32
  }
}

</mosaic_0001>

<bundles_post_ra>
// kernel: tpu_custom_call.1
= control target key start
LH: loop header
LB: loop body
LE: loop exit
PB: predicated region body
PF: predicated region fallthrough
CT: control target
= control target key end

     0   :  { %11 = vsyncpa [#allocation4], 0  ;;  %s11330_s0 = inlined_call_operand.vmem [shape: f32[2,342,128], index: 0, kind: input, shape index: {}]   ;;  %s11331_s1 = inlined_call_operand.vmem [shape: bf16[9,128,128], index: 1, kind: input, shape index: {}]   ;;  %s11332_s2 = inlined_call_operand.vmem [shape: bf16[9,128,128], index: 2, kind: input, shape index: {}]   ;;  %s11333_s3 = inlined_call_operand.vmem [shape: f32[1,128], index: 3, kind: input, shape index: {}]   ;;  %s11334_s4 = inlined_call_operand.vmem [shape: f32[1,128], index: 4, kind: input, shape index: {}]   ;;  %s11335_s5 = inlined_call_operand.vmem [shape: f32[288,1], index: 5, kind: input, shape index: {}]   ;;  %s11336_s6 = inlined_call_operand.hbm [shape: f32[2,288,128], index: 6, kind: output, shape index: {}]  }
   0x1   :  { %13 = vsyncpa [#allocation4 + $0x1], 0  ;;  %s9745_s21 = smov 0   ;;  %s9747_s22 = smov 0  }
   0x2   :  { %s9749_s23 = smov 0   ;;  %s9751_s24 = smov 0  }
   0x3 LB: > { %s9766_s25 = sadd.s32 4294967295, %s9702_s24   ;;  %s7021_s26 = sadd.s32 4294967294, %s9702_s24   ;;  %s9702_s24 = sphi %s9751_s24, %s11403_s24   ;;  %s9698_s23 = sphi %s9749_s23, %s11402_s23   ;;  %s9694_s22 = sphi %s9747_s22, %s11401_s22   ;;  %s9690_s21 = sphi %s9745_s21, %s11400_s21  }
   0x4   : > { %s9770_s27 = sadd.s32 1, %s9702_s24   ;;  %s157_s28 = sadd.s32 1, %s9698_s23 }
   0x5   : > { %s154_s29 = ssub.s32 %s9702_s24, %s9770_s27  ;;  %p167_p0 = scmp.ne.s32.totalorder %s9698_s23, %s9694_s22 }
   0x6   : > { %p155_p1 = scmp.eq.s32.totalorder %s154_s29, 0  ;;  %p168_p2 = scmp.eq.s32.totalorder %s9766_s25, 1 }
   0x7   : > { %p173_p3 = scmp.ne.s32.totalorder %s9694_s22, %s9690_s21  ;;  %p174_p4 = scmp.eq.s32.totalorder %s7021_s26, 1 }
   0x8   : > { %s9781_s30 = scalar_select %p155_p1, %s9698_s23, %s157_s28  }
   0x9   : > { %p9783_p5 = por %p168_p2, %p167_p0  ;;  %p9787_p6 = por %p174_p4, %p173_p3 }
   0xa   : > { %p7024_p7 = scmp.ge.s32.totalorder %s9702_s24, 1  ;;  %p215_p8 = scmp.lt.s32.totalorder %s9702_s24, 3 }
   0xc   : > { %p216_p9 = pnand %p7024_p7, %p215_p8 }
   0xe   : > { %219 = sbr.rel (%p216_p9) target bundleno = 1737 (0x6c9), region = 44 }
  0x15   : > { %v9459_v0 = vld [vmem:[%s11331_s1 + $0x40] sm:$0xff]   ;;  %p245_p10 = scmp.lt.s32.totalorder %s9766_s25, 1  ;;  %v9460_v1 = vld [vmem:[%s11331_s1 + $0x48] sm:$0xff]   ;;  %v9461_v2 = vld [vmem:[%s11331_s1 + $0x50] sm:$0xff]   ;;  %vm344_vm0 = vsmask.f32 7424 }
  0x16   : > { %7899 = vmatprep.subr.bf16.mxu0 %v9459_v0  ;;  %v9462_v3 = vld [vmem:[%s11331_s1 + $0x58] sm:$0xff]   ;;  %v9463_v12 = vld [vmem:[%s11331_s1 + $0x60] sm:$0xff]   ;;  %v9464_v19 = vld [vmem:[%s11331_s1 + $0x68] sm:$0xff]   ;;  %vm997_vm1 = vcmask 1046528   ;;  %vm1619_vm2 = vsmask.f32 6400 }
  0x17   : > { %s246_s13 = scalar_select %p245_p10, %s9766_s25, 1  ;;  %7900 = vmatpush3.bf16.msra.mxu0 %v9459_v0  ;;  %v9465_v24 = vld [vmem:[%s11331_s1 + $0x70] sm:$0xff]   ;;  %v9466_v35 = vld [vmem:[%s11331_s1 + $0x78] sm:$0xff]   ;;  %v9467_v46 = vld [vmem:[%s11331_s1] sm:$0xff]   ;;  %vm2001_vm3 = vcmask 1045504   ;;  %vm3005_vm5 = vcmask 1044480  }
  0x18   : > { %7901 = vmatprep.subr.bf16.mxu0 %v9460_v1  ;;  %v9468_v60 = vld [vmem:[%s11331_s1 + $0x8] sm:$0xff]   ;;  %vm2623_vm4 = vsmask.f32 5376  ;;  %s242_s11 = sand.u32 1, %s9694_s22   ;;  %s9707_s28 = smov [#allocation3]  }
  0x19   : > { %s9412_s16 = smul.u32 344, %s246_s13  ;;  %s9644_s29 = sshll.u32 %s9707_s28, 4  ;;  %s9645_s29 = int_to_ptr.vmem [resolvable:$false] %s9644_s29 }
  0x1a   : > { %s9411_s14 = smul.u32 288, %s242_s11  ;;  %s9646_s9 = scalar_lea.vmem %s9645_s29, 9216 }
  0x1b   : > { %s9807_s19 = scalar_lea.vmem %s11330_s0, %s9412_s16  ;;  %7902 = vmatpush3.bf16.msra.mxu0 %v9460_v1 }
  0x1c   : > { %7903 = vmatprep.subr.bf16.mxu0 %v9461_v2  ;;  %v251_v4 = vld [vmem:[%s9807_s19] sm:$0xff]  ;;  %v252_v5 = vld [vmem:[%s9807_s19 + $0x8] sm:$0xff]  ;;  %v253_v6 = vld [vmem:[%s9807_s19 + $0x10] sm:$0xff]  ;;  %s11148_s15 = scalar_lea.vmem [#allocation3], %s9411_s14 }
  0x1d   : > { %v254_v7 = vld [vmem:[%s9807_s19 + $0x18] sm:$0xff]  ;;  %v9816_v8 = vpack.c.bf16 %v252_v5, %v251_v4  ;;  %v255_v17 = vld [vmem:[%s9807_s19 + $0x20] sm:$0xff]  ;;  %v256_v18 = vld [vmem:[%s9807_s19 + $0x28] sm:$0xff]  ;;  %s6959_s16 = sshll.u32 %s11148_s15, 4  ;;  %s11283_s16 = int_to_ptr.vmem [resolvable:$true] %s6959_s16 }
  0x1e   : > { %v9818_v9 = vpack.c.bf16 %v254_v7, %v253_v6  ;;  %v257_v21 = vld [vmem:[%s9807_s19 + $0x30] sm:$0xff]  ;;  %v258_v22 = vld [vmem:[%s9807_s19 + $0x38] sm:$0xff]  ;;  %v9836_v23 = vpack.c.bf16 %v256_v18, %v255_v17  ;;  %v259_v25 = vld [vmem:[%s9807_s19 + $0x40] sm:$0xff]  ;;  %s9640_s26 = scalar_lea.vmem %s11283_s16, 4608  ;;  %p9647_p0 = scmp.lt.s32.totalorder %s11283_s16, %s9645_s29 }
  0x1f   : > { %7904 = vmatpush3.bf16.msra.mxu0 %v9461_v2  ;;  %v346_v10 = vshrl.u32 %v9816_v8, 16  ;;  %v348_v11 = vshll.u32 %v9816_v8, 16  ;;  %v9842_v26 = vpack.c.bf16 %v258_v22, %v257_v21  ;;  %v260_v27 = vld [vmem:[%s9807_s19 + $0x48] sm:$0xff]  ;;  %v261_v28 = vld [vmem:[%s9807_s19 + $0x50] sm:$0xff]  ;;  %v262_v29 = vld [vmem:[%s9807_s19 + $0x58] sm:$0xff]  ;;  %p9641_p11 = scmp.ne.s32.totalorder %s11283_s16, %s9640_s26  ;;  %p9648_p1 = scmp.lt.s32.totalorder %s9646_s9, %s9640_s26 }
  0x20   : > { %7905 = vmatprep.subr.bf16.mxu0 %v9462_v3  ;;  %v11337_v13 = vshll.u32 %v9818_v9, 16  ;;  %v9848_v30 = vshll.u32 %v9836_v23, 16  ;;  %v11338_v31 = vshrl.u32 %v9818_v9, 16  ;;  %v9851_v32 = vpack.c.bf16 %v260_v27, %v259_v25  ;;  %v263_v33 = vld [vmem:[%s9807_s19 + $0x60] sm:$0xff]  ;;  %v264_v34 = vld [vmem:[%s9807_s19 + $0x68] sm:$0xff]  ;;  %v265_v39 = vld [vmem:[%s9807_s19 + $0x70] sm:$0xff] }
  0x21   : > { %v350_v14 = vrot.slane %v348_v11, 1  ;;  %v9859_v36 = vshrl.u32 %v9836_v23, 16  ;;  %v9862_v37 = vshll.u32 %v9842_v26, 16  ;;  %v9864_v38 = vpack.c.bf16 %v262_v29, %v261_v28  ;;  %v266_v42 = vld [vmem:[%s9807_s19 + $0x78] sm:$0xff]  ;;  %v267_v43 = vld [vmem:[%s9807_s19 + $0x80] sm:$0xff]  ;;  %v268_v44 = vld [vmem:[%s9807_s19 + $0x88] sm:$0xff]  ;;  %p9642_p12 = pnand %p9641_p11, %p9783_p5  ;;  %p9649_p2 = por %p9648_p1, %p9647_p0 }
  0x22   : > { %v355_v15 = vrot.slane %v11337_v13, 1  ;;  %v363_v40 = vrot.slane %v9848_v30, 1  ;;  %v9868_v41 = vpack.c.bf16 %v264_v34, %v263_v33  ;;  %v9879_v47 = vshll.u32 %v9851_v32, 16  ;;  %v269_v51 = vld [vmem:[%s9807_s19 + $0x90] sm:$0xff]  ;;  %v270_v52 = vld [vmem:[%s9807_s19 + $0x98] sm:$0xff]  ;;  %v271_v63 = vld [vmem:[%s9807_s19 + $0xa0] sm:$0xff] }
  0x23   : > { %7906 = vmatpush3.bf16.msra.mxu0 %v9462_v3  ;;  %v351_v16 = vor.u32 %v350_v14, %v346_v10  ;;  %v371_v49 = vrot.slane %v9862_v37, 1  ;;  %v9884_v50 = vshll.u32 %v9864_v38, 16  ;;  %v9889_v53 = vshrl.u32 %v9842_v26, 16  ;;  %v272_v2 = vld [vmem:[%s9807_s19 + $0xa8] sm:$0xff]  ;;  %v9469_v6 = vld [vmem:[%s11331_s1 + $0x10] sm:$0xff]   ;;  %v274_v11 = vld [vmem:[%s9807_s19 + $0xb8] sm:$0xff]  ;;  %p9643_p13 = pneg %p9642_p12 }
  0x24   : > { %7907 = vmatprep.subr.bf16.mxu0 %v9463_v12  ;;  %11365 = vst [vmem:[#allocation6_spill] sm:$0xff] %v9868_v41  ;;  %v359_v45 = vor.u32 %v11338_v31, %v355_v15  ;;  %v367_v48 = vor.u32 %v9859_v36, %v363_v40  ;;  %v9891_v54 = vpack.c.bf16 %v266_v42, %v265_v39  ;;  %v9896_v56 = vshrl.u32 %v9851_v32, 16  ;;  %v273_v10 = vld [vmem:[%s9807_s19 + $0xb0] sm:$0xff]  ;;  %v9470_v25 = vld [vmem:[%s11331_s1 + $0x18] sm:$0xff]   ;;  %v9471_v39 = vld [vmem:[%s11331_s1 + $0x20] sm:$0xff]  }
  0x25   : > { %v356_v20 = vsel %vm344_vm0, %v351_v16, %v355_v15  ;;  %v9893_v55 = vpack.c.bf16 %v268_v44, %v267_v43  ;;  %v9899_v57 = vshll.u32 %v9868_v41, 16  ;;  %v379_v59 = vrot.slane %v9879_v47, 1  ;;  %v275_v16 = vld [vmem:[%s9807_s19 + $0xc0] sm:$0xff]  ;;  %v277_v44 = vld [vmem:[%s9807_s19 + $0xd0] sm:$0xff]  ;;  %p9650_p3 = pnand %p9649_p2, %p9643_p13 }
  0x26   : > { %7915 = vmatprep.mubr.bf16.mxu0 %v356_v20  ;;  %11366 = vst [vmem:[#allocation7_spill] sm:$0xff] %v9891_v54  ;;  %v364_v58 = vsel %vm344_vm0, %v359_v45, %v363_v40  ;;  %v9907_v61 = vshrl.u32 %v9864_v38, 16  ;;  %v9909_v62 = vpack.c.bf16 %v270_v52, %v269_v51  ;;  %v372_v0 = vsel %vm344_vm0, %v367_v48, %v371_v49  ;;  %v278_v45 = vld [vmem:[%s9807_s19 + $0xd8] sm:$0xff]  ;;  %v9472_v52 = vld [vmem:[%s11331_s1 + $0x28] sm:$0xff]  }
  0x27   : > { %7908 = vmatpush3.bf16.msra.mxu0 %v9463_v12  ;;  %11367 = vst [vmem:[#allocation8_spill] sm:$0xff] %v9893_v55  ;;  %v387_v1 = vrot.slane %v9884_v50, 1  ;;  %v9916_v3 = vshll.u32 %v9891_v54, 16  ;;  %v9919_v4 = vshll.u32 %v9893_v55, 16  ;;  %v395_v5 = vrot.slane %v9899_v57, 1 }
  0x28   : > { %7909 = vmatprep.subr.bf16.mxu0 %v9464_v19  ;;  %11368 = vst [vmem:[#allocation9_spill] sm:$0xff] %v9909_v62  ;;  %v9926_v7 = vshrl.u32 %v9868_v41, 16  ;;  %v375_v12 = vor.u32 %v9889_v53, %v371_v49  ;;  %v9932_v14 = vshll.u32 %v9909_v62, 16  ;;  %v9934_v15 = vpack.c.bf16 %v272_v2, %v271_v63  ;;  %v279_v63 = vld [vmem:[%s9807_s19 + $0xe0] sm:$0xff] }
  0x29   : > { %v383_v17 = vor.u32 %v9896_v56, %v379_v59  ;;  %v9939_v18 = vshrl.u32 %v9891_v54, 16  ;;  %v403_v20 = vrot.slane %v9916_v3, 1  ;;  %v411_v21 = vrot.slane %v9919_v4, 1 }
  0x2a   : > { %11369 = vst [vmem:[#allocation10_spill] sm:$0xff] %v9934_v15  ;;  %v9945_v22 = vshrl.u32 %v9893_v55, 16  ;;  %v9953_v27 = vpack.c.bf16 %v274_v11, %v273_v10  ;;  %v380_v28 = vsel %vm344_vm0, %v375_v12, %v379_v59  ;;  %v419_v29 = vrot.slane %v9932_v14, 1 }
  0x2b   : > { %7910 = vmatpush3.bf16.msra.mxu0 %v9464_v19  ;;  %v276_v19 = vld [vmem:[%s9807_s19 + $0xc8] sm:$0xff]  ;;  %v9958_v33 = vshll.u32 %v9934_v15, 16  ;;  %v9967_v40 = vshrl.u32 %v9934_v15, 16  ;;  %v399_v51 = vor.u32 %v9926_v7, %v395_v5  ;;  %v9987_v59 = vpack.c.bf16 %v278_v45, %v277_v44  ;;  %v9475_v45 = vld [vmem:[%s11331_s1 + $0x80] sm:$0xff]  }
  0x2c   : > { %7911 = vmatprep.subr.bf16.mxu0 %v9465_v24  ;;  %11370 = vst [vmem:[#allocation11_spill] sm:$0xff] %v9953_v27  ;;  %v9960_v34 = vpack.c.bf16 %v276_v19, %v275_v16  ;;  %v9970_v42 = vshll.u32 %v9953_v27, 16  ;;  %v9973_v43 = vshrl.u32 %v9953_v27, 16  ;;  %v415_v12 = vor.u32 %v9945_v22, %v411_v21 }
  0x2d   : > { %v427_v48 = vrot.slane %v9958_v33, 1  ;;  %11372 = vst [vmem:[#allocation13_spill] sm:$0xff] %v9987_v59  ;;  %v10002_v11 = vshll.u32 %v9987_v59, 16 }
  0x2e   : > { %11371 = vst [vmem:[#allocation12_spill] sm:$0xff] %v9960_v34  ;;  %v9980_v49 = vshll.u32 %v9960_v34, 16  ;;  %v9994_v2 = vshrl.u32 %v9960_v34, 16 }
  0x2f   : > { %7912 = vmatpush3.bf16.msra.mxu0 %v9465_v24  ;;  %v9948_v24 = vshrl.u32 %v9909_v62, 16 }
  0x30   : > { %7913 = vmatprep.subr.bf16.mxu0 %v9466_v35  ;;  %v443_v10 = vrot.slane %v9980_v49, 1 }
  0x31   : > { %v423_v44 = vor.u32 %v9948_v24, %v419_v29 }
  0x33   : > { %7914 = vmatpush3.bf16.msra.mxu0 %v9466_v35  ;;  %v388_v35 = vsel %vm344_vm0, %v383_v17, %v387_v1  ;;  %v9474_v17 = vld [vmem:[%s11331_s1 + $0x38] sm:$0xff]  }
  0x34   : > { %7951 = vmatprep.subr.bf16.mxu0 %v9467_v46 }
  0x36   : > { %7916 = vmatmul.mubr.bf16.vlgmr.msra.gmra.mrb[0].mxu0 %v364_v58 }
  0x37   : > { %7952 = vmatpush3.bf16.msra.mxu0 %v9467_v46  ;;  %7919 = vmatprep.mubr.bf16.mxu0 %v372_v0  ;;  %v391_v46 = vor.u32 %v9907_v61, %v387_v1  ;;  %v280_v0 = vld [vmem:[%s9807_s19 + $0xe8] sm:$0xff]  ;;  %v435_v1 = vrot.slane %v9970_v42, 1 }
  0x38   : > { %7953 = vmatprep.subr.bf16.mxu0 %v9468_v60  ;;  %v10005_v16 = vpack.c.bf16 %v280_v0, %v279_v63 }
  0x39   : > { %v396_v58 = vsel %vm344_vm0, %v391_v46, %v395_v5  ;;  %v407_v5 = vor.u32 %v9939_v18, %v403_v20  ;;  %v431_v46 = vor.u32 %v9967_v40, %v427_v48 }
  0x3a   : > { %11373 = vst [vmem:[#allocation14_spill] sm:$0xff] %v10005_v16  ;;  %v10034_v0 = vshrl.u32 %v10005_v16, 16 }
  0x3b   : > { %7954 = vmatpush3.bf16.msra.mxu0 %v9468_v60  ;;  %v404_v60 = vsel %vm344_vm0, %v399_v51, %v403_v20  ;;  %v412_v19 = vsel %vm344_vm0, %v407_v5, %v411_v21  ;;  %v420_v20 = vsel %vm344_vm0, %v415_v12, %v419_v29  ;;  %v451_v21 = vrot.slane %v10002_v11, 1  ;;  %v283_v29 = vld [vmem:[%s9807_s19 + $0x100] sm:$0xff]  ;;  %v286_v5 = vld [vmem:[%s9807_s19 + $0x118] sm:$0xff] }
  0x3c   : > { %7955 = vmatprep.subr.bf16.mxu0 %v9469_v6  ;;  %v428_v51 = vsel %vm344_vm0, %v423_v44, %v427_v48  ;;  %v439_v48 = vor.u32 %v9973_v43, %v435_v1 }
  0x3e   : > { %7920 = vmatmul.mubr.bf16.gmra.mrb[4].mxu0 %v380_v28  ;;  %v10016_v28 = vshll.u32 %v10005_v16, 16 }
  0x3f   : > { %7923 = vmatprep.mubr.bf16.mxu0 %v388_v35  ;;  %7956 = vmatpush3.bf16.msra.mxu0 %v9469_v6  ;;  %v9473_v6 = vld [vmem:[%s11331_s1 + $0x30] sm:$0xff]  }
  0x40   : > { %7957 = vmatprep.subr.bf16.mxu0 %v9470_v25  ;;  %v281_v35 = vld [vmem:[%s9807_s19 + $0xf0] sm:$0xff]  ;;  %v459_v63 = vrot.slane %v10016_v28, 1 }
  0x43   : > { %7958 = vmatpush3.bf16.msra.mxu0 %v9470_v25  ;;  %v10013_v25 = vshrl.u32 %v9987_v59, 16 }
  0x44   : > { %7959 = vmatprep.subr.bf16.mxu0 %v9471_v39 }
  0x46   : > { %7924 = vmatmul.mubr.bf16.gmra.mrb[8].mxu0 %v396_v58  ;;  %v436_v58 = vsel %vm344_vm0, %v431_v46, %v435_v1 }
  0x47   : > { %7927 = vmatprep.mubr.bf16.mxu0 %v404_v60  ;;  %7960 = vmatpush3.bf16.msra.mxu0 %v9471_v39  ;;  %v282_v39 = vld [vmem:[%s9807_s19 + $0xf8] sm:$0xff]  ;;  %v284_v60 = vld [vmem:[%s9807_s19 + $0x108] sm:$0xff] }
  0x48   : > { %7961 = vmatprep.subr.bf16.mxu0 %v9472_v52 }
  0x4b   : > { %7962 = vmatpush3.bf16.msra.mxu0 %v9472_v52  ;;  %v10027_v52 = vpack.c.bf16 %v282_v39, %v281_v35  ;;  %v444_v35 = vsel %vm344_vm0, %v439_v48, %v443_v10 }
  0x4c   : > { %7963 = vmatprep.subr.bf16.mxu0 %v9473_v6 }
  0x4d   : > { %11374 = vst [vmem:[#allocation15_spill] sm:$0xff] %v10027_v52  ;;  %v10040_v12 = vshll.u32 %v10027_v52, 16 }
  0x4e   : > { %7928 = vmatmul.mubr.bf16.gmra.mrb[12].mxu0 %v412_v19  ;;  %v447_v19 = vor.u32 %v9994_v2, %v443_v10 }
  0x4f   : > { %7931 = vmatprep.mubr.bf16.mxu0 %v420_v20  ;;  %7964 = vmatpush3.bf16.msra.mxu0 %v9473_v6  ;;  %v285_v6 = vld [vmem:[%s9807_s19 + $0x110] sm:$0xff]  ;;  %v10046_v20 = vpack.c.bf16 %v284_v60, %v283_v29  ;;  %v467_v46 = vrot.slane %v10040_v12, 1  ;;  %v463_v60 = vor.u32 %v10034_v0, %v459_v63 }
  0x50   : > { %7965 = vmatprep.subr.bf16.mxu0 %v9474_v17  ;;  %v10049_v39 = vpack.c.bf16 %v286_v5, %v285_v6  ;;  %v452_v44 = vsel %vm344_vm0, %v447_v19, %v451_v21 }
  0x51   : > { %v10054_v1 = vshll.u32 %v10046_v20, 16  ;;  %v10061_v29 = vshrl.u32 %v10046_v20, 16  ;;  %v468_v48 = vsel %vm344_vm0, %v463_v60, %v467_v46 }
  0x52   : > { %v10064_v10 = vshll.u32 %v10049_v39, 16 }
  0x53   : > { %7966 = vmatpush3.bf16.msra.mxu0 %v9474_v17  ;;  %v10043_v17 = vshrl.u32 %v10027_v52, 16  ;;  %11375 = vst [vmem:[#allocation16_spill] sm:$0xff] %v10054_v1  ;;  %v475_v19 = vrot.slane %v10054_v1, 1 }
  0x54   : > { %8003 = vmatprep.subr.bf16.mxu0 %v9475_v45 }
  0x56   : > { %7932 = vmatmul.mubr.bf16.gmra.mrb[16].mxu0 %v428_v51  ;;  %v10057_v51 = vld [vmem:[%s9807_s19 + $0x120] sm:$0xff] }
  0x57   : > { %7935 = vmatprep.mubr.bf16.mxu0 %v436_v58  ;;  %v455_v58 = vor.u32 %v10013_v25, %v451_v21  ;;  %v10070_v5 = vpack.c.bf16 %v10057_v51, %v10057_v51  ;;  %v10075_v21 = vshrl.u32 %v10049_v39, 16 }
  0x59   : > { %v460_v6 = vsel %vm344_vm0, %v455_v58, %v459_v63  ;;  %v489_v13 = vshll.u32 %v10070_v5, 16  ;;  %v479_v63 = vor.u32 %v10061_v29, %v475_v19 }
  0x5e   : > { %7936 = vmatmul.mubr.bf16.gmra.mrb[20].mxu0 %v444_v35  ;;  %v471_v35 = vor.u32 %v10043_v17, %v467_v46  ;;  %v9476_v46 = vld [vmem:[%s11331_s1 + $0x88] sm:$0xff]  }
  0x5f   : > { %7939 = vmatprep.mubr.bf16.mxu0 %v452_v44  ;;  %v483_v44 = vrot.slane %v10064_v10, 1 }
  0x60   : > { %v476_v58 = vsel %vm344_vm0, %v471_v35, %v475_v19  ;;  %v9482_v19 = vld [vmem:[%s11331_s1 + $0xb8] sm:$0xff]   ;;  %v9483_v35 = vld [vmem:[%s11331_s1 + $0xc0] sm:$0xff]  }
  0x61   : > { %v484_v31 = vsel %vm344_vm0, %v479_v63, %v483_v44  ;;  %v487_v60 = vor.u32 %v10075_v21, %v483_v44  ;;  %v998_v44 = vrot.slane %v9816_v8, 1  ;;  %v999_v63 = vrot.slane %v9818_v9, 1 }
  0x66   : > { %7940 = vmatmul.mubr.bf16.gmra.mrb[24].mxu0 %v460_v6  ;;  %v491_v6 = vrot.slane %v489_v13, 1  ;;  %v9478_v13 = vld [vmem:[%s11331_s1 + $0x98] sm:$0xff]  }
  0x67   : > { %7943 = vmatprep.mubr.bf16.mxu0 %v468_v48  ;;  %v9481_v48 = vld [vmem:[%s11331_s1 + $0xb0] sm:$0xff]  }
  0x68   : > { %v492_v1 = vsel %vm344_vm0, %v487_v60, %v491_v6  ;;  %v1001_v60 = vrot.slane %v9836_v23, 1  ;;  %v1003_v6 = vrot.slane %v9842_v26, 1 }
  0x6e   : > { %7944 = vmatmul.mubr.bf16.gmra.mrb[28].mxu0 %v476_v58  ;;  %v1000_v58 = vsel %vm997_vm1, %v998_v44, %v999_v63  ;;  %v1009_v44 = vrot.slane %v9868_v41, 1 }
  0x6f   : > { %7947 = vmatprep.mubr.bf16.mxu0 %v484_v31  ;;  %v9477_v31 = vld [vmem:[%s11331_s1 + $0x90] sm:$0xff]  }
  0x76   : > { %7948 = vmatmul.mubr.bf16.gmra.mrb[32].mxu0 %v492_v1  ;;  %v9479_v1 = vld [vmem:[%s11331_s1 + $0xa0] sm:$0xff]  }
  0x77   : > { %7967 = vmatprep.mubr.bf16.mxu0 %v9816_v8  ;;  %v9484_v8 = vld [vmem:[%s11331_s1 + $0xc8] sm:$0xff]  }
  0x7e   : > { %7968 = vmatmul.mubr.bf16.vlgmr.msra.gmra.mrb[0].mxu0 %v9818_v9 }
  0x7f   : > { %8004 = vmatpush3.bf16.msra.mxu0 %v9475_v45  ;;  %7971 = vmatprep.mubr.bf16.mxu0 %v9836_v23  ;;  %v9480_v45 = vld [vmem:[%s11331_s1 + $0xa8] sm:$0xff]  }
  0x80   : > { %8005 = vmatprep.subr.bf16.mxu0 %v9476_v46 }
  0x83   : > { %8006 = vmatpush3.bf16.msra.mxu0 %v9476_v46  ;;  %v10133_v46 = vsel %vm997_vm1, %v999_v63, %v1001_v60  ;;  %v1011_v63 = vrot.slane %v9891_v54, 1 }
  0x84   : > { %8007 = vmatprep.subr.bf16.mxu0 %v9477_v31 }
  0x86   : > { %7972 = vmatmul.mubr.bf16.gmra.mrb[4].mxu0 %v9842_v26 }
  0x87   : > { %7975 = vmatprep.mubr.bf16.mxu0 %v9851_v32  ;;  %8008 = vmatpush3.bf16.msra.mxu0 %v9477_v31  ;;  %v10136_v31 = vsel %vm997_vm1, %v1001_v60, %v1003_v6 }
  0x88   : > { %8009 = vmatprep.subr.bf16.mxu0 %v9478_v13 }
  0x8b   : > { %8010 = vmatpush3.bf16.msra.mxu0 %v9478_v13  ;;  %v1005_v13 = vrot.slane %v9851_v32, 1 }
  0x8c   : > { %8011 = vmatprep.subr.bf16.mxu0 %v9479_v1 }
  0x8e   : > { %7976 = vmatmul.mubr.bf16.gmra.mrb[8].mxu0 %v9864_v38 }
  0x8f   : > { %7979 = vmatprep.mubr.bf16.mxu0 %v9868_v41  ;;  %8012 = vmatpush3.bf16.msra.mxu0 %v9479_v1  ;;  %v1007_v1 = vrot.slane %v9864_v38, 1  ;;  %v1025_v41 = vrot.slane %v10005_v16, 1 }
  0x90   : > { %8013 = vmatprep.subr.bf16.mxu0 %v9480_v45 }
  0x91   : > { %v1010_v60 = vsel %vm997_vm1, %v1007_v1, %v1009_v44 }
  0x93   : > { %8014 = vmatpush3.bf16.msra.mxu0 %v9480_v45  ;;  %v9485_v45 = vld [vmem:[%s11331_s1 + $0xd0] sm:$0xff]  }
  0x94   : > { %8015 = vmatprep.subr.bf16.mxu0 %v9481_v48 }
  0x96   : > { %7980 = vmatmul.mubr.bf16.gmra.mrb[12].mxu0 %v9891_v54  ;;  %v9490_v54 = vld [vmem:[%s11331_s1 + $0xf8] sm:$0xff]  }
  0x97   : > { %7983 = vmatprep.mubr.bf16.mxu0 %v9893_v55  ;;  %8016 = vmatpush3.bf16.msra.mxu0 %v9481_v48  ;;  %v10149_v48 = vsel %vm997_vm1, %v1003_v6, %v1005_v13  ;;  %v10166_v6 = vsel %vm997_vm1, %v1009_v44, %v1011_v63 }
  0x98   : > { %8017 = vmatprep.subr.bf16.mxu0 %v9482_v19 }
  0x9b   : > { %8018 = vmatpush3.bf16.msra.mxu0 %v9482_v19  ;;  %v10152_v19 = vsel %vm997_vm1, %v1005_v13, %v1007_v1  ;;  %v1013_v13 = vrot.slane %v9893_v55, 1  ;;  %v9489_v1 = vld [vmem:[%s11331_s1 + $0xf0] sm:$0xff]   ;;  %v1021_v55 = vrot.slane %v9960_v34, 1 }
  0x9c   : > { %8055 = vmatprep.subr.bf16.mxu0 %v9483_v35 }
  0x9e   : > { %7984 = vmatmul.mubr.bf16.gmra.mrb[16].mxu0 %v9909_v62 }
  0x9f   : > { %7987 = vmatprep.mubr.bf16.mxu0 %v9934_v15 }
  0xa6   : > { %7988 = vmatmul.mubr.bf16.gmra.mrb[20].mxu0 %v9953_v27 }
  0xa7   : > { %7991 = vmatprep.mubr.bf16.mxu0 %v9960_v34  ;;  %v1029_v34 = vrot.slane %v10046_v20, 1 }
  0xae   : > { %7992 = vmatmul.mubr.bf16.gmra.mrb[24].mxu0 %v9987_v59 }
  0xaf   : > { %7995 = vmatprep.mubr.bf16.mxu0 %v10005_v16  ;;  %v1033_v16 = vrot.slane %v10070_v5, 1  ;;  %v9497_v5 = vld [vmem:[%s11331_s1 + $0x130] sm:$0xff]  }
  0xb6   : > { %7996 = vmatmul.mubr.bf16.gmra.mrb[28].mxu0 %v10027_v52 }
  0xb7   : > { %7999 = vmatprep.mubr.bf16.mxu0 %v10046_v20 }
  0xbe   : > { %8000 = vmatmul.mubr.bf16.gmra.mrb[32].mxu0 %v10049_v39 }
  0xbf   : > { %8019 = vmatprep.mubr.bf16.mxu0 %v1000_v58  ;;  %v9487_v58 = vld [vmem:[%s11331_s1 + $0xe0] sm:$0xff]  }
  0xc6   : > { %8020 = vmatmul.mubr.bf16.vlgmr.msra.gmra.mrb[0].mxu0 %v10133_v46 }
  0xc7   : > { %8056 = vmatpush3.bf16.msra.mxu0 %v9483_v35  ;;  %8023 = vmatprep.mubr.bf16.mxu0 %v10136_v31  ;;  %v9486_v35 = vld [vmem:[%s11331_s1 + $0xd8] sm:$0xff]  }
  0xc8   : > { %8057 = vmatprep.subr.bf16.mxu0 %v9484_v8 }
  0xcb   : > { %8058 = vmatpush3.bf16.msra.mxu0 %v9484_v8  ;;  %v9488_v8 = vld [vmem:[%s11331_s1 + $0xe8] sm:$0xff]  }
  0xcc   : > { %8059 = vmatprep.subr.bf16.mxu0 %v9485_v45 }
  0xce   : > { %8024 = vmatmul.mubr.bf16.gmra.mrb[4].mxu0 %v10149_v48 }
  0xcf   : > { %8027 = vmatprep.mubr.bf16.mxu0 %v10152_v19  ;;  %8060 = vmatpush3.bf16.msra.mxu0 %v9485_v45  ;;  %v1015_v45 = vrot.slane %v9909_v62, 1  ;;  %v1019_v62 = vrot.slane %v9953_v27, 1 }
  0xd0   : > { %8061 = vmatprep.subr.bf16.mxu0 %v9486_v35 }
  0xd1   : > { %v1016_v44 = vsel %vm997_vm1, %v1013_v13, %v1015_v45 }
  0xd3   : > { %8062 = vmatpush3.bf16.msra.mxu0 %v9486_v35  ;;  %v1014_v35 = vsel %vm997_vm1, %v1011_v63, %v1013_v13  ;;  %v9491_v63 = vld [vmem:[%s11331_s1 + $0x100] sm:$0xff]  }
  0xd4   : > { %8063 = vmatprep.subr.bf16.mxu0 %v9487_v58 }
  0xd6   : > { %8028 = vmatmul.mubr.bf16.gmra.mrb[8].mxu0 %v1010_v60 }
  0xd7   : > { %8031 = vmatprep.mubr.bf16.mxu0 %v10166_v6  ;;  %8064 = vmatpush3.bf16.msra.mxu0 %v9487_v58  ;;  %v1017_v58 = vrot.slane %v9934_v15, 1  ;;  %v1023_v15 = vrot.slane %v9987_v59, 1  ;;  %v1031_v59 = vrot.slane %v10049_v39, 1 }
  0xd8   : > { %8065 = vmatprep.subr.bf16.mxu0 %v9488_v8 }
  0xd9   : > { %v1020_v13 = vsel %vm997_vm1, %v1017_v58, %v1019_v62  ;;  %v1024_v27 = vsel %vm997_vm1, %v1021_v55, %v1023_v15 }
  0xdb   : > { %8066 = vmatpush3.bf16.msra.mxu0 %v9488_v8  ;;  %v1018_v8 = vsel %vm997_vm1, %v1015_v45, %v1017_v58  ;;  %v1027_v45 = vrot.slane %v10027_v52, 1  ;;  %v1034_v52 = vsel %vm997_vm1, %v1031_v59, %v1033_v16  ;;  %v9495_v16 = vld [vmem:[%s11331_s1 + $0x120] sm:$0xff]  }
  0xdc   : > { %8067 = vmatprep.subr.bf16.mxu0 %v9489_v1 }
  0xdd   : > { %v1028_v58 = vsel %vm997_vm1, %v1025_v41, %v1027_v45 }
  0xde   : > { %8032 = vmatmul.mubr.bf16.gmra.mrb[12].mxu0 %v1014_v35 }
  0xdf   : > { %8035 = vmatprep.mubr.bf16.mxu0 %v1016_v44  ;;  %8068 = vmatpush3.bf16.msra.mxu0 %v9489_v1  ;;  %v1022_v1 = vsel %vm997_vm1, %v1019_v62, %v1021_v55  ;;  %v1030_v62 = vsel %vm997_vm1, %v1027_v45, %v1029_v34  ;;  %v1032_v55 = vsel %vm997_vm1, %v1029_v34, %v1031_v59  ;;  %v9494_v34 = vld [vmem:[%s11331_s1 + $0x118] sm:$0xff]  }
  0xe0   : > { %8069 = vmatprep.subr.bf16.mxu0 %v9490_v54 }
  0xe3   : > { %8070 = vmatpush3.bf16.msra.mxu0 %v9490_v54  ;;  %v1026_v54 = vsel %vm997_vm1, %v1023_v15, %v1025_v41  ;;  %v9492_v41 = vld [vmem:[%s11331_s1 + $0x108] sm:$0xff]   ;;  %v9493_v15 = vld [vmem:[%s11331_s1 + $0x110] sm:$0xff]  }
  0xe4   : > { %8107 = vmatprep.subr.bf16.mxu0 %v9491_v63 }
  0xe6   : > { %8036 = vmatmul.mubr.bf16.gmra.mrb[16].mxu0 %v1018_v8 }
  0xe7   : > { %8039 = vmatprep.mubr.bf16.mxu0 %v1020_v13 }
  0xee   : > { %8040 = vmatmul.mubr.bf16.gmra.mrb[20].mxu0 %v1022_v1 }
  0xef   : > { %8043 = vmatprep.mubr.bf16.mxu0 %v1024_v27 }
  0xf6   : > { %8044 = vmatmul.mubr.bf16.gmra.mrb[24].mxu0 %v1026_v54 }
  0xf7   : > { %8047 = vmatprep.mubr.bf16.mxu0 %v1028_v58 }
  0xfe   : > { %8048 = vmatmul.mubr.bf16.gmra.mrb[28].mxu0 %v1030_v62 }
  0xff   : > { %8051 = vmatprep.mubr.bf16.mxu0 %v1032_v55 }
 0x106   : > { %8052 = vmatmul.mubr.bf16.gmra.mrb[32].mxu0 %v1034_v52  ;;  %v9496_v52 = vld [vmem:[%s11331_s1 + $0x128] sm:$0xff]  }
 0x107   : > { %8071 = vmatprep.mubr.bf16.mxu0 %v10133_v46  ;;  %v9498_v46 = vld [vmem:[%s11331_s1 + $0x138] sm:$0xff]  }
 0x10e   : > { %8072 = vmatmul.mubr.bf16.vlgmr.msra.gmra.mrb[0].mxu0 %v10136_v31  ;;  %v9499_v31 = vld [vmem:[%s11331_s1 + $0x140] sm:$0xff]  }
 0x10f   : > { %8108 = vmatpush3.bf16.msra.mxu0 %v9491_v63  ;;  %8075 = vmatprep.mubr.bf16.mxu0 %v10149_v48  ;;  %v288_v48 = vld [vmem:[%s9807_s19 + $0x128] sm:$0xff]  ;;  %v11376_v63 = vshrl.u32 %v9818_v9, 16 }
 0x110   : > { %8109 = vmatprep.subr.bf16.mxu0 %v9492_v41 }
 0x113   : > { %8110 = vmatpush3.bf16.msra.mxu0 %v9492_v41  ;;  %v1628_v41 = vrot.slane %v9862_v37, 2 }
 0x114   : > { %8111 = vmatprep.subr.bf16.mxu0 %v9493_v15 }
 0x116   : > { %8076 = vmatmul.mubr.bf16.gmra.mrb[4].mxu0 %v10152_v19  ;;  %v10234_v19 = vpack.c.bf16 %v288_v48, %v10057_v51  ;;  %v1623_v51 = vrot.slane %v9859_v36, 1  ;;  %v1636_v48 = vrot.slane %v9884_v50, 2 }
 0x117   : > { %8079 = vmatprep.mubr.bf16.mxu0 %v1010_v60  ;;  %8112 = vmatpush3.bf16.msra.mxu0 %v9493_v15 }
 0x118   : > { %8113 = vmatprep.subr.bf16.mxu0 %v9494_v34  ;;  %v1335_v60 = vrot.slane %v10234_v19, 1 }
 0x11b   : > { %8114 = vmatpush3.bf16.msra.mxu0 %v9494_v34  ;;  %v1631_v34 = vrot.slane %v9896_v56, 1 }
 0x11c   : > { %8115 = vmatprep.subr.bf16.mxu0 %v9495_v16 }
 0x11e   : > { %8080 = vmatmul.mubr.bf16.gmra.mrb[8].mxu0 %v10166_v6  ;;  %v10238_v6 = vld [vmem:[%s9807_s19 + $0x130] sm:$0xff] }
 0x11f   : > { %8083 = vmatprep.mubr.bf16.mxu0 %v1014_v35  ;;  %8116 = vmatpush3.bf16.msra.mxu0 %v9495_v16  ;;  %v1336_v35 = vsel %vm997_vm1, %v1031_v59, %v1335_v60  ;;  %v1632_v16 = vrot.slane %v9879_v47, 2 }
 0x120   : > { %8117 = vmatprep.subr.bf16.mxu0 %v9496_v52 }
 0x123   : > { %8118 = vmatpush3.bf16.msra.mxu0 %v9496_v52  ;;  %v1633_v52 = vor.u32 %v1632_v16, %v1631_v34  ;;  %v9503_v34 = vld [vmem:[%s11331_s1 + $0x160] sm:$0xff]  }
 0x124   : > { %8119 = vmatprep.subr.bf16.mxu0 %v9497_v5 }
 0x126   : > { %8084 = vmatmul.mubr.bf16.gmra.mrb[12].mxu0 %v1016_v44  ;;  %v10243_v44 = vpack.c.bf16 %v10238_v6, %v10238_v6 }
 0x127   : > { %8087 = vmatprep.mubr.bf16.mxu0 %v1018_v8  ;;  %8120 = vmatpush3.bf16.msra.mxu0 %v9497_v5  ;;  %v11377_v8 = vshll.u32 %v9818_v9, 16 }
 0x128   : > { %8121 = vmatprep.subr.bf16.mxu0 %v9498_v46  ;;  %v1337_v45 = vrot.slane %v10243_v44, 1 }
 0x12b   : > { %8122 = vmatpush3.bf16.msra.mxu0 %v9498_v46  ;;  %v1635_v46 = vrot.slane %v9907_v61, 1 }
 0x12c   : > { %8159 = vmatprep.subr.bf16.mxu0 %v9499_v31 }
 0x12e   : > { %8088 = vmatmul.mubr.bf16.gmra.mrb[16].mxu0 %v1020_v13  ;;  %v1621_v13 = vrot.slane %v11377_v8, 2  ;;  %v1637_v8 = vor.u32 %v1636_v48, %v1635_v46  ;;  %v1655_v46 = vrot.slane %v9967_v40, 1  ;;  %v1656_v48 = vrot.slane %v9958_v33, 2 }
 0x12f   : > { %8091 = vmatprep.mubr.bf16.mxu0 %v1022_v1  ;;  %v1624_v1 = vrot.slane %v9848_v30, 2 }
 0x131   : > { %v1625_v59 = vor.u32 %v1624_v1, %v1623_v51  ;;  %v9501_v51 = vld [vmem:[%s11331_s1 + $0x150] sm:$0xff]   ;;  %v1638_v1 = vsel %vm1619_vm2, %v1633_v52, %v1637_v8 }
 0x136   : > { %8092 = vmatmul.mubr.bf16.gmra.mrb[20].mxu0 %v1024_v27  ;;  %v1620_v27 = vrot.slane %v11376_v63, 1  ;;  %v1639_v63 = vrot.slane %v9926_v7, 1 }
 0x137   : > { %8095 = vmatprep.mubr.bf16.mxu0 %v1026_v54 }
 0x138   : > { %v1622_v54 = vor.u32 %v1621_v13, %v1620_v27  ;;  %v1640_v27 = vrot.slane %v9899_v57, 2 }
 0x13a   : > { %v1626_v15 = vsel %vm1619_vm2, %v1622_v54, %v1625_v59  ;;  %v1641_v13 = vor.u32 %v1640_v27, %v1639_v63  ;;  %v1644_v54 = vrot.slane %v9916_v3, 2  ;;  %v1657_v63 = vor.u32 %v1656_v48, %v1655_v46  ;;  %v9505_v27 = vld [vmem:[%s11331_s1 + $0x170] sm:$0xff]  }
 0x13e   : > { %8096 = vmatmul.mubr.bf16.gmra.mrb[24].mxu0 %v1028_v58  ;;  %v1338_v58 = vsel %vm997_vm1, %v1335_v60, %v1337_v45  ;;  %v1643_v45 = vrot.slane %v9939_v18, 1 }
 0x13f   : > { %8099 = vmatprep.mubr.bf16.mxu0 %v1030_v62  ;;  %v1627_v62 = vrot.slane %v9889_v53, 1 }
 0x146   : > { %8100 = vmatmul.mubr.bf16.gmra.mrb[28].mxu0 %v1032_v55  ;;  %v1629_v55 = vor.u32 %v1628_v41, %v1627_v62  ;;  %v9502_v62 = vld [vmem:[%s11331_s1 + $0x158] sm:$0xff]   ;;  %v1645_v41 = vor.u32 %v1644_v54, %v1643_v45  ;;  %v1663_v45 = vrot.slane %v9994_v2, 1  ;;  %v1664_v54 = vrot.slane %v9980_v49, 2 }
 0x147   : > { %8103 = vmatprep.mubr.bf16.mxu0 %v1336_v35  ;;  %v9500_v35 = vld [vmem:[%s11331_s1 + $0x148] sm:$0xff]  }
 0x148   : > { %v1630_v5 = vsel %vm1619_vm2, %v1625_v59, %v1629_v55  ;;  %v1634_v60 = vsel %vm1619_vm2, %v1629_v55, %v1633_v52  ;;  %v1642_v59 = vsel %vm1619_vm2, %v1637_v8, %v1641_v13  ;;  %v1646_v16 = vsel %vm1619_vm2, %v1641_v13, %v1645_v41 }
 0x149   : > { %v1651_v55 = vrot.slane %v9948_v24, 1  ;;  %v1652_v52 = vrot.slane %v9932_v14, 2  ;;  %v1659_v13 = vrot.slane %v9973_v43, 1 }
 0x14e   : > { %8104 = vmatmul.mubr.bf16.gmra.mrb[32].mxu0 %v1338_v58  ;;  %v1648_v58 = vrot.slane %v9919_v4, 2 }
 0x14f   : > { %8123 = vmatprep.mubr.bf16.mxu0 %v1626_v15 }
 0x156   : > { %8124 = vmatmul.mubr.bf16.vlgmr.msra.gmra.mrb[0].mxu0 %v1630_v5 }
 0x157   : > { %8160 = vmatpush3.bf16.msra.mxu0 %v9499_v31  ;;  %8127 = vmatprep.mubr.bf16.mxu0 %v1634_v60  ;;  %v1647_v31 = vrot.slane %v9945_v22, 1  ;;  %v9504_v60 = vld [vmem:[%s11331_s1 + $0x168] sm:$0xff]  }
 0x158   : > { %8161 = vmatprep.subr.bf16.mxu0 %v9500_v35 }
 0x159   : > { %v1649_v15 = vor.u32 %v1648_v58, %v1647_v31  ;;  %v1665_v58 = vor.u32 %v1664_v54, %v1663_v45  ;;  %v11362_v45 = vshrl.u32 %v10234_v19, 16  ;;  %v11361_v54 = vshll.u32 %v10234_v19, 16 }
 0x15b   : > { %8162 = vmatpush3.bf16.msra.mxu0 %v9500_v35  ;;  %v1650_v5 = vsel %vm1619_vm2, %v1645_v41, %v1649_v15  ;;  %v1653_v35 = vor.u32 %v1652_v52, %v1651_v55  ;;  %v1671_v55 = vrot.slane %v10034_v0, 1  ;;  %v1672_v52 = vrot.slane %v10016_v28, 2 }
 0x15c   : > { %8163 = vmatprep.subr.bf16.mxu0 %v9501_v51 }
 0x15d   : > { %v1654_v8 = vsel %vm1619_vm2, %v1649_v15, %v1653_v35  ;;  %v1667_v15 = vrot.slane %v10013_v25, 1  ;;  %v1673_v46 = vor.u32 %v1672_v52, %v1671_v55  ;;  %v1697_v55 = vshrl.u32 %v10243_v44, 16 }
 0x15e   : > { %8128 = vmatmul.mubr.bf16.gmra.mrb[4].mxu0 %v1638_v1  ;;  %v1658_v1 = vsel %vm1619_vm2, %v1653_v35, %v1657_v63  ;;  %v1676_v35 = vrot.slane %v10040_v12, 2  ;;  %v1700_v52 = vshll.u32 %v10243_v44, 16 }
 0x15f   : > { %8131 = vmatprep.mubr.bf16.mxu0 %v1642_v59  ;;  %8164 = vmatpush3.bf16.msra.mxu0 %v9501_v51  ;;  %v1660_v51 = vrot.slane %v9970_v42, 2  ;;  %v9506_v59 = vld [vmem:[%s11331_s1 + $0x178] sm:$0xff]  }
 0x160   : > { %8165 = vmatprep.subr.bf16.mxu0 %v9502_v62 }
 0x161   : > { %v1661_v31 = vor.u32 %v1660_v51, %v1659_v13 }
 0x163   : > { %8166 = vmatpush3.bf16.msra.mxu0 %v9502_v62  ;;  %v9507_v62 = vld [vmem:[%s11331_s1 + $0x180] sm:$0xff]   ;;  %v1662_v41 = vsel %vm1619_vm2, %v1657_v63, %v1661_v31 }
 0x164   : > { %8167 = vmatprep.subr.bf16.mxu0 %v9503_v34 }
 0x166   : > { %8132 = vmatmul.mubr.bf16.gmra.mrb[8].mxu0 %v1646_v16  ;;  %v1666_v16 = vsel %vm1619_vm2, %v1661_v31, %v1665_v58  ;;  %v1683_v31 = vrot.slane %v10075_v21, 1 }
 0x167   : > { %8135 = vmatprep.mubr.bf16.mxu0 %v1650_v5  ;;  %8168 = vmatpush3.bf16.msra.mxu0 %v9503_v34  ;;  %v1668_v34 = vrot.slane %v10002_v11, 2 }
 0x168   : > { %8169 = vmatprep.subr.bf16.mxu0 %v9504_v60 }
 0x169   : > { %v1669_v5 = vor.u32 %v1668_v34, %v1667_v15  ;;  %v1690_v15 = vrot.slane %v11362_v45, 1  ;;  %v1693_v34 = vrot.slane %v11361_v54, 2  ;;  %v11385_v54 = vld [vmem:[#allocation12_spill] sm:$0xff] }
 0x16a   : > { %v2023_v45 = vrot.slane %v11385_v54, 2 }
 0x16b   : > { %8170 = vmatpush3.bf16.msra.mxu0 %v9504_v60  ;;  %v1670_v48 = vsel %vm1619_vm2, %v1665_v58, %v1669_v5  ;;  %v1675_v60 = vrot.slane %v10043_v17, 1  ;;  %v1674_v63 = vsel %vm1619_vm2, %v1669_v5, %v1673_v46  ;;  %v1684_v58 = vrot.slane %v10064_v10, 2 }
 0x16c   : > { %8171 = vmatprep.subr.bf16.mxu0 %v9505_v27  ;;  %v1694_v5 = vor.u32 %v1693_v34, %v1690_v15  ;;  %v2009_v15 = vrot.slane %v9864_v38, 2  ;;  %v11379_v34 = vld [vmem:[#allocation6_spill] sm:$0xff] }
 0x16d   : > { %v1677_v51 = vor.u32 %v1676_v35, %v1675_v60  ;;  %v1702_v60 = vrot.slane %v1700_v52, 2 }
 0x16e   : > { %8136 = vmatmul.mubr.bf16.gmra.mrb[12].mxu0 %v1654_v8  ;;  %v11378_v8 = vld [vmem:[#allocation16_spill] sm:$0xff] }
 0x16f   : > { %8139 = vmatprep.mubr.bf16.mxu0 %v1658_v1  ;;  %8172 = vmatpush3.bf16.msra.mxu0 %v9505_v27  ;;  %v1679_v27 = vrot.slane %v10061_v29, 1  ;;  %v1680_v13 = vrot.slane %v11378_v8, 2 }
 0x170   : > { %8173 = vmatprep.subr.bf16.mxu0 %v9506_v59 }
 0x171   : > { %v1681_v1 = vor.u32 %v1680_v13, %v1679_v27  ;;  %v2002_v27 = vrot.slane %v9818_v9, 2  ;;  %v2003_v13 = vrot.slane %v9836_v23, 2  ;;  %v9508_v9 = vld [vmem:[%s11331_s1 + $0x188] sm:$0xff]  }
 0x173   : > { %8174 = vmatpush3.bf16.msra.mxu0 %v9506_v59  ;;  %v1678_v59 = vsel %vm1619_vm2, %v1673_v46, %v1677_v51 }
 0x174   : > { %8211 = vmatprep.subr.bf16.mxu0 %v9507_v62 }
 0x176   : > { %8140 = vmatmul.mubr.bf16.gmra.mrb[16].mxu0 %v1662_v41  ;;  %v1682_v41 = vsel %vm1619_vm2, %v1677_v51, %v1681_v1 }
 0x177   : > { %8143 = vmatprep.mubr.bf16.mxu0 %v1666_v16  ;;  %v1685_v16 = vor.u32 %v1684_v58, %v1683_v31  ;;  %v2007_v31 = vrot.slane %v9851_v32, 2 }
 0x179   : > { %v1686_v46 = vsel %vm1619_vm2, %v1681_v1, %v1685_v16  ;;  %v1695_v35 = vsel %vm1619_vm2, %v1685_v16, %v1694_v5  ;;  %v2005_v1 = vrot.slane %v9842_v26, 2  ;;  %v2011_v16 = vrot.slane %v11379_v34, 2 }
 0x17a   : > { %v10355_v52 = vsel %vm2001_vm3, %v2007_v31, %v2009_v15 }
 0x17b   : > { %v10339_v58 = vsel %vm2001_vm3, %v2003_v13, %v2005_v1 }
 0x17e   : > { %8144 = vmatmul.mubr.bf16.gmra.mrb[20].mxu0 %v1670_v48  ;;  %v1699_v48 = vrot.slane %v1697_v55, 1  ;;  %v9509_v55 = vld [vmem:[%s11331_s1 + $0x190] sm:$0xff]  }
 0x17f   : > { %8147 = vmatprep.mubr.bf16.mxu0 %v1674_v63 }
 0x180   : > { %v1703_v63 = vor.u32 %v1702_v60, %v1699_v48  ;;  %v11381_v60 = vld [vmem:[#allocation8_spill] sm:$0xff] }
 0x182   : > { %v1704_v51 = vsel %vm1619_vm2, %v1694_v5, %v1703_v63  ;;  %v10358_v5 = vsel %vm2001_vm3, %v2009_v15, %v2011_v16  ;;  %v9511_v63 = vld [vmem:[%s11331_s1 + $0x1a0] sm:$0xff]   ;;  %v9513_v15 = vld [vmem:[%s11331_s1 + $0x1b0] sm:$0xff]  }
 0x186   : > { %8148 = vmatmul.mubr.bf16.gmra.mrb[24].mxu0 %v1678_v59  ;;  %v2004_v59 = vsel %vm2001_vm3, %v2002_v27, %v2003_v13 }
 0x187   : > { %8151 = vmatprep.mubr.bf16.mxu0 %v1682_v41  ;;  %v10342_v41 = vsel %vm2001_vm3, %v2005_v1, %v2007_v31  ;;  %v11383_v31 = vld [vmem:[#allocation10_spill] sm:$0xff] }
 0x18e   : > { %8152 = vmatmul.mubr.bf16.gmra.mrb[28].mxu0 %v1686_v46  ;;  %v11380_v46 = vld [vmem:[#allocation7_spill] sm:$0xff] }
 0x18f   : > { %8155 = vmatprep.mubr.bf16.mxu0 %v1695_v35  ;;  %v2013_v48 = vrot.slane %v11380_v46, 2  ;;  %v2015_v35 = vrot.slane %v11381_v60, 2  ;;  %v11387_v60 = vld [vmem:[#allocation14_spill] sm:$0xff]  ;;  %v11388_v46 = vld [vmem:[#allocation15_spill] sm:$0xff] }
 0x190   : > { %v2029_v34 = vrot.slane %v11388_v46, 2 }
 0x191   : > { %v2014_v27 = vsel %vm2001_vm3, %v2011_v16, %v2013_v48  ;;  %v10372_v13 = vsel %vm2001_vm3, %v2013_v48, %v2015_v35  ;;  %v11384_v48 = vld [vmem:[#allocation11_spill] sm:$0xff] }
 0x196   : > { %8156 = vmatmul.mubr.bf16.gmra.mrb[32].mxu0 %v1704_v51  ;;  %v9512_v51 = vld [vmem:[%s11331_s1 + $0x1a8] sm:$0xff]  }
 0x197   : > { %8175 = vmatprep.mubr.bf16.mxu0 %v2004_v59  ;;  %v11382_v59 = vld [vmem:[#allocation9_spill] sm:$0xff] }
 0x198   : > { %v2017_v1 = vrot.slane %v11382_v59, 2 }
 0x19a   : > { %v2018_v16 = vsel %vm2001_vm3, %v2015_v35, %v2017_v1  ;;  %v9515_v35 = vld [vmem:[%s11331_s1 + $0x1c0] sm:$0xff]  }
 0x19e   : > { %8176 = vmatmul.mubr.bf16.vlgmr.msra.gmra.mrb[0].mxu0 %v10339_v58 }
 0x19f   : > { %8212 = vmatpush3.bf16.msra.mxu0 %v9507_v62  ;;  %8179 = vmatprep.mubr.bf16.mxu0 %v10342_v41  ;;  %v9510_v62 = vld [vmem:[%s11331_s1 + $0x198] sm:$0xff]  }
 0x1a0   : > { %8213 = vmatprep.subr.bf16.mxu0 %v9508_v9 }
 0x1a3   : > { %8214 = vmatpush3.bf16.msra.mxu0 %v9508_v9  ;;  %v2019_v9 = vrot.slane %v11383_v31, 2  ;;  %v11386_v31 = vld [vmem:[#allocation13_spill] sm:$0xff] }
 0x1a4   : > { %8215 = vmatprep.subr.bf16.mxu0 %v9509_v55  ;;  %v2025_v59 = vrot.slane %v11386_v31, 2 }
 0x1a6   : > { %8180 = vmatmul.mubr.bf16.gmra.mrb[4].mxu0 %v10355_v52 }
 0x1a7   : > { %8183 = vmatprep.mubr.bf16.mxu0 %v10358_v5  ;;  %8216 = vmatpush3.bf16.msra.mxu0 %v9509_v55  ;;  %v2020_v55 = vsel %vm2001_vm3, %v2017_v1, %v2019_v9 }
 0x1a8   : > { %8217 = vmatprep.subr.bf16.mxu0 %v9510_v62 }
 0x1ab   : > { %8218 = vmatpush3.bf16.msra.mxu0 %v9510_v62  ;;  %v9514_v62 = vld [vmem:[%s11331_s1 + $0x1b8] sm:$0xff]  }
 0x1ac   : > { %8219 = vmatprep.subr.bf16.mxu0 %v9511_v63 }
 0x1ae   : > { %8184 = vmatmul.mubr.bf16.gmra.mrb[8].mxu0 %v2014_v27 }
 0x1af   : > { %8187 = vmatprep.mubr.bf16.mxu0 %v10372_v13  ;;  %8220 = vmatpush3.bf16.msra.mxu0 %v9511_v63  ;;  %v2021_v63 = vrot.slane %v11384_v48, 2  ;;  %v2027_v48 = vrot.slane %v11387_v60, 2  ;;  %v2033_v60 = vrot.slane %v10049_v39, 2 }
 0x1b0   : > { %8221 = vmatprep.subr.bf16.mxu0 %v9512_v51 }
 0x1b1   : > { %v2024_v1 = vsel %vm2001_vm3, %v2021_v63, %v2023_v45  ;;  %v2028_v54 = vsel %vm2001_vm3, %v2025_v59, %v2027_v48 }
 0x1b3   : > { %8222 = vmatpush3.bf16.msra.mxu0 %v9512_v51  ;;  %v2022_v51 = vsel %vm2001_vm3, %v2019_v9, %v2021_v63  ;;  %v2031_v9 = vrot.slane %v10046_v20, 2 }
 0x1b4   : > { %8223 = vmatprep.subr.bf16.mxu0 %v9513_v15 }
 0x1b5   : > { %v10403_v63 = vsel %vm2001_vm3, %v2029_v34, %v2031_v9 }
 0x1b6   : > { %8188 = vmatmul.mubr.bf16.gmra.mrb[12].mxu0 %v2018_v16 }
 0x1b7   : > { %8191 = vmatprep.mubr.bf16.mxu0 %v2020_v55  ;;  %8224 = vmatpush3.bf16.msra.mxu0 %v9513_v15  ;;  %v2026_v15 = vsel %vm2001_vm3, %v2023_v45, %v2025_v59  ;;  %v10408_v45 = vrot.slane %v10234_v19, 2  ;;  %v10411_v59 = vsel %vm2001_vm3, %v2031_v9, %v2033_v60  ;;  %v9516_v9 = vld [vmem:[%s11331_s1 + $0x1c8] sm:$0xff]  }
 0x1b8   : > { %8225 = vmatprep.subr.bf16.mxu0 %v9514_v62 }
 0x1b9   : > { %v10415_v46 = vsel %vm2001_vm3, %v2033_v60, %v10408_v45  ;;  %v9522_v60 = vld [vmem:[%s11331_s1 + $0x1f8] sm:$0xff]  }
 0x1bb   : > { %8226 = vmatpush3.bf16.msra.mxu0 %v9514_v62  ;;  %v2030_v62 = vsel %vm2001_vm3, %v2027_v48, %v2029_v34  ;;  %v2037_v34 = vrot.slane %v10243_v44, 2  ;;  %v9517_v44 = vld [vmem:[%s11331_s1 + $0x1d0] sm:$0xff]  }
 0x1bc   : > { %8263 = vmatprep.subr.bf16.mxu0 %v9515_v35 }
 0x1bd   : > { %v2038_v48 = vsel %vm2001_vm3, %v10408_v45, %v2037_v34  ;;  %v3406_v34 = vld [vmem:[%s11335_s5 + $0x28] sm:$0xff] }
 0x1be   : > { %8192 = vmatmul.mubr.bf16.gmra.mrb[16].mxu0 %v2022_v51 }
 0x1bf   : > { %8195 = vmatprep.mubr.bf16.mxu0 %v2024_v1 }
 0x1c6   : > { %8196 = vmatmul.mubr.bf16.gmra.mrb[20].mxu0 %v2026_v15 }
 0x1c7   : > { %8199 = vmatprep.mubr.bf16.mxu0 %v2028_v54 }
 0x1ce   : > { %8200 = vmatmul.mubr.bf16.gmra.mrb[24].mxu0 %v2030_v62 }
 0x1cf   : > { %8203 = vmatprep.mubr.bf16.mxu0 %v10403_v63 }
 0x1d6   : > { %8204 = vmatmul.mubr.bf16.gmra.mrb[28].mxu0 %v10411_v59 }
 0x1d7   : > { %8207 = vmatprep.mubr.bf16.mxu0 %v10415_v46 }
 0x1de   : > { %8208 = vmatmul.mubr.bf16.gmra.mrb[32].mxu0 %v2038_v48 }
 0x1df   : > { %8227 = vmatprep.mubr.bf16.mxu0 %v10339_v58  ;;  %v9518_v58 = vld [vmem:[%s11331_s1 + $0x1d8] sm:$0xff]  }
 0x1e6   : > { %8228 = vmatmul.mubr.bf16.vlgmr.msra.gmra.mrb[0].mxu0 %v10342_v41  ;;  %v9519_v41 = vld [vmem:[%s11331_s1 + $0x1e0] sm:$0xff]  }
 0x1e7   : > { %8264 = vmatpush3.bf16.msra.mxu0 %v9515_v35  ;;  %8231 = vmatprep.mubr.bf16.mxu0 %v10355_v52  ;;  %v9520_v52 = vld [vmem:[%s11331_s1 + $0x1e8] sm:$0xff]  }
 0x1e8   : > { %8265 = vmatprep.subr.bf16.mxu0 %v9516_v9  ;;  %v3402_v35 = vld [vmem:[%s11335_s5 + $0x8] sm:$0xff] }
 0x1eb   : > { %8266 = vmatpush3.bf16.msra.mxu0 %v9516_v9  ;;  %v3409_v9 = vld [vmem:[%s11335_s5 + $0x40] sm:$0xff] }
 0x1ec   : > { %8267 = vmatprep.subr.bf16.mxu0 %v9517_v44 }
 0x1ee   : > { %8232 = vmatmul.mubr.bf16.gmra.mrb[4].mxu0 %v10358_v5  ;;  %v9521_v5 = vld [vmem:[%s11331_s1 + $0x1f0] sm:$0xff]  }
 0x1ef   : > { %8235 = vmatprep.mubr.bf16.mxu0 %v2014_v27  ;;  %8268 = vmatpush3.bf16.msra.mxu0 %v9517_v44  ;;  %v10451_v27 = vld [vmem:[%s11331_s1 + $0x200] sm:$0xff]  }
 0x1f0   : > { %8269 = vmatprep.subr.bf16.mxu0 %v9518_v58 }
 0x1f3   : > { %8270 = vmatpush3.bf16.msra.mxu0 %v9518_v58  ;;  %v291_v58 = vld [vmem:[%s9807_s19 + $0x140] sm:$0xff] }
 0x1f4   : > { %8271 = vmatprep.subr.bf16.mxu0 %v9519_v41 }
 0x1f6   : > { %8236 = vmatmul.mubr.bf16.gmra.mrb[8].mxu0 %v10372_v13  ;;  %v3401_v13 = vld [vmem:[%s11335_s5] sm:$0xff] }
 0x1f7   : > { %8239 = vmatprep.mubr.bf16.mxu0 %v2018_v16  ;;  %8272 = vmatpush3.bf16.msra.mxu0 %v9519_v41  ;;  %v9704_v16 = vmov 0  }
 0x1f8   : > { %8273 = vmatprep.subr.bf16.mxu0 %v9520_v52  ;;  %9457 = vset.pattern.permute.xlu0 %v9704_v16 }
 0x1f9   : > { %3439 = vperm.xlu0 %9457, %v3401_v13   ;;  %9458 = vset.pattern.permute.xlu1 %v9704_v16  ;;  %v2628_v13 = vrot.slane %v9862_v37, 3  ;;  %v3412_v16 = vld [vmem:[%s11335_s5 + $0x58] sm:$0xff]  ;;  %v3414_v37 = vld [vmem:[%s11335_s5 + $0x68] sm:$0xff] }
 0x1fb   : > { %8274 = vmatpush3.bf16.msra.mxu0 %v9520_v52  ;;  %v10497_v52 = vpack.c.bf16 %v291_v58, %v291_v58  ;;  %v2640_v58 = vrot.slane %v9899_v57, 3  ;;  %v3421_v57 = vld [vmem:[%s11335_s5 + $0xa0] sm:$0xff] }
 0x1fc   : > { %8275 = vmatprep.subr.bf16.mxu0 %v9521_v5 }
 0x1fd   : > { %3444 = vperm.xlu0 %9457, %v3402_v35   ;;  %v2631_v35 = vrot.slane %v9896_v56, 2 }
 0x1fe   : > { %8240 = vmatmul.mubr.bf16.gmra.mrb[12].mxu0 %v2020_v55  ;;  %v3403_v55 = vld [vmem:[%s11335_s5 + $0x10] sm:$0xff] }
 0x1ff   : > { %8243 = vmatprep.mubr.bf16.mxu0 %v2022_v51  ;;  %8276 = vmatpush3.bf16.msra.mxu0 %v9521_v5  ;;  %v3404_v51 = vld [vmem:[%s11335_s5 + $0x18] sm:$0xff]  ;;  %v2625_v5 = vrot.slane %v9848_v30, 3 }
 0x200   : > { %8277 = vmatprep.subr.bf16.mxu0 %v9522_v60  ;;  %3449 = vperm.xlu1 %9458, %v3403_v55  }
 0x203   : > { %8278 = vmatpush3.bf16.msra.mxu0 %v9522_v60  ;;  %v2627_v60 = vrot.slane %v9889_v53, 2  ;;  %v3415_v53 = vld [vmem:[%s11335_s5 + $0x70] sm:$0xff] }
 0x204   : > { %8315 = vmatprep.subr.bf16.mxu0 %v10451_v27  ;;  %3454 = vperm.xlu1 %9458, %v3404_v51   ;;  %v2632_v51 = vrot.slane %v9879_v47, 3 }
 0x205   : > { %v2629_v55 = vor.u32 %v2628_v13, %v2627_v60  ;;  %v3423_v13 = vld [vmem:[%s11335_s5 + $0xb0] sm:$0xff] }
 0x206   : > { %8244 = vmatmul.mubr.bf16.gmra.mrb[16].mxu0 %v2024_v1  ;;  %v3405_v1 = vld [vmem:[%s11335_s5 + $0x20] sm:$0xff]  ;;  %v2633_v56 = vor.u32 %v2632_v51, %v2631_v35  ;;  %v3427_v35 = vld [vmem:[%s11335_s5 + $0xd0] sm:$0xff] }
 0x207   : > { %8247 = vmatprep.mubr.bf16.mxu0 %v2026_v15  ;;  %v290_v15 = vld [vmem:[%s9807_s19 + $0x138] sm:$0xff]  ;;  %3459 = vperm.xlu0 %9457, %v3405_v1   ;;  %v9531_v51 = vld [vmem:[%s11332_s2 + $0x40] sm:$0xff]  }
 0x208   : > { %v10477_v48 = vpack.c.bf16 %v290_v15, %v10238_v6  ;;  %3464 = vperm.xlu1 %9458, %v3406_v34   ;;  %v3410_v6 = vld [vmem:[%s11335_s5 + $0x48] sm:$0xff]  ;;  %v2635_v15 = vrot.slane %v9907_v61, 2  ;;  %v2636_v34 = vrot.slane %v9884_v50, 3  ;;  %v3419_v50 = vld [vmem:[%s11335_s5 + $0x90] sm:$0xff]  ;;  %8367 = vmatprep.subr.bf16.mxu1 %v9531_v51 }
 0x209   : > { %v3418_v61 = vld [vmem:[%s11335_s5 + $0x88] sm:$0xff]  ;;  %8368 = vmatpush3.bf16.msra.mxu1 %v9531_v51 }
 0x20a   : > { %v2339_v44 = vrot.slane %v10477_v48, 2  ;;  %v2637_v47 = vor.u32 %v2636_v34, %v2635_v15  ;;  %v2655_v15 = vrot.slane %v9967_v40, 2  ;;  %v2656_v34 = vrot.slane %v9958_v33, 3  ;;  %v3428_v40 = vld [vmem:[%s11335_s5 + $0xd8] sm:$0xff]  ;;  %v9532_v33 = vld [vmem:[%s11332_s2 + $0x48] sm:$0xff]  }
 0x20b   : > { %8369 = vmatprep.subr.bf16.mxu1 %v9532_v33 }
 0x20c   : > { %v2340_v41 = vsel %vm2001_vm3, %v10408_v45, %v2339_v44  ;;  %v3413_v45 = vld [vmem:[%s11335_s5 + $0x60] sm:$0xff] }
 0x20d   : > { %8370 = vmatpush3.bf16.msra.mxu1 %v9532_v33 }
 0x20e   : > { %8248 = vmatmul.mubr.bf16.gmra.mrb[20].mxu0 %v2028_v54  ;;  %v3407_v54 = vld [vmem:[%s11335_s5 + $0x30] sm:$0xff] }
 0x20f   : > { %8251 = vmatprep.mubr.bf16.mxu0 %v2030_v62  ;;  %3469 = vperm.xlu0 %9457, %v3407_v54   ;;  %v3408_v62 = vld [vmem:[%s11335_s5 + $0x38] sm:$0xff] }
 0x210   : > { %3474 = vperm.xlu1 %9458, %v3408_v62   ;;  %v3416_v54 = vld [vmem:[%s11335_s5 + $0x78] sm:$0xff]  ;;  %v3417_v62 = vld [vmem:[%s11335_s5 + $0x80] sm:$0xff] }
 0x213   : > { %3479 = vperm.xlu0 %9457, %v3409_v9   ;;  %v2634_v9 = vsel %vm2623_vm4, %v2629_v55, %v2633_v56 }
 0x214   : > { %3484 = vperm.xlu1 %9458, %v3410_v6   ;;  %v2638_v6 = vsel %vm2623_vm4, %v2633_v56, %v2637_v47  ;;  %v2660_v56 = vrot.slane %v9970_v42, 3  ;;  %v3429_v42 = vld [vmem:[%s11335_s5 + $0xe0] sm:$0xff] }
 0x216   : > { %8252 = vmatmul.mubr.bf16.gmra.mrb[24].mxu0 %v10403_v63  ;;  %v3411_v63 = vld [vmem:[%s11335_s5 + $0x50] sm:$0xff] }
 0x217   : > { %8255 = vmatprep.mubr.bf16.mxu0 %v10411_v59  ;;  %v2624_v59 = vrot.slane %v9859_v36, 2  ;;  %3489 = vperm.xlu0 %9457, %v3411_v63   ;;  %v2341_v36 = vrot.slane %v10497_v52, 2  ;;  %v9524_v63 = vld [vmem:[%s11331_s1 + $0x208] sm:$0xff]  }
 0x218   : > { %3494 = vperm.xlu1 %9458, %v3412_v16   ;;  %v2647_v16 = vrot.slane %v9945_v22, 2  ;;  %v3424_v22 = vld [vmem:[%s11335_s5 + $0xb8] sm:$0xff] }
 0x219   : > { %v2626_v30 = vor.u32 %v2625_v5, %v2624_v59  ;;  %v2644_v59 = vrot.slane %v9916_v3, 3  ;;  %v3420_v5 = vld [vmem:[%s11335_s5 + $0x98] sm:$0xff]  ;;  %v9525_v3 = vld [vmem:[%s11331_s1 + $0x210] sm:$0xff]  }
 0x21b   : > { %3499 = vperm.xlu0 %9457, %v3413_v45   ;;  %v2630_v1 = vsel %vm2623_vm4, %v2626_v30, %v2629_v55  ;;  %v2648_v45 = vrot.slane %v9919_v4, 3  ;;  %v2651_v30 = vrot.slane %v9948_v24, 2  ;;  %v2652_v55 = vrot.slane %v9932_v14, 3  ;;  %v3425_v4 = vld [vmem:[%s11335_s5 + $0xc0] sm:$0xff] }
 0x21c   : > { %3504 = vperm.xlu1 %9458, %v3414_v37   ;;  %v9526_v37 = vld [vmem:[%s11331_s1 + $0x218] sm:$0xff]   ;;  %v9527_v14 = vld [vmem:[%s11331_s1 + $0x220] sm:$0xff]  }
 0x21d   : > { %v2653_v24 = vor.u32 %v2652_v55, %v2651_v30  ;;  %v2676_v30 = vrot.slane %v10040_v12, 3  ;;  %v3436_v55 = vld [vmem:[%s11335_s5 + $0x118] sm:$0xff]  ;;  %v2683_v12 = vrot.slane %v10075_v21, 2 }
 0x21e   : > { %8256 = vmatmul.mubr.bf16.gmra.mrb[28].mxu0 %v10415_v46  ;;  %v2342_v46 = vsel %vm2001_vm3, %v2339_v44, %v2341_v36  ;;  %v2639_v44 = vrot.slane %v9926_v7, 2 }
 0x21f   : > { %8259 = vmatprep.mubr.bf16.mxu0 %v2340_v41  ;;  %3509 = vperm.xlu0 %9457, %v3415_v53   ;;  %v2643_v41 = vrot.slane %v9939_v18, 2  ;;  %v3422_v18 = vld [vmem:[%s11335_s5 + $0xa8] sm:$0xff]  ;;  %v2649_v53 = vor.u32 %v2648_v45, %v2647_v16  ;;  %v2672_v16 = vrot.slane %v10016_v28, 3 }
 0x220   : > { %3514 = vperm.xlu1 %9458, %v3416_v54   ;;  %v2641_v7 = vor.u32 %v2640_v58, %v2639_v44  ;;  %v3430_v44 = vld [vmem:[%s11335_s5 + $0xe8] sm:$0xff]  ;;  %v3431_v58 = vld [vmem:[%s11335_s5 + $0xf0] sm:$0xff] }
 0x221   : > { %v2645_v60 = vor.u32 %v2644_v59, %v2643_v41  ;;  %v2654_v54 = vsel %vm2623_vm4, %v2649_v53, %v2653_v24  ;;  %v2664_v41 = vrot.slane %v9980_v49, 3  ;;  %v9534_v49 = vld [vmem:[%s11332_s2 + $0x58] sm:$0xff]  }
 0x223   : > { %3519 = vperm.xlu0 %9457, %v3417_v62   ;;  %v2646_v36 = vsel %vm2623_vm4, %v2641_v7, %v2645_v60  ;;  %v2659_v62 = vrot.slane %v9973_v43, 2  ;;  %v2657_v43 = vor.u32 %v2656_v34, %v2655_v15 }
 0x224   : > { %3524 = vperm.xlu1 %9458, %v3418_v61  }
 0x225   : > { %v2661_v61 = vor.u32 %v2660_v56, %v2659_v62  ;;  %v2701_v62 = vshrl.u32 %v10497_v52, 16  ;;  %v2704_v56 = vshll.u32 %v10497_v52, 16 }
 0x226   : > { %8260 = vmatmul.mubr.bf16.gmra.mrb[32].mxu0 %v2342_v46  ;;  %v3426_v46 = vld [vmem:[%s11335_s5 + $0xc8] sm:$0xff] }
 0x227   : > { %8279 = vmatprep.mubr.bf16.mxu0 %v2630_v1  ;;  %3529 = vperm.xlu0 %9457, %v3419_v50   ;;  %v2650_v1 = vsel %vm2623_vm4, %v2645_v60, %v2649_v53  ;;  %v9529_v50 = vld [vmem:[%s11331_s1 + $0x230] sm:$0xff]   ;;  %v2662_v59 = vsel %vm2623_vm4, %v2657_v43, %v2661_v61  ;;  %v2684_v53 = vrot.slane %v10064_v10, 3  ;;  %v2703_v33 = vrot.slane %v2701_v62, 2 }
 0x228   : > { %3534 = vperm.xlu1 %9458, %v3420_v5   ;;  %v2667_v5 = vrot.slane %v10013_v25, 2 }
 0x22b   : > { %3539 = vperm.xlu0 %9457, %v3421_v57   ;;  %v2668_v57 = vrot.slane %v10002_v11, 3  ;;  %v3433_v11 = vld [vmem:[%s11335_s5 + $0x100] sm:$0xff] }
 0x22c   : > { %3544 = vperm.xlu1 %9458, %v3422_v18   ;;  %v3435_v18 = vld [vmem:[%s11335_s5 + $0x110] sm:$0xff] }
 0x22d   : > { %v2669_v60 = vor.u32 %v2668_v57, %v2667_v5 }
 0x22e   : > { %8280 = vmatmul.mubr.bf16.vlgmr.msra.gmra.mrb[0].mxu0 %v2634_v9  ;;  %v9533_v9 = vld [vmem:[%s11332_s2 + $0x50] sm:$0xff]  }
 0x22f   : > { %8316 = vmatpush3.bf16.msra.mxu0 %v10451_v27  ;;  %8283 = vmatprep.mubr.bf16.mxu0 %v2638_v6  ;;  %v2642_v27 = vsel %vm2623_vm4, %v2637_v47, %v2641_v7  ;;  %v9528_v47 = vld [vmem:[%s11331_s1 + $0x228] sm:$0xff]   ;;  %v2658_v6 = vsel %vm2623_vm4, %v2653_v24, %v2657_v43  ;;  %v9530_v7 = vld [vmem:[%s11331_s1 + $0x238] sm:$0xff]  }
 0x230   : > { %8317 = vmatprep.subr.bf16.mxu0 %v9524_v63  ;;  %3549 = vperm.xlu0 %9457, %v3423_v13  }
 0x231   : > { %3554 = vperm.xlu1 %9458, %v3424_v22   ;;  %8371 = vmatprep.subr.bf16.mxu1 %v9533_v9 }
 0x232   : > { %8372 = vmatpush3.bf16.msra.mxu1 %v9533_v9  ;;  %v3007_v9 = vrot.slane %v9842_v26, 3  ;;  %v11392_v26 = vld [vmem:[#allocation7_spill] sm:$0xff] }
 0x233   : > { %8318 = vmatpush3.bf16.msra.mxu0 %v9524_v63  ;;  %v2663_v63 = vrot.slane %v9994_v2, 2  ;;  %v3432_v2 = vld [vmem:[%s11335_s5 + $0xf8] sm:$0xff]  ;;  %8373 = vmatprep.subr.bf16.mxu1 %v9534_v49  ;;  %v3015_v57 = vrot.slane %v11392_v26, 3 }
 0x234   : > { %8319 = vmatprep.subr.bf16.mxu0 %v9525_v3  ;;  %3559 = vperm.xlu0 %9457, %v3425_v4   ;;  %v2680_v4 = vrot.slane %v11378_v8, 3  ;;  %v11390_v8 = vshll.u32 %v10234_v19, 16 }
 0x235   : > { %3564 = vperm.xlu1 %9458, %v3426_v46   ;;  %v2665_v25 = vor.u32 %v2664_v41, %v2663_v63  ;;  %v2692_v46 = vshrl.u32 %v10477_v48, 16  ;;  %v3011_v63 = vrot.slane %v9864_v38, 3 }
 0x236   : > { %8284 = vmatmul.mubr.bf16.gmra.mrb[4].mxu0 %v2642_v27  ;;  %8374 = vmatpush3.bf16.msra.mxu1 %v9534_v49  ;;  %v2671_v27 = vrot.slane %v10034_v0, 2  ;;  %v2679_v0 = vrot.slane %v10061_v29, 2  ;;  %v11389_v29 = vshrl.u32 %v10234_v19, 16  ;;  %v2688_v15 = vrot.slane %v11390_v8, 3  ;;  %v11393_v49 = vld [vmem:[#allocation8_spill] sm:$0xff]  ;;  %v9535_v8 = vld [vmem:[%s11332_s2 + $0x60] sm:$0xff]  }
 0x237   : > { %8287 = vmatprep.mubr.bf16.mxu0 %v2646_v36  ;;  %8320 = vmatpush3.bf16.msra.mxu0 %v9525_v3  ;;  %v3434_v3 = vld [vmem:[%s11335_s5 + $0x108] sm:$0xff]  ;;  %v2666_v13 = vsel %vm2623_vm4, %v2661_v61, %v2665_v25  ;;  %v2670_v45 = vsel %vm2623_vm4, %v2665_v25, %v2669_v60  ;;  %v2675_v36 = vrot.slane %v10043_v17, 2  ;;  %v2694_v34 = vrot.slane %v2692_v46, 2 }
 0x238   : > { %8321 = vmatprep.subr.bf16.mxu0 %v9526_v37  ;;  %3569 = vperm.xlu0 %9457, %v3427_v35   ;;  %v2681_v24 = vor.u32 %v2680_v4, %v2679_v0  ;;  %v2695_v35 = vshll.u32 %v10477_v48, 16  ;;  %v11399_v4 = vld [vmem:[#allocation15_spill] sm:$0xff] }
 0x239   : > { %3574 = vperm.xlu1 %9458, %v3428_v40   ;;  %v2677_v22 = vor.u32 %v2676_v30, %v2675_v36  ;;  %v11397_v36 = vld [vmem:[#allocation12_spill] sm:$0xff]  ;;  %8375 = vmatprep.subr.bf16.mxu1 %v9535_v8 }
 0x23a   : > { %v2697_v10 = vrot.slane %v2695_v35, 3  ;;  %v3025_v30 = vrot.slane %v11397_v36, 3  ;;  %v3037_v35 = vrot.slane %v10234_v19, 3  ;;  %8376 = vmatpush3.bf16.msra.mxu1 %v9535_v8  ;;  %v9705_v19 = vmov 0.0  }
 0x23b   : > { %8322 = vmatpush3.bf16.msra.mxu0 %v9526_v37  ;;  %v2673_v37 = vor.u32 %v2672_v16, %v2671_v27  ;;  %v2682_v51 = vsel %vm2623_vm4, %v2677_v22, %v2681_v24  ;;  %3657 = vst [vmem:[#allocation2 + $0x20] sm:$0xff] %v9705_v19  ;;  %3658 = vst [vmem:[#allocation2 + $0x28] sm:$0xff] %v9705_v19 }
 0x23c   : > { %8323 = vmatprep.subr.bf16.mxu0 %v9527_v14  ;;  %3579 = vperm.xlu0 %9457, %v3429_v42   ;;  %v2706_v42 = vrot.slane %v2704_v56, 3  ;;  %3653 = vst [vmem:[#allocation2] sm:$0xff] %v9705_v19  ;;  %3654 = vst [vmem:[#allocation2 + $0x8] sm:$0xff] %v9705_v19 }
 0x23d   : > { %3584 = vperm.xlu1 %9458, %v3430_v44   ;;  %v2674_v28 = vsel %vm2623_vm4, %v2669_v60, %v2673_v37  ;;  %v2678_v17 = vsel %vm2623_vm4, %v2673_v37, %v2677_v22  ;;  %3655 = vst [vmem:[#allocation2 + $0x10] sm:$0xff] %v9705_v19  ;;  %3656 = vst [vmem:[#allocation2 + $0x18] sm:$0xff] %v9705_v19 }
 0x23e   : > { %8288 = vmatmul.mubr.bf16.gmra.mrb[8].mxu0 %v2650_v1  ;;  %v2687_v1 = vrot.slane %v11389_v29, 2  ;;  %v2707_v61 = vor.u32 %v2706_v42, %v2703_v33  ;;  %3659 = vst [vmem:[#allocation2 + $0x30] sm:$0xff] %v9705_v19  ;;  %3660 = vst [vmem:[#allocation2 + $0x38] sm:$0xff] %v9705_v19 }
 0x23f   : > { %8291 = vmatprep.mubr.bf16.mxu0 %v2654_v54  ;;  %8324 = vmatpush3.bf16.msra.mxu0 %v9527_v14  ;;  %v2685_v14 = vor.u32 %v2684_v53, %v2683_v12  ;;  %3661 = vst [vmem:[#allocation2 + $0x40] sm:$0xff] %v9705_v19  ;;  %3662 = vst [vmem:[#allocation2 + $0x48] sm:$0xff] %v9705_v19 }
 0x240   : > { %8325 = vmatprep.subr.bf16.mxu0 %v9528_v47  ;;  %3589 = vperm.xlu0 %9457, %v3431_v58   ;;  %v2689_v54 = vor.u32 %v2688_v15, %v2687_v1  ;;  %3663 = vst [vmem:[#allocation2 + $0x50] sm:$0xff] %v9705_v19  ;;  %3664 = vst [vmem:[#allocation2 + $0x58] sm:$0xff] %v9705_v19  ;;  %v9538_v15 = vld [vmem:[%s11332_s2 + $0x78] sm:$0xff]  }
 0x241   : > { %3594 = vperm.xlu1 %9458, %v3432_v2   ;;  %v2686_v21 = vsel %vm2623_vm4, %v2681_v24, %v2685_v14  ;;  %v3033_v24 = vrot.slane %v10046_v20, 3  ;;  %v3041_v20 = vrot.slane %v10497_v52, 3  ;;  %3665 = vst [vmem:[#allocation2 + $0x60] sm:$0xff] %v9705_v19  ;;  %3666 = vst [vmem:[#allocation2 + $0x68] sm:$0xff] %v9705_v19  ;;  %v9537_v52 = vld [vmem:[%s11332_s2 + $0x70] sm:$0xff]  }
 0x242   : > { %v2690_v40 = vsel %vm2623_vm4, %v2685_v14, %v2689_v54  ;;  %3667 = vst [vmem:[#allocation2 + $0x70] sm:$0xff] %v9705_v19  ;;  %3668 = vst [vmem:[#allocation2 + $0x78] sm:$0xff] %v9705_v19 }
 0x243   : > { %8326 = vmatpush3.bf16.msra.mxu0 %v9528_v47  ;;  %v2698_v47 = vor.u32 %v2697_v10, %v2694_v34  ;;  %3669 = vst [vmem:[#allocation2 + $0x80] sm:$0xff] %v9705_v19  ;;  %3670 = vst [vmem:[#allocation2 + $0x88] sm:$0xff] %v9705_v19 }
 0x244   : > { %8327 = vmatprep.subr.bf16.mxu0 %v9529_v50  ;;  %3599 = vperm.xlu0 %9457, %v3433_v11   ;;  %v11394_v11 = vld [vmem:[#allocation9_spill] sm:$0xff]  ;;  %3671 = vst [vmem:[#allocation2 + $0x90] sm:$0xff] %v9705_v19  ;;  %3672 = vst [vmem:[#allocation2 + $0x98] sm:$0xff] %v9705_v19 }
 0x245   : > { %3604 = vperm.xlu1 %9458, %v3434_v3   ;;  %v2699_v43 = vsel %vm2623_vm4, %v2689_v54, %v2698_v47  ;;  %v2708_v44 = vsel %vm2623_vm4, %v2698_v47, %v2707_v61  ;;  %v3019_v38 = vrot.slane %v11394_v11, 3  ;;  %v11395_v3 = vld [vmem:[#allocation10_spill] sm:$0xff]  ;;  %3673 = vst [vmem:[#allocation2 + $0xa0] sm:$0xff] %v9705_v19  ;;  %3674 = vst [vmem:[#allocation2 + $0xa8] sm:$0xff] %v9705_v19  ;;  %v3803_v34 = vld [vmem:[#allocation2 + $0x9] sm:$0xff] }
 0x246   : > { %8292 = vmatmul.mubr.bf16.gmra.mrb[12].mxu0 %v2658_v6  ;;  %v3009_v6 = vrot.slane %v9851_v32, 3  ;;  %v3017_v32 = vrot.slane %v11393_v49, 3  ;;  %3675 = vst [vmem:[#allocation2 + $0xb0] sm:$0xff] %v9705_v19  ;;  %3676 = vst [vmem:[#allocation2 + $0xb8] sm:$0xff] %v9705_v19  ;;  %v10721_v54 = vld [vmem:[%s11332_s2] sm:$0xff]  }
 0x247   : > { %8295 = vmatprep.mubr.bf16.mxu0 %v2662_v59  ;;  %8328 = vmatpush3.bf16.msra.mxu0 %v9529_v50  ;;  %v3006_v50 = vrot.slane %v9836_v23, 3  ;;  %v11391_v23 = vld [vmem:[#allocation6_spill] sm:$0xff]  ;;  %3677 = vst [vmem:[#allocation2 + $0xc0] sm:$0xff] %v9705_v19  ;;  %3678 = vst [vmem:[#allocation2 + $0xc8] sm:$0xff] %v9705_v19 }
 0x248   : > { %8329 = vmatprep.subr.bf16.mxu0 %v9530_v7  ;;  %3609 = vperm.xlu0 %9457, %v3435_v18   ;;  %v3010_v41 = vsel %vm3005_vm5, %v3007_v9, %v3009_v6  ;;  %v3012_v59 = vsel %vm3005_vm5, %v3009_v6, %v3011_v63  ;;  %v3013_v5 = vrot.slane %v11391_v23, 3  ;;  %v3018_v25 = vsel %vm3005_vm5, %v3015_v57, %v3017_v32  ;;  %v10735_v6 = vld [vmem:[%s11333_s3] ss:$0 sm:$0xff] }
 0x249   : > { %3614 = vperm.xlu1 %9458, %v3436_v55   ;;  %v3008_v58 = vsel %vm3005_vm5, %v3006_v50, %v3007_v9  ;;  %v3020_v60 = vsel %vm3005_vm5, %v3017_v32, %v3019_v38  ;;  %v3021_v18 = vrot.slane %v11395_v3, 3  ;;  %v3027_v55 = vrot.slane %v11386_v31, 3  ;;  %3679 = vst [vmem:[#allocation2 + $0xd0] sm:$0xff] %v9705_v19  ;;  %3680 = vst [vmem:[#allocation2 + $0xd8] sm:$0xff] %v9705_v19 }
 0x24a   : > { %v3016_v2 = vsel %vm3005_vm5, %v3013_v5, %v3015_v57  ;;  %v3035_v31 = vrot.slane %v10049_v39, 3  ;;  %3681 = vst [vmem:[#allocation2 + $0xe0] sm:$0xff] %v9705_v19  ;;  %3682 = vst [vmem:[#allocation2 + $0xe8] sm:$0xff] %v9705_v19 }
 0x24b   : > { %8330 = vmatpush3.bf16.msra.mxu0 %v9530_v7  ;;  %v3014_v7 = vsel %vm3005_vm5, %v3011_v63, %v3013_v5  ;;  %v3022_v16 = vsel %vm3005_vm5, %v3019_v38, %v3021_v18  ;;  %v3028_v22 = vsel %vm3005_vm5, %v3025_v30, %v3027_v55  ;;  %3683 = vst [vmem:[#allocation2 + $0xf0] sm:$0xff] %v9705_v19  ;;  %3684 = vst [vmem:[#allocation2 + $0xf8] sm:$0xff] %v9705_v19 }
 0x24c   : > { %v3036_v46 = vsel %vm3005_vm5, %v3033_v24, %v3035_v31  ;;  %v3038_v29 = vsel %vm3005_vm5, %v3035_v31, %v3037_v35  ;;  %3685 = vst [vmem:[#allocation2 + $0x100] sm:$0xff] %v9705_v19  ;;  %3686 = vst [vmem:[#allocation2 + $0x108] sm:$0xff] %v9705_v19 }
 0x24d   : > { %3687 = vst [vmem:[#allocation2 + $0x110] sm:$0xff] %v9705_v19  ;;  %3688 = vst [vmem:[#allocation2 + $0x118] sm:$0xff] %v9705_v19 }
 0x24e   : > { %8296 = vmatmul.mubr.bf16.gmra.mrb[16].mxu0 %v2666_v13  ;;  %v11396_v13 = vld [vmem:[#allocation11_spill] sm:$0xff]  ;;  %3689 = vst [vmem:[#allocation2 + $0x120] sm:$0xff] %v9705_v19  ;;  %3690 = vst [vmem:[#allocation2 + $0x128] sm:$0xff] %v9705_v19 }
 0x24f   : > { %8299 = vmatprep.mubr.bf16.mxu0 %v2670_v45  ;;  %v3023_v27 = vrot.slane %v11396_v13, 3  ;;  %3691 = vst [vmem:[#allocation2 + $0x130] sm:$0xff] %v9705_v19  ;;  %3692 = vst [vmem:[#allocation2 + $0x138] sm:$0xff] %v9705_v19 }
 0x250   : > { %3693 = vst [vmem:[#allocation2 + $0x140] sm:$0xff] %v9705_v19 }
 0x251   : > { %v3024_v45 = vsel %vm3005_vm5, %v3021_v18, %v3023_v27  ;;  %v3026_v37 = vsel %vm3005_vm5, %v3023_v27, %v3025_v30 }
 0x256   : > { %8300 = vmatmul.mubr.bf16.gmra.mrb[20].mxu0 %v2674_v28  ;;  %v11398_v28 = vld [vmem:[#allocation14_spill] sm:$0xff] }
 0x257   : > { %8303 = vmatprep.mubr.bf16.mxu0 %v2678_v17  ;;  %v3029_v0 = vrot.slane %v11398_v28, 3  ;;  %v3031_v17 = vrot.slane %v11399_v4, 3 }
 0x259   : > { %v3030_v12 = vsel %vm3005_vm5, %v3027_v55, %v3029_v0  ;;  %v3032_v53 = vsel %vm3005_vm5, %v3029_v0, %v3031_v17  ;;  %v3034_v14 = vsel %vm3005_vm5, %v3031_v17, %v3033_v24 }
 0x25e   : > { %8304 = vmatmul.mubr.bf16.gmra.mrb[24].mxu0 %v2682_v51  ;;  %v3039_v51 = vrot.slane %v10477_v48, 3  ;;  %v9536_v48 = vld [vmem:[%s11332_s2 + $0x68] sm:$0xff]  }
 0x25f   : > { %8307 = vmatprep.mubr.bf16.mxu0 %v2686_v21  ;;  %8377 = vmatprep.subr.bf16.mxu1 %v9536_v48  ;;  %v3802_v21 = vld [vmem:[#allocation2 + $0x1] sm:$0xff] }
 0x260   : > { %v3040_v1 = vsel %vm3005_vm5, %v3037_v35, %v3039_v51  ;;  %v3042_v39 = vsel %vm3005_vm5, %v3039_v51, %v3041_v20  ;;  %8378 = vmatpush3.bf16.msra.mxu1 %v9536_v48  ;;  %v3838_v10 = vpack.c.bf16 %v3803_v34, %v3802_v21 }
 0x261   : > { %8379 = vmatprep.subr.bf16.mxu1 %v9537_v52 }
 0x262   : > { %8383 = vmatprep.mubr.bf16.mxu1 %v3838_v10  ;;  %v9540_v10 = vld [vmem:[%s11332_s2 + $0x8] sm:$0xff]  }
 0x264   : > { %8380 = vmatpush3.bf16.msra.mxu1 %v9537_v52 }
 0x265   : > { %8381 = vmatprep.subr.bf16.mxu1 %v9538_v15 }
 0x266   : > { %8308 = vmatmul.mubr.bf16.gmra.mrb[28].mxu0 %v2690_v40 }
 0x267   : > { %8311 = vmatprep.mubr.bf16.mxu0 %v2699_v43 }
 0x268   : > { %8382 = vmatpush3.bf16.msra.mxu1 %v9538_v15 }
 0x269   : > { %8419 = vmatprep.subr.bf16.mxu1 %v10721_v54 }
 0x26e   : > { %8312 = vmatmul.mubr.bf16.gmra.mrb[32].mxu0 %v2708_v44 }
 0x26f   : > { %8331 = vmatprep.mubr.bf16.mxu0 %v3008_v58 }
 0x276   : > { %8332 = vmatmul.mubr.bf16.vlgmr.msra.gmra.mrb[0].mxu0 %v3010_v41 }
 0x277   : > { %8335 = vmatprep.mubr.bf16.mxu0 %v3012_v59 }
 0x278   : > { %v3440_v62 = vpop.permute.xlu0 %3439 }
 0x27c   : > { %v3445_v47 = vpop.permute.xlu0 %3444 }
 0x27e   : > { %8336 = vmatmul.mubr.bf16.gmra.mrb[4].mxu0 %v3014_v7 }
 0x27f   : > { %8339 = vmatprep.mubr.bf16.mxu0 %v3016_v2  ;;  %v3450_v56 = vpop.permute.xlu1 %3449 }
 0x283   : > { %v3455_v40 = vpop.permute.xlu1 %3454 }
 0x286   : > { %8340 = vmatmul.mubr.bf16.gmra.mrb[8].mxu0 %v3018_v25  ;;  %v3460_v33 = vpop.permute.xlu0 %3459 }
 0x287   : > { %8343 = vmatprep.mubr.bf16.mxu0 %v3020_v60  ;;  %v3465_v42 = vpop.permute.xlu1 %3464 }
 0x28e   : > { %8344 = vmatmul.mubr.bf16.gmra.mrb[12].mxu0 %v3022_v16  ;;  %v3470_v43 = vpop.permute.xlu0 %3469 }
 0x28f   : > { %8347 = vmatprep.mubr.bf16.mxu0 %v3024_v45  ;;  %v3475_v61 = vpop.permute.xlu1 %3474 }
 0x292   : > { %v10724_v50 = vpop.permute.xlu0 %3479 }
 0x293   : > { %v10726_v9 = vpop.permute.xlu1 %3484 }
 0x296   : > { %8348 = vmatmul.mubr.bf16.gmra.mrb[16].mxu0 %v3026_v37  ;;  %v10728_v44 = vpop.permute.xlu0 %3489 }
 0x297   : > { %8351 = vmatprep.mubr.bf16.mxu0 %v3028_v22  ;;  %v10730_v58 = vpop.permute.xlu1 %3494 }
 0x29a   : > { %v10738_v23 = vpop.permute.xlu0 %3499 }
 0x29b   : > { %v10742_v49 = vpop.permute.xlu1 %3504 }
 0x29e   : > { %8352 = vmatmul.mubr.bf16.gmra.mrb[20].mxu0 %v3030_v12  ;;  %v10745_v13 = vpop.permute.xlu0 %3509 }
 0x29f   : > { %8355 = vmatprep.mubr.bf16.mxu0 %v3032_v53  ;;  %v10748_v30 = vpop.permute.xlu1 %3514 }
 0x2a2   : > { %v10753_v24 = vpop.permute.xlu0 %3519 }
 0x2a3   : > { %v10755_v35 = vpop.permute.xlu1 %3524 }
 0x2a6   : > { %8356 = vmatmul.mubr.bf16.gmra.mrb[24].mxu0 %v3034_v14 }
 0x2a7   : > { %8359 = vmatprep.mubr.bf16.mxu0 %v3036_v46 }
 0x2ae   : > { %8360 = vmatmul.mubr.bf16.gmra.mrb[28].mxu0 %v3038_v29 }
 0x2af   : > { %8363 = vmatprep.mubr.bf16.mxu0 %v3040_v1 }
 0x2b6   : > { %8364 = vmatmul.mubr.bf16.gmra.mrb[32].mxu0 %v3042_v39 }
 0x349   : > { %v8333_v63 = vpop.f32.mrb[0].mxu0 }
 0x34a   : > { %v3331_v41 = vadd.f32 %v8333_v63, %v10735_v6  ;;  %v3143_v59 = vpop.f32.mrb[1].mxu0  ;;  %v10768_v63 = vpop.permute.xlu1 %3534 }
 0x34b   : > { %v3329_v5 = vadd.f32 %v10735_v6, %v3143_v59  ;;  %v8334_v26 = vpop.f32.mrb[2].mxu0 }
 0x34c   : > { %v3367_v57 = vmax.f32 %v3331_v41, 0.0  ;;  %v3332_v7 = vadd.f32 %v8334_v26, %v10735_v6  ;;  %v3146_v2 = vpop.f32.mrb[3].mxu0 }
 0x34d   : > { %v3365_v32 = vmax.f32 %v3329_v5, 0.0  ;;  %v3330_v11 = vadd.f32 %v10735_v6, %v3146_v2  ;;  %v9541_v5 = vld [vmem:[%s11332_s2 + $0x10] sm:$0xff]  }
 0x34e   : > { %v3619_v38 = vmul.f32 %v3450_v56, %v3367_v57  ;;  %v3368_v25 = vmax.f32 %v3332_v7, 0.0 }
 0x34f   : > { %v3617_v60 = vmul.f32 %v3440_v62, %v3365_v32  ;;  %v3366_v3 = vmax.f32 %v3330_v11, 0.0 }
 0x350   : > { %3698 = vst [vmem:[#allocation2 + $0x23] sm:$0xff] %v3619_v38  ;;  %v3620_v18 = vmul.f32 %v3455_v40, %v3368_v25  ;;  %v10763_v40 = vpop.permute.xlu0 %3529 }
 0x351   : > { %3696 = vst [vmem:[#allocation2 + $0x13] sm:$0xff] %v3617_v60  ;;  %v3618_v27 = vmul.f32 %v3445_v47, %v3366_v3  ;;  %v8337_v16 = vpop.f32.mrb[4].mxu0 }
 0x352   : > { %3699 = vst [vmem:[#allocation2 + $0x2b] sm:$0xff] %v3620_v18  ;;  %v3335_v45 = vadd.f32 %v8337_v16, %v10735_v6  ;;  %v3159_v36 = vpop.f32.mrb[5].mxu0 }
 0x353   : > { %3697 = vst [vmem:[#allocation2 + $0x1b] sm:$0xff] %v3618_v27  ;;  %v3333_v55 = vadd.f32 %v10735_v6, %v3159_v36  ;;  %v8338_v37 = vpop.f32.mrb[6].mxu0 }
 0x354   : > { %v3371_v22 = vmax.f32 %v3335_v45, 0.0  ;;  %v3336_v28 = vadd.f32 %v8338_v37, %v10735_v6  ;;  %v3162_v0 = vpop.f32.mrb[7].mxu0  ;;  %v10777_v38 = vpop.permute.xlu0 %3539 }
 0x355   : > { %v3369_v4 = vmax.f32 %v3333_v55, 0.0  ;;  %v3334_v17 = vadd.f32 %v10735_v6, %v3162_v0  ;;  %v10784_v45 = vpop.permute.xlu1 %3544 }
 0x356   : > { %v3623_v12 = vmul.f32 %v3470_v43, %v3371_v22  ;;  %v3372_v53 = vmax.f32 %v3336_v28, 0.0 }
 0x357   : > { %v3621_v31 = vmul.f32 %v3460_v33, %v3369_v4  ;;  %v3370_v14 = vmax.f32 %v3334_v17, 0.0  ;;  %v9543_v4 = vld [vmem:[%s11332_s2 + $0x20] sm:$0xff]  }
 0x358   : > { %3702 = vst [vmem:[#allocation2 + $0x43] sm:$0xff] %v3623_v12  ;;  %v3624_v46 = vmul.f32 %v3475_v61, %v3372_v53  ;;  %v3804_v8 = vld [vmem:[#allocation2 + $0x11] sm:$0xff]  ;;  %v10793_v12 = vpop.permute.xlu0 %3549 }
 0x359   : > { %3700 = vst [vmem:[#allocation2 + $0x33] sm:$0xff] %v3621_v31  ;;  %v3622_v51 = vmul.f32 %v3465_v42, %v3370_v14  ;;  %v8341_v29 = vpop.f32.mrb[8].mxu0  ;;  %v3807_v1 = vld [vmem:[#allocation2 + $0x29] sm:$0xff] }
 0x35a   : > { %3703 = vst [vmem:[#allocation2 + $0x4b] sm:$0xff] %v3624_v46  ;;  %v3339_v20 = vadd.f32 %v8341_v29, %v10735_v6  ;;  %v3175_v39 = vpop.f32.mrb[9].mxu0  ;;  %v3805_v19 = vld [vmem:[#allocation2 + $0x19] sm:$0xff]  ;;  %v3806_v48 = vld [vmem:[#allocation2 + $0x21] sm:$0xff] }
 0x35b   : > { %3701 = vst [vmem:[#allocation2 + $0x3b] sm:$0xff] %v3622_v51  ;;  %v3337_v52 = vadd.f32 %v10735_v6, %v3175_v39  ;;  %v8342_v15 = vpop.f32.mrb[10].mxu0  ;;  %v3839_v21 = vpack.c.bf16 %v3805_v19, %v3804_v8  ;;  %v3840_v34 = vpack.c.bf16 %v3807_v1, %v3806_v48  ;;  %v3555_v1 = vpop.permute.xlu1 %3554 }
 0x35c   : > { %v3375_v62 = vmax.f32 %v3339_v20, 0.0  ;;  %v3340_v56 = vadd.f32 %v8342_v15, %v10735_v6  ;;  %v3178_v47 = vpop.f32.mrb[11].mxu0 }
 0x35d   : > { %v3373_v33 = vmax.f32 %v3337_v52, 0.0  ;;  %v3338_v42 = vadd.f32 %v10735_v6, %v3178_v47  ;;  %8384 = vmatmul.mubr.bf16.vlgmr.msra.gmra.mrb[0].mxu1 %v3839_v21 }
 0x35e   : > { %v3627_v43 = vmul.f32 %v10728_v44, %v3375_v62  ;;  %v3376_v61 = vmax.f32 %v3340_v56, 0.0  ;;  %8387 = vmatprep.mubr.bf16.mxu1 %v3840_v34  ;;  %8420 = vmatpush3.bf16.msra.mxu1 %v10721_v54  ;;  %v10804_v62 = vpop.permute.xlu0 %3559 }
 0x35f   : > { %v3625_v41 = vmul.f32 %v10724_v50, %v3373_v33  ;;  %v3374_v59 = vmax.f32 %v3338_v42, 0.0  ;;  %8421 = vmatprep.subr.bf16.mxu1 %v9540_v10  ;;  %v9545_v33 = vld [vmem:[%s11332_s2 + $0x30] sm:$0xff]  }
 0x360   : > { %3706 = vst [vmem:[#allocation2 + $0x63] sm:$0xff] %v3627_v43  ;;  %v3628_v26 = vmul.f32 %v10730_v58, %v3376_v61  ;;  %v3808_v32 = vld [vmem:[#allocation2 + $0x31] sm:$0xff]  ;;  %v10811_v43 = vpop.permute.xlu1 %3564 }
 0x361   : > { %3704 = vst [vmem:[#allocation2 + $0x53] sm:$0xff] %v3625_v41  ;;  %v3626_v44 = vmul.f32 %v10726_v9, %v3374_v59  ;;  %v8345_v57 = vpop.f32.mrb[12].mxu0  ;;  %v3811_v7 = vld [vmem:[#allocation2 + $0x49] sm:$0xff]  ;;  %v9542_v9 = vld [vmem:[%s11332_s2 + $0x18] sm:$0xff]  }
 0x362   : > { %3707 = vst [vmem:[#allocation2 + $0x6b] sm:$0xff] %v3628_v26  ;;  %v3343_v54 = vadd.f32 %v8345_v57, %v10735_v6  ;;  %v3191_v2 = vpop.f32.mrb[13].mxu0  ;;  %v3809_v50 = vld [vmem:[#allocation2 + $0x39] sm:$0xff]  ;;  %v3810_v11 = vld [vmem:[#allocation2 + $0x41] sm:$0xff]  ;;  %8422 = vmatpush3.bf16.msra.mxu1 %v9540_v10 }
 0x363   : > { %3705 = vst [vmem:[#allocation2 + $0x5b] sm:$0xff] %v3626_v44  ;;  %v3341_v25 = vadd.f32 %v10735_v6, %v3191_v2  ;;  %v8346_v60 = vpop.f32.mrb[14].mxu0  ;;  %v3841_v58 = vpack.c.bf16 %v3809_v50, %v3808_v32  ;;  %v3842_v3 = vpack.c.bf16 %v3811_v7, %v3810_v11  ;;  %8423 = vmatprep.subr.bf16.mxu1 %v9541_v5  ;;  %v3570_v11 = vpop.permute.xlu0 %3569 }
 0x364   : > { %v3379_v18 = vmax.f32 %v3343_v54, 0.0  ;;  %v3344_v27 = vadd.f32 %v8346_v60, %v10735_v6  ;;  %v3194_v16 = vpop.f32.mrb[15].mxu0 }
 0x365   : > { %v3377_v36 = vmax.f32 %v3341_v25, 0.0  ;;  %v3342_v55 = vadd.f32 %v10735_v6, %v3194_v16  ;;  %8388 = vmatmul.mubr.bf16.gmra.mrb[4].mxu1 %v3841_v58  ;;  %v10826_v16 = vld [vmem:[%s11332_s2 + $0x80] sm:$0xff]  }
 0x366   : > { %v3631_v37 = vmul.f32 %v10745_v13, %v3379_v18  ;;  %v3380_v22 = vmax.f32 %v3344_v27, 0.0  ;;  %8391 = vmatprep.mubr.bf16.mxu1 %v3842_v3  ;;  %8424 = vmatpush3.bf16.msra.mxu1 %v9541_v5 }
 0x367   : > { %v3629_v28 = vmul.f32 %v10738_v23, %v3377_v36  ;;  %v3378_v0 = vmax.f32 %v3342_v55, 0.0  ;;  %8425 = vmatprep.subr.bf16.mxu1 %v9542_v9 }
 0x368   : > { %3710 = vst [vmem:[#allocation2 + $0x83] sm:$0xff] %v3631_v37  ;;  %v3632_v17 = vmul.f32 %v10748_v30, %v3380_v22  ;;  %v3812_v46 = vld [vmem:[#allocation2 + $0x51] sm:$0xff] }
 0x369   : > { %3708 = vst [vmem:[#allocation2 + $0x73] sm:$0xff] %v3629_v28  ;;  %v3630_v53 = vmul.f32 %v10742_v49, %v3378_v0  ;;  %v8349_v13 = vpop.f32.mrb[16].mxu0  ;;  %v3815_v31 = vld [vmem:[#allocation2 + $0x69] sm:$0xff] }
 0x36a   : > { %3711 = vst [vmem:[#allocation2 + $0x8b] sm:$0xff] %v3632_v17  ;;  %v3347_v14 = vadd.f32 %v8349_v13, %v10735_v6  ;;  %v3207_v23 = vpop.f32.mrb[17].mxu0  ;;  %v3813_v51 = vld [vmem:[#allocation2 + $0x59] sm:$0xff]  ;;  %v3814_v29 = vld [vmem:[#allocation2 + $0x61] sm:$0xff]  ;;  %8426 = vmatpush3.bf16.msra.mxu1 %v9542_v9  ;;  %v3575_v9 = vpop.permute.xlu1 %3574 }
 0x36b   : > { %3709 = vst [vmem:[#allocation2 + $0x7b] sm:$0xff] %v3630_v53  ;;  %v3345_v20 = vadd.f32 %v10735_v6, %v3207_v23  ;;  %v8350_v30 = vpop.f32.mrb[18].mxu0  ;;  %v3843_v39 = vpack.c.bf16 %v3813_v51, %v3812_v46  ;;  %v3844_v8 = vpack.c.bf16 %v3815_v31, %v3814_v29  ;;  %8427 = vmatprep.subr.bf16.mxu1 %v9543_v4  ;;  %v9544_v49 = vld [vmem:[%s11332_s2 + $0x28] sm:$0xff]  }
 0x36c   : > { %v3383_v19 = vmax.f32 %v3347_v14, 0.0  ;;  %v3348_v48 = vadd.f32 %v8350_v30, %v10735_v6  ;;  %v3210_v52 = vpop.f32.mrb[19].mxu0 }
 0x36d   : > { %v3381_v15 = vmax.f32 %v3345_v20, 0.0  ;;  %v3346_v21 = vadd.f32 %v10735_v6, %v3210_v52  ;;  %8392 = vmatmul.mubr.bf16.gmra.mrb[8].mxu1 %v3843_v39 }
 0x36e   : > { %v3635_v34 = vmul.f32 %v10763_v40, %v3383_v19  ;;  %v3384_v10 = vmax.f32 %v3348_v48, 0.0  ;;  %8395 = vmatprep.mubr.bf16.mxu1 %v3844_v8  ;;  %8428 = vmatpush3.bf16.msra.mxu1 %v9543_v4  ;;  %v3585_v51 = vpop.permute.xlu1 %3584 }
 0x36f   : > { %v3633_v56 = vmul.f32 %v10753_v24, %v3381_v15  ;;  %v3382_v47 = vmax.f32 %v3346_v21, 0.0  ;;  %8429 = vmatprep.subr.bf16.mxu1 %v9544_v49 }
 0x370   : > { %3714 = vst [vmem:[#allocation2 + $0xa3] sm:$0xff] %v3635_v34  ;;  %v3636_v42 = vmul.f32 %v10768_v63, %v3384_v10  ;;  %v3816_v5 = vld [vmem:[#allocation2 + $0x71] sm:$0xff] }
 0x371   : > { %3712 = vst [vmem:[#allocation2 + $0x93] sm:$0xff] %v3633_v56  ;;  %v3634_v40 = vmul.f32 %v10755_v35, %v3382_v47  ;;  %v8353_v61 = vpop.f32.mrb[20].mxu0  ;;  %v3819_v41 = vld [vmem:[#allocation2 + $0x89] sm:$0xff]  ;;  %v9546_v35 = vld [vmem:[%s11332_s2 + $0x38] sm:$0xff]  }
 0x372   : > { %3715 = vst [vmem:[#allocation2 + $0xab] sm:$0xff] %v3636_v42  ;;  %v3351_v59 = vadd.f32 %v8353_v61, %v10735_v6  ;;  %v3223_v24 = vpop.f32.mrb[21].mxu0  ;;  %v3817_v26 = vld [vmem:[#allocation2 + $0x79] sm:$0xff]  ;;  %v3818_v44 = vld [vmem:[#allocation2 + $0x81] sm:$0xff]  ;;  %8430 = vmatpush3.bf16.msra.mxu1 %v9544_v49 }
 0x373   : > { %3713 = vst [vmem:[#allocation2 + $0x9b] sm:$0xff] %v3634_v40  ;;  %v3349_v57 = vadd.f32 %v10735_v6, %v3223_v24  ;;  %v8354_v7 = vpop.f32.mrb[22].mxu0  ;;  %v3845_v63 = vpack.c.bf16 %v3817_v26, %v3816_v5  ;;  %v3846_v54 = vpack.c.bf16 %v3819_v41, %v3818_v44  ;;  %8431 = vmatprep.subr.bf16.mxu1 %v9545_v33 }
 0x374   : > { %v3387_v2 = vmax.f32 %v3351_v59, 0.0  ;;  %v3352_v32 = vadd.f32 %v8354_v7, %v10735_v6  ;;  %v3226_v50 = vpop.f32.mrb[23].mxu0 }
 0x375   : > { %v3385_v25 = vmax.f32 %v3349_v57, 0.0  ;;  %v3350_v60 = vadd.f32 %v10735_v6, %v3226_v50  ;;  %8396 = vmatmul.mubr.bf16.gmra.mrb[12].mxu1 %v3845_v63 }
 0x376   : > { %v3639_v58 = vmul.f32 %v10793_v12, %v3387_v2  ;;  %v3388_v3 = vmax.f32 %v3352_v32, 0.0  ;;  %8399 = vmatprep.mubr.bf16.mxu1 %v3846_v54  ;;  %8432 = vmatpush3.bf16.msra.mxu1 %v9545_v33  ;;  %v3580_v12 = vpop.permute.xlu0 %3579  ;;  %v3595_v33 = vpop.permute.xlu1 %3594 }
 0x377   : > { %v3637_v18 = vmul.f32 %v10777_v38, %v3385_v25  ;;  %v3386_v27 = vmax.f32 %v3350_v60, 0.0  ;;  %8433 = vmatprep.subr.bf16.mxu1 %v9546_v35 }
 0x378   : > { %3718 = vst [vmem:[#allocation2 + $0xc3] sm:$0xff] %v3639_v58  ;;  %v3640_v36 = vmul.f32 %v3555_v1, %v3388_v3  ;;  %v3820_v4 = vld [vmem:[#allocation2 + $0x91] sm:$0xff] }
 0x379   : > { %3716 = vst [vmem:[#allocation2 + $0xb3] sm:$0xff] %v3637_v18  ;;  %v3638_v55 = vmul.f32 %v10784_v45, %v3386_v27  ;;  %v8357_v37 = vpop.f32.mrb[24].mxu0  ;;  %v3823_v22 = vld [vmem:[#allocation2 + $0xa9] sm:$0xff] }
 0x37a   : > { %3719 = vst [vmem:[#allocation2 + $0xcb] sm:$0xff] %v3640_v36  ;;  %v3355_v28 = vadd.f32 %v8357_v37, %v10735_v6  ;;  %v3239_v0 = vpop.f32.mrb[25].mxu0  ;;  %v3821_v38 = vld [vmem:[#allocation2 + $0x99] sm:$0xff]  ;;  %v3822_v17 = vld [vmem:[#allocation2 + $0xa1] sm:$0xff]  ;;  %8434 = vmatpush3.bf16.msra.mxu1 %v9546_v35  ;;  %v3590_v19 = vpop.permute.xlu0 %3589 }
 0x37b   : > { %3717 = vst [vmem:[#allocation2 + $0xbb] sm:$0xff] %v3638_v55  ;;  %v3353_v53 = vadd.f32 %v10735_v6, %v3239_v0  ;;  %v8358_v13 = vpop.f32.mrb[26].mxu0  ;;  %v3847_v31 = vpack.c.bf16 %v3821_v38, %v3820_v4  ;;  %v3848_v14 = vpack.c.bf16 %v3823_v22, %v3822_v17  ;;  %8471 = vmatprep.subr.bf16.mxu1 %v10826_v16  ;;  %v3605_v35 = vpop.permute.xlu1 %3604 }
 0x37c   : > { %v3391_v45 = vmax.f32 %v3355_v28, 0.0  ;;  %v3356_v23 = vadd.f32 %v8358_v13, %v10735_v6  ;;  %v3242_v46 = vpop.f32.mrb[27].mxu0 }
 0x37d   : > { %v3389_v29 = vmax.f32 %v3353_v53, 0.0  ;;  %v3354_v1 = vadd.f32 %v10735_v6, %v3242_v46  ;;  %8400 = vmatmul.mubr.bf16.gmra.mrb[16].mxu1 %v3847_v31 }
 0x37e   : > { %v3643_v20 = vmul.f32 %v3570_v11, %v3391_v45  ;;  %v3392_v30 = vmax.f32 %v3356_v23, 0.0  ;;  %8403 = vmatprep.mubr.bf16.mxu1 %v3848_v14  ;;  %v3600_v57 = vpop.permute.xlu0 %3599 }
 0x37f   : > { %v3641_v39 = vmul.f32 %v10804_v62, %v3389_v29  ;;  %v3390_v8 = vmax.f32 %v3354_v1, 0.0  ;;  %v3615_v53 = vpop.permute.xlu1 %3614 }
 0x380   : > { %3722 = vst [vmem:[#allocation2 + $0xe3] sm:$0xff] %v3643_v20  ;;  %v3644_v49 = vmul.f32 %v3575_v9, %v3392_v30  ;;  %v3824_v10 = vld [vmem:[#allocation2 + $0xb1] sm:$0xff] }
 0x381   : > { %3720 = vst [vmem:[#allocation2 + $0xd3] sm:$0xff] %v3641_v39  ;;  %v10836_v48 = vmul.f32 %v10811_v43, %v3390_v8  ;;  %v8361_v52 = vpop.f32.mrb[28].mxu0  ;;  %v3827_v15 = vld [vmem:[#allocation2 + $0xc9] sm:$0xff] }
 0x382   : > { %3723 = vst [vmem:[#allocation2 + $0xeb] sm:$0xff] %v3644_v49  ;;  %v3359_v21 = vadd.f32 %v8361_v52, %v10735_v6  ;;  %v3255_v34 = vpop.f32.mrb[29].mxu0  ;;  %v3825_v56 = vld [vmem:[#allocation2 + $0xb9] sm:$0xff]  ;;  %v3826_v47 = vld [vmem:[#allocation2 + $0xc1] sm:$0xff]  ;;  %v3610_v28 = vpop.permute.xlu0 %3609 }
 0x383   : > { %3721 = vst [vmem:[#allocation2 + $0xdb] sm:$0xff] %v10836_v48  ;;  %v3357_v62 = vadd.f32 %v10735_v6, %v3255_v34  ;;  %v8362_v42 = vpop.f32.mrb[30].mxu0  ;;  %v3849_v40 = vpack.c.bf16 %v3825_v56, %v3824_v10  ;;  %v3850_v61 = vpack.c.bf16 %v3827_v15, %v3826_v47  ;;  %v3735_v52 = vld [vmem:[#allocation2 + $0x18] sm:$0xff]  ;;  %v3736_v15 = vld [vmem:[#allocation2 + $0x20] sm:$0xff]  ;;  %v3734_v34 = vld [vmem:[#allocation2 + $0x10] sm:$0xff] }
 0x384   : > { %v3395_v41 = vmax.f32 %v3359_v21, 0.0  ;;  %v3360_v43 = vadd.f32 %v8362_v42, %v10735_v6  ;;  %v3258_v59 = vpop.f32.mrb[31].mxu0  ;;  %v3737_v21 = vld [vmem:[#allocation2 + $0x28] sm:$0xff]  ;;  %v3769_v10 = vpack.c.bf16 %v3735_v52, %v3734_v34  ;;  %v3740_v42 = vld [vmem:[#allocation2 + $0x40] sm:$0xff] }
 0x385   : > { %v3393_v24 = vmax.f32 %v3357_v62, 0.0  ;;  %v3358_v5 = vadd.f32 %v10735_v6, %v3258_v59  ;;  %8404 = vmatmul.mubr.bf16.gmra.mrb[20].mxu1 %v3849_v40  ;;  %v9548_v56 = vld [vmem:[%s11332_s2 + $0x88] sm:$0xff]   ;;  %v3770_v47 = vpack.c.bf16 %v3737_v21, %v3736_v15  ;;  %v3739_v62 = vld [vmem:[#allocation2 + $0x38] sm:$0xff] }
 0x386   : > { %v3647_v26 = vmul.f32 %v3590_v19, %v3395_v41  ;;  %v3396_v44 = vmax.f32 %v3360_v43, 0.0  ;;  %8407 = vmatprep.mubr.bf16.mxu1 %v3850_v61  ;;  %v9706_v19 = vmov 0.0|0.0   ;;  %v3741_v40 = vld [vmem:[#allocation2 + $0x48] sm:$0xff]  ;;  %v3738_v61 = vld [vmem:[#allocation2 + $0x30] sm:$0xff]  ;;  %v9550_v43 = vld [vmem:[%s11332_s2 + $0x98] sm:$0xff]  }
 0x387   : > { %v10843_v7 = vmul.f32 %v3580_v12, %v3393_v24  ;;  %v3394_v63 = vmax.f32 %v3358_v5, 0.0  ;;  %v3771_v41 = vpack.c.bf16 %v3739_v62, %v3738_v61  ;;  %v3772_v59 = vpack.c.bf16 %v3741_v40, %v3740_v42  ;;  %v3743_v24 = vld [vmem:[#allocation2 + $0x58] sm:$0xff]  ;;  %v3744_v5 = vld [vmem:[#allocation2 + $0x60] sm:$0xff]  ;;  %v4328_v61 = vld [vmem:[#allocation2 + $0x2a] sm:$0xff] }
 0x388   : > { %3726 = vst [vmem:[#allocation2 + $0x103] sm:$0xff] %v3647_v26  ;;  %v10845_v54 = vmul.f32 %v3595_v33, %v3396_v44  ;;  %v3828_v60 = vld [vmem:[#allocation2 + $0xd1] sm:$0xff]  ;;  %v3745_v26 = vld [vmem:[#allocation2 + $0x68] sm:$0xff]  ;;  %v4326_v42 = vld [vmem:[#allocation2 + $0x1a] sm:$0xff] }
 0x389   : > { %3724 = vst [vmem:[#allocation2 + $0xf3] sm:$0xff] %v10843_v7  ;;  %v10848_v2 = vmul.f32 %v3585_v51, %v3394_v63  ;;  %v8365_v32 = vpop.f32.mrb[32].mxu0  ;;  %v3831_v50 = vld [vmem:[#allocation2 + $0xe9] sm:$0xff] }
 0x38a   : > { %3727 = vst [vmem:[#allocation2 + $0x10b] sm:$0xff] %v10845_v54  ;;  %v3363_v11 = vadd.f32 %v8365_v32, %v10735_v6  ;;  %v3271_v25 = vpop.f32.mrb[33].mxu0  ;;  %v3829_v58 = vld [vmem:[#allocation2 + $0xd9] sm:$0xff]  ;;  %v3830_v3 = vld [vmem:[#allocation2 + $0xe1] sm:$0xff]  ;;  %v9549_v33 = vld [vmem:[%s11332_s2 + $0x90] sm:$0xff]  }
 0x38b   : > { %3725 = vst [vmem:[#allocation2 + $0xfb] sm:$0xff] %v10848_v2  ;;  %v3361_v9 = vadd.f32 %v10735_v6, %v3271_v25  ;;  %v8366_v18 = vpop.f32.mrb[34].mxu0  ;;  %v3851_v27 = vpack.c.bf16 %v3829_v58, %v3828_v60  ;;  %v3852_v36 = vpack.c.bf16 %v3831_v50, %v3830_v3  ;;  %v5037_v12 = vpack.c.bf16 %v10848_v2, %v10843_v7  ;;  %v3742_v44 = vld [vmem:[#allocation2 + $0x50] sm:$0xff]  ;;  %v9552_v63 = vld [vmem:[%s11332_s2 + $0xa8] sm:$0xff]   ;;  %v3747_v50 = vld [vmem:[#allocation2 + $0x78] sm:$0xff] }
 0x38c   : > { %v3399_v55 = vmax.f32 %v3363_v11, 0.0  ;;  %v3364_v37 = vadd.f32 %v8366_v18, %v10735_v6  ;;  %v3274_v22 = vpop.f32.mrb[35].mxu0  ;;  %v9553_v32 = vld [vmem:[%s11332_s2 + $0xb0] sm:$0xff]   ;;  %v3748_v11 = vld [vmem:[#allocation2 + $0x80] sm:$0xff]  ;;  %v3749_v25 = vld [vmem:[#allocation2 + $0x88] sm:$0xff] }
 0x38d   : > { %v3397_v0 = vmax.f32 %v3361_v9, 0.0  ;;  %v3362_v4 = vadd.f32 %v10735_v6, %v3274_v22  ;;  %8408 = vmatmul.mubr.bf16.gmra.mrb[24].mxu1 %v3851_v27  ;;  %v3746_v60 = vld [vmem:[#allocation2 + $0x70] sm:$0xff]  ;;  %v9554_v3 = vld [vmem:[%s11332_s2 + $0xb8] sm:$0xff]   ;;  %v3776_v9 = vpack.c.bf16 %v3749_v25, %v3748_v11  ;;  %v9555_v18 = vld [vmem:[%s11332_s2 + $0xc0] sm:$0xff]  }
 0x38e   : > { %v10856_v38 = vmul.f32 %v3610_v28, %v3399_v55  ;;  %v3400_v17 = vmax.f32 %v3364_v37, 0.0  ;;  %8411 = vmatprep.mubr.bf16.mxu1 %v3852_v36  ;;  %v3775_v58 = vpack.c.bf16 %v3747_v50, %v3746_v60  ;;  %v3751_v27 = vld [vmem:[#allocation2 + $0x98] sm:$0xff]  ;;  %v3752_v36 = vld [vmem:[#allocation2 + $0xa0] sm:$0xff]  ;;  %v3753_v55 = vld [vmem:[#allocation2 + $0xa8] sm:$0xff] }
 0x38f   : > { %v10860_v13 = vmul.f32 %v3600_v57, %v3397_v0  ;;  %v3398_v31 = vmax.f32 %v3362_v4, 0.0  ;;  %v3773_v57 = vpack.c.bf16 %v3743_v24, %v3742_v44  ;;  %v3750_v37 = vld [vmem:[#allocation2 + $0x90] sm:$0xff]  ;;  %v3778_v28 = vpack.c.bf16 %v3753_v55, %v3752_v36  ;;  %v3755_v0 = vld [vmem:[#allocation2 + $0xb8] sm:$0xff]  ;;  %v3756_v4 = vld [vmem:[#allocation2 + $0xc0] sm:$0xff] }
 0x390   : > { %3730 = vst [vmem:[#allocation2 + $0x123] sm:$0xff] %v10856_v38  ;;  %v10863_v14 = vmul.f32 %v3615_v53, %v3400_v17  ;;  %v3832_v23 = vld [vmem:[#allocation2 + $0xf1] sm:$0xff]  ;;  %v3777_v22 = vpack.c.bf16 %v3751_v27, %v3750_v37  ;;  %v3757_v17 = vld [vmem:[#allocation2 + $0xc8] sm:$0xff]  ;;  %v9559_v50 = vld [vmem:[%s11332_s2 + $0xe0] sm:$0xff]  }
 0x391   : > { %3728 = vst [vmem:[#allocation2 + $0x113] sm:$0xff] %v10860_v13  ;;  %v10866_v45 = vmul.f32 %v3605_v35, %v3398_v31  ;;  %v3835_v6 = vld [vmem:[#allocation2 + $0x109] sm:$0xff]  ;;  %v3774_v35 = vpack.c.bf16 %v3745_v26, %v3744_v5  ;;  %v4330_v5 = vld [vmem:[#allocation2 + $0x3a] sm:$0xff] }
 0x392   : > { %3731 = vst [vmem:[#allocation2 + $0x12b] sm:$0xff] %v10863_v14  ;;  %v3833_v46 = vld [vmem:[#allocation2 + $0xf9] sm:$0xff]  ;;  %v3834_v51 = vld [vmem:[#allocation2 + $0x101] sm:$0xff]  ;;  %v5040_v29 = vpack.c.bf16 %v10863_v14, %v10856_v38  ;;  %v3754_v53 = vld [vmem:[#allocation2 + $0xb0] sm:$0xff] }
 0x393   : > { %3729 = vst [vmem:[#allocation2 + $0x11b] sm:$0xff] %v10866_v45  ;;  %v3853_v1 = vpack.c.bf16 %v3833_v46, %v3832_v23  ;;  %v3854_v20 = vpack.c.bf16 %v3835_v6, %v3834_v51  ;;  %v5039_v30 = vpack.c.bf16 %v10866_v45, %v10860_v13  ;;  %v3779_v31 = vpack.c.bf16 %v3755_v0, %v3754_v53  ;;  %v3759_v23 = vld [vmem:[#allocation2 + $0xd8] sm:$0xff]  ;;  %v3760_v46 = vld [vmem:[#allocation2 + $0xe0] sm:$0xff]  ;;  %v3761_v51 = vld [vmem:[#allocation2 + $0xe8] sm:$0xff] }
 0x394   : > { %v3780_v6 = vpack.c.bf16 %v3757_v17, %v3756_v4  ;;  %v3762_v52 = vld [vmem:[#allocation2 + $0xf0] sm:$0xff]  ;;  %v4323_v34 = vld [vmem:[#allocation2 + $0x2] sm:$0xff]  ;;  %v4334_v11 = vld [vmem:[#allocation2 + $0x5a] sm:$0xff] }
 0x395   : > { %8412 = vmatmul.mubr.bf16.gmra.mrb[28].mxu1 %v3853_v1  ;;  %v3758_v1 = vld [vmem:[#allocation2 + $0xd0] sm:$0xff]  ;;  %v4327_v40 = vld [vmem:[#allocation2 + $0x22] sm:$0xff]  ;;  %v4338_v36 = vld [vmem:[#allocation2 + $0x7a] sm:$0xff] }
 0x396   : > { %8415 = vmatprep.mubr.bf16.mxu1 %v3854_v20  ;;  %v3781_v20 = vpack.c.bf16 %v3759_v23, %v3758_v1  ;;  %v9557_v24 = vld [vmem:[%s11332_s2 + $0xd0] sm:$0xff]   ;;  %v4331_v26 = vld [vmem:[#allocation2 + $0x42] sm:$0xff]  ;;  %v9562_v0 = vld [vmem:[%s11332_s2 + $0xf8] sm:$0xff]  }
 0x397   : > { %v4332_v44 = vld [vmem:[#allocation2 + $0x4a] sm:$0xff]  ;;  %v4335_v25 = vld [vmem:[#allocation2 + $0x62] sm:$0xff]  ;;  %v4342_v53 = vld [vmem:[#allocation2 + $0x9a] sm:$0xff] }
 0x398   : > { %v3836_v39 = vld [vmem:[#allocation2 + $0x111] sm:$0xff]  ;;  %v4339_v55 = vld [vmem:[#allocation2 + $0x82] sm:$0xff]  ;;  %v4346_v1 = vld [vmem:[#allocation2 + $0xba] sm:$0xff] }
 0x399   : > { %v4336_v60 = vld [vmem:[#allocation2 + $0x6a] sm:$0xff]  ;;  %v9563_v17 = vld [vmem:[%s11332_s2 + $0x100] sm:$0xff]   ;;  %v4341_v23 = vld [vmem:[#allocation2 + $0x92] sm:$0xff] }
 0x39a   : > { %v3837_v8 = vld [vmem:[#allocation2 + $0x119] sm:$0xff]  ;;  %v9561_v27 = vld [vmem:[%s11332_s2 + $0xf0] sm:$0xff]   ;;  %v5321_v2 = vld [vmem:[#allocation2 + $0x24] sm:$0xff] }
 0x39b   : > { %v3855_v49 = vpack.c.bf16 %v3837_v8, %v3836_v39  ;;  %v3782_v39 = vpack.c.bf16 %v3761_v51, %v3760_v46  ;;  %v3763_v8 = vld [vmem:[#allocation2 + $0xf8] sm:$0xff]  ;;  %v4340_v37 = vld [vmem:[#allocation2 + $0x8a] sm:$0xff]  ;;  %v4368_v46 = vpack.c.bf16 %v4342_v53, %v4341_v23  ;;  %v9575_v23 = vld [vmem:[%s11332_s2 + $0x160] sm:$0xff]  }
 0x39c   : > { %v3783_v15 = vpack.c.bf16 %v3763_v8, %v3762_v52  ;;  %v10940_v4 = vpack.c.bf16 %v4340_v37, %v4339_v55  ;;  %v4345_v8 = vld [vmem:[#allocation2 + $0xb2] sm:$0xff]  ;;  %v4350_v52 = vld [vmem:[#allocation2 + $0xda] sm:$0xff]  ;;  %v9572_v55 = vld [vmem:[%s11332_s2 + $0x148] sm:$0xff]  }
 0x39d   : > { %8416 = vmatmul.mubr.bf16.gmra.mrb[32].mxu1 %v3855_v49  ;;  %v3764_v49 = vld [vmem:[#allocation2 + $0x100] sm:$0xff]  ;;  %v4995_v53 = vld [vmem:[#allocation2 + $0x53] sm:$0xff] }
 0x39e   : > { %8435 = vmatprep.mubr.bf16.mxu1 %v9706_v19  ;;  %v3765_v19 = vld [vmem:[#allocation2 + $0x108] sm:$0xff]  ;;  %v5324_v7 = vld [vmem:[#allocation2 + $0x3c] sm:$0xff]  ;;  %v9581_v38 = vld [vmem:[%s11332_s2 + $0x190] sm:$0xff]  }
 0x39f   : > { %v3784_v21 = vpack.c.bf16 %v3765_v19, %v3764_v49  ;;  %v4370_v49 = vpack.c.bf16 %v4346_v1, %v4345_v8  ;;  %v4997_v1 = vld [vmem:[#allocation2 + $0x63] sm:$0xff]  ;;  %v5326_v14 = vld [vmem:[#allocation2 + $0x4c] sm:$0xff]  ;;  %v5327_v45 = vld [vmem:[#allocation2 + $0x54] sm:$0xff] }
 0x3a0   : > { %v9576_v8 = vld [vmem:[%s11332_s2 + $0x168] sm:$0xff]  }
 0x3a5   : > { %8436 = vmatmul.mubr.bf16.vlgmr.msra.gmra.mrb[0].mxu1 %v3769_v10  ;;  %v4324_v10 = vld [vmem:[#allocation2 + $0xa] sm:$0xff] }
 0x3a6   : > { %8439 = vmatprep.mubr.bf16.mxu1 %v3770_v47  ;;  %8472 = vmatpush3.bf16.msra.mxu1 %v10826_v16  ;;  %v9551_v16 = vld [vmem:[%s11332_s2 + $0xa0] sm:$0xff]   ;;  %v3766_v47 = vld [vmem:[#allocation2 + $0x110] sm:$0xff] }
 0x3a7   : > { %8473 = vmatprep.subr.bf16.mxu1 %v9548_v56 }
 0x3aa   : > { %8474 = vmatpush3.bf16.msra.mxu1 %v9548_v56  ;;  %v3767_v56 = vld [vmem:[#allocation2 + $0x118] sm:$0xff] }
 0x3ab   : > { %8475 = vmatprep.subr.bf16.mxu1 %v9549_v33  ;;  %v3785_v62 = vpack.c.bf16 %v3767_v56, %v3766_v47  ;;  %v4354_v47 = vld [vmem:[#allocation2 + $0xfa] sm:$0xff] }
 0x3ad   : > { %8440 = vmatmul.mubr.bf16.gmra.mrb[4].mxu1 %v3771_v41  ;;  %v4325_v41 = vld [vmem:[#allocation2 + $0x12] sm:$0xff] }
 0x3ae   : > { %8443 = vmatprep.mubr.bf16.mxu1 %v3772_v59  ;;  %8476 = vmatpush3.bf16.msra.mxu1 %v9549_v33  ;;  %v4359_v33 = vpack.c.bf16 %v4324_v10, %v4323_v34  ;;  %v9556_v59 = vld [vmem:[%s11332_s2 + $0xc8] sm:$0xff]   ;;  %v4349_v34 = vld [vmem:[#allocation2 + $0xd2] sm:$0xff] }
 0x3af   : > { %8477 = vmatprep.subr.bf16.mxu1 %v9550_v43  ;;  %v4372_v10 = vpack.c.bf16 %v4350_v52, %v4349_v34  ;;  %v5002_v52 = vld [vmem:[#allocation2 + $0x8b] sm:$0xff] }
 0x3b2   : > { %8478 = vmatpush3.bf16.msra.mxu1 %v9550_v43  ;;  %v10899_v43 = vpack.c.bf16 %v4326_v42, %v4325_v41  ;;  %v4353_v42 = vld [vmem:[#allocation2 + $0xf2] sm:$0xff]  ;;  %v4358_v41 = vld [vmem:[#allocation2 + $0x11a] sm:$0xff] }
 0x3b3   : > { %8479 = vmatprep.subr.bf16.mxu1 %v9551_v16 }
 0x3b5   : > { %8444 = vmatmul.mubr.bf16.gmra.mrb[8].mxu1 %v3773_v57  ;;  %v4329_v57 = vld [vmem:[#allocation2 + $0x32] sm:$0xff] }
 0x3b6   : > { %8447 = vmatprep.mubr.bf16.mxu1 %v3774_v35  ;;  %8480 = vmatpush3.bf16.msra.mxu1 %v9551_v16  ;;  %v10904_v16 = vpack.c.bf16 %v4328_v61, %v4327_v40  ;;  %v9558_v35 = vld [vmem:[%s11332_s2 + $0xd8] sm:$0xff]   ;;  %v4374_v40 = vpack.c.bf16 %v4354_v47, %v4353_v42 }
 0x3b7   : > { %8481 = vmatprep.subr.bf16.mxu1 %v9552_v63  ;;  %v5008_v42 = vld [vmem:[#allocation2 + $0xbb] sm:$0xff] }
 0x3ba   : > { %8482 = vmatpush3.bf16.msra.mxu1 %v9552_v63  ;;  %v10911_v63 = vpack.c.bf16 %v4330_v5, %v4329_v57  ;;  %v9564_v5 = vld [vmem:[%s11332_s2 + $0x108] sm:$0xff]   ;;  %v9569_v57 = vld [vmem:[%s11332_s2 + $0x130] sm:$0xff]  }
 0x3bb   : > { %8483 = vmatprep.subr.bf16.mxu1 %v9553_v32 }
 0x3bd   : > { %8448 = vmatmul.mubr.bf16.gmra.mrb[12].mxu1 %v3775_v58  ;;  %v4333_v58 = vld [vmem:[#allocation2 + $0x52] sm:$0xff] }
 0x3be   : > { %8451 = vmatprep.mubr.bf16.mxu1 %v3776_v9  ;;  %8484 = vmatpush3.bf16.msra.mxu1 %v9553_v32  ;;  %v10916_v32 = vpack.c.bf16 %v4332_v44, %v4331_v26  ;;  %v9560_v9 = vld [vmem:[%s11332_s2 + $0xe8] sm:$0xff]   ;;  %v9565_v26 = vld [vmem:[%s11332_s2 + $0x110] sm:$0xff]  }
 0x3bf   : > { %8485 = vmatprep.subr.bf16.mxu1 %v9554_v3  ;;  %v9568_v44 = vld [vmem:[%s11332_s2 + $0x128] sm:$0xff]  }
 0x3c2   : > { %8486 = vmatpush3.bf16.msra.mxu1 %v9554_v3  ;;  %v10923_v3 = vpack.c.bf16 %v4334_v11, %v4333_v58  ;;  %v4988_v11 = vld [vmem:[#allocation2 + $0x1b] sm:$0xff] }
 0x3c3   : > { %8523 = vmatprep.subr.bf16.mxu1 %v9555_v18 }
 0x3c5   : > { %8452 = vmatmul.mubr.bf16.gmra.mrb[16].mxu1 %v3777_v22  ;;  %v4337_v22 = vld [vmem:[#allocation2 + $0x72] sm:$0xff] }
 0x3c6   : > { %8455 = vmatprep.mubr.bf16.mxu1 %v3778_v28  ;;  %v10935_v28 = vpack.c.bf16 %v4338_v36, %v4337_v22  ;;  %v4991_v36 = vld [vmem:[#allocation2 + $0x33] sm:$0xff] }
 0x3c7   : > { %v9573_v22 = vld [vmem:[%s11332_s2 + $0x150] sm:$0xff]  }
 0x3cd   : > { %8456 = vmatmul.mubr.bf16.gmra.mrb[20].mxu1 %v3779_v31  ;;  %v4343_v31 = vld [vmem:[#allocation2 + $0xa2] sm:$0xff] }
 0x3ce   : > { %8459 = vmatprep.mubr.bf16.mxu1 %v3780_v6  ;;  %v4344_v6 = vld [vmem:[#allocation2 + $0xaa] sm:$0xff] }
 0x3cf   : > { %v10947_v51 = vpack.c.bf16 %v4344_v6, %v4343_v31  ;;  %v9574_v31 = vld [vmem:[%s11332_s2 + $0x158] sm:$0xff]  }
 0x3d5   : > { %8460 = vmatmul.mubr.bf16.gmra.mrb[24].mxu1 %v3781_v20  ;;  %v4347_v20 = vld [vmem:[#allocation2 + $0xc2] sm:$0xff] }
 0x3d6   : > { %8463 = vmatprep.mubr.bf16.mxu1 %v3782_v39  ;;  %v4348_v39 = vld [vmem:[#allocation2 + $0xca] sm:$0xff] }
 0x3d7   : > { %v4371_v19 = vpack.c.bf16 %v4348_v39, %v4347_v20  ;;  %v4999_v39 = vld [vmem:[#allocation2 + $0x73] sm:$0xff] }
 0x3dd   : > { %8464 = vmatmul.mubr.bf16.gmra.mrb[28].mxu1 %v3783_v15  ;;  %v4351_v15 = vld [vmem:[#allocation2 + $0xe2] sm:$0xff] }
 0x3de   : > { %8467 = vmatprep.mubr.bf16.mxu1 %v3784_v21  ;;  %v4352_v21 = vld [vmem:[#allocation2 + $0xea] sm:$0xff] }
 0x3df   : > { %v4373_v56 = vpack.c.bf16 %v4352_v21, %v4351_v15  ;;  %v5004_v15 = vld [vmem:[#allocation2 + $0x9b] sm:$0xff]  ;;  %v5001_v21 = vld [vmem:[#allocation2 + $0x83] sm:$0xff] }
 0x3e0   : > { %v5030_v34 = vpack.c.bf16 %v5002_v52, %v5001_v21  ;;  %v5343_v21 = vld [vmem:[#allocation2 + $0xd4] sm:$0xff] }
 0x3e5   : > { %8468 = vmatmul.mubr.bf16.gmra.mrb[32].mxu1 %v3785_v62  ;;  %v4356_v62 = vld [vmem:[#allocation2 + $0x10a] sm:$0xff] }
 0x3e6   : > { %8487 = vmatprep.mubr.bf16.mxu1 %v4359_v33  ;;  %v4355_v33 = vld [vmem:[#allocation2 + $0x102] sm:$0xff] }
 0x3e7   : > { %v4375_v61 = vpack.c.bf16 %v4356_v62, %v4355_v33  ;;  %v9579_v33 = vld [vmem:[%s11332_s2 + $0x180] sm:$0xff]   ;;  %v5006_v62 = vld [vmem:[#allocation2 + $0xab] sm:$0xff] }
 0x3ed   : > { %8488 = vmatmul.mubr.bf16.vlgmr.msra.gmra.mrb[0].mxu1 %v10899_v43 }
 0x3ee   : > { %8491 = vmatprep.mubr.bf16.mxu1 %v10904_v16  ;;  %8524 = vmatpush3.bf16.msra.mxu1 %v9555_v18  ;;  %v10928_v18 = vpack.c.bf16 %v4336_v60, %v4335_v25  ;;  %v4987_v60 = vld [vmem:[#allocation2 + $0x13] sm:$0xff] }
 0x3ef   : > { %8525 = vmatprep.subr.bf16.mxu1 %v9556_v59  ;;  %v5023_v58 = vpack.c.bf16 %v4988_v11, %v4987_v60  ;;  %v5323_v60 = vld [vmem:[#allocation2 + $0x34] sm:$0xff] }
 0x3f0   : > { %v11023_v13 = vpack.c.bf16 %v5324_v7, %v5323_v60  ;;  %v9594_v60 = vld [vmem:[%s11332_s2 + $0x1f8] sm:$0xff]   ;;  %v9595_v7 = vld [vmem:[%s11332_s2 + $0x200] sm:$0xff]  }
 0x3f2   : > { %8526 = vmatpush3.bf16.msra.mxu1 %v9556_v59  ;;  %v4357_v59 = vld [vmem:[#allocation2 + $0x112] sm:$0xff] }
 0x3f3   : > { %8527 = vmatprep.subr.bf16.mxu1 %v9557_v24 }
 0x3f5   : > { %8492 = vmatmul.mubr.bf16.gmra.mrb[4].mxu1 %v10911_v63 }
 0x3f6   : > { %8495 = vmatprep.mubr.bf16.mxu1 %v10916_v32  ;;  %8528 = vmatpush3.bf16.msra.mxu1 %v9557_v24  ;;  %v4376_v24 = vpack.c.bf16 %v4358_v41, %v4357_v59  ;;  %v5007_v41 = vld [vmem:[#allocation2 + $0xb3] sm:$0xff] }
 0x3f7   : > { %8529 = vmatprep.subr.bf16.mxu1 %v9558_v35  ;;  %v5033_v59 = vpack.c.bf16 %v5008_v42, %v5007_v41  ;;  %v5348_v42 = vld [vmem:[#allocation2 + $0xfc] sm:$0xff] }
 0x3fa   : > { %8530 = vmatpush3.bf16.msra.mxu1 %v9558_v35  ;;  %v9571_v35 = vld [vmem:[%s11332_s2 + $0x140] sm:$0xff]  }
 0x3fb   : > { %8531 = vmatprep.subr.bf16.mxu1 %v9559_v50 }
 0x3fd   : > { %8496 = vmatmul.mubr.bf16.gmra.mrb[8].mxu1 %v10923_v3 }
 0x3fe   : > { %8499 = vmatprep.mubr.bf16.mxu1 %v10928_v18  ;;  %8532 = vmatpush3.bf16.msra.mxu1 %v9559_v50  ;;  %v4690_v50 = vld [vmem:[#allocation2 + $0x12a] sm:$0xff] }
 0x3ff   : > { %8533 = vmatprep.subr.bf16.mxu1 %v9560_v9 }
 0x402   : > { %8534 = vmatpush3.bf16.msra.mxu1 %v9560_v9  ;;  %v4992_v9 = vld [vmem:[#allocation2 + $0x3b] sm:$0xff] }
 0x403   : > { %8535 = vmatprep.subr.bf16.mxu1 %v9561_v27  ;;  %v5025_v37 = vpack.c.bf16 %v4992_v9, %v4991_v36  ;;  %v5331_v36 = vld [vmem:[#allocation2 + $0x74] sm:$0xff] }
 0x405   : > { %8500 = vmatmul.mubr.bf16.gmra.mrb[12].mxu1 %v10935_v28 }
 0x406   : > { %8503 = vmatprep.mubr.bf16.mxu1 %v10940_v4  ;;  %8536 = vmatpush3.bf16.msra.mxu1 %v9561_v27 }
 0x407   : > { %8537 = vmatprep.subr.bf16.mxu1 %v9562_v0 }
 0x40a   : > { %8538 = vmatpush3.bf16.msra.mxu1 %v9562_v0  ;;  %v4996_v0 = vld [vmem:[#allocation2 + $0x5b] sm:$0xff] }
 0x40b   : > { %8575 = vmatprep.subr.bf16.mxu1 %v9563_v17  ;;  %v5027_v6 = vpack.c.bf16 %v4996_v0, %v4995_v53  ;;  %v5335_v53 = vld [vmem:[#allocation2 + $0x94] sm:$0xff] }
 0x40d   : > { %8504 = vmatmul.mubr.bf16.gmra.mrb[16].mxu1 %v4368_v46 }
 0x40e   : > { %8507 = vmatprep.mubr.bf16.mxu1 %v10947_v51 }
 0x415   : > { %8508 = vmatmul.mubr.bf16.gmra.mrb[20].mxu1 %v4370_v49 }
 0x416   : > { %8511 = vmatprep.mubr.bf16.mxu1 %v4371_v19 }
 0x41d   : > { %8512 = vmatmul.mubr.bf16.gmra.mrb[24].mxu1 %v4372_v10 }
 0x41e   : > { %8515 = vmatprep.mubr.bf16.mxu1 %v4373_v56 }
 0x425   : > { %8516 = vmatmul.mubr.bf16.gmra.mrb[28].mxu1 %v4374_v40 }
 0x426   : > { %8519 = vmatprep.mubr.bf16.mxu1 %v4375_v61 }
 0x42d   : > { %8520 = vmatmul.mubr.bf16.gmra.mrb[32].mxu1 %v4376_v24 }
 0x42e   : > { %8539 = vmatprep.mubr.bf16.mxu1 %v10899_v43  ;;  %v9566_v43 = vld [vmem:[%s11332_s2 + $0x118] sm:$0xff]  }
 0x435   : > { %8540 = vmatmul.mubr.bf16.vlgmr.msra.gmra.mrb[0].mxu1 %v10904_v16  ;;  %v9567_v16 = vld [vmem:[%s11332_s2 + $0x120] sm:$0xff]  }
 0x436   : > { %8543 = vmatprep.mubr.bf16.mxu1 %v10911_v63  ;;  %8576 = vmatpush3.bf16.msra.mxu1 %v9563_v17  ;;  %v9570_v63 = vld [vmem:[%s11332_s2 + $0x138] sm:$0xff]  }
 0x437   : > { %8577 = vmatprep.subr.bf16.mxu1 %v9564_v5 }
 0x43a   : > { %8578 = vmatpush3.bf16.msra.mxu1 %v9564_v5  ;;  %v5011_v5 = vld [vmem:[#allocation2 + $0xd3] sm:$0xff] }
 0x43b   : > { %8579 = vmatprep.subr.bf16.mxu1 %v9565_v26 }
 0x43d   : > { %8544 = vmatmul.mubr.bf16.gmra.mrb[4].mxu1 %v10916_v32  ;;  %v4689_v32 = vld [vmem:[#allocation2 + $0x122] sm:$0xff] }
 0x43e   : > { %8547 = vmatprep.mubr.bf16.mxu1 %v10923_v3  ;;  %8580 = vmatpush3.bf16.msra.mxu1 %v9565_v26  ;;  %v4708_v25 = vpack.c.bf16 %v4690_v50, %v4689_v32  ;;  %v4990_v3 = vld [vmem:[#allocation2 + $0x2b] sm:$0xff]  ;;  %v5009_v26 = vld [vmem:[#allocation2 + $0xc3] sm:$0xff]  ;;  %v5319_v50 = vld [vmem:[#allocation2 + $0x14] sm:$0xff] }
 0x43f   : > { %8581 = vmatprep.subr.bf16.mxu1 %v9566_v43 }
 0x442   : > { %8582 = vmatpush3.bf16.msra.mxu1 %v9566_v43 }
 0x443   : > { %8583 = vmatprep.subr.bf16.mxu1 %v9567_v16 }
 0x445   : > { %8548 = vmatmul.mubr.bf16.gmra.mrb[8].mxu1 %v10928_v18  ;;  %v4989_v18 = vld [vmem:[#allocation2 + $0x23] sm:$0xff] }
 0x446   : > { %8551 = vmatprep.mubr.bf16.mxu1 %v10935_v28  ;;  %8584 = vmatpush3.bf16.msra.mxu1 %v9567_v16  ;;  %v5024_v27 = vpack.c.bf16 %v4990_v3, %v4989_v18  ;;  %v4994_v28 = vld [vmem:[#allocation2 + $0x4b] sm:$0xff]  ;;  %v5035_v16 = vpack.c.bf16 %v10836_v48, %v5011_v5  ;;  %v5320_v48 = vld [vmem:[#allocation2 + $0x1c] sm:$0xff] }
 0x447   : > { %8585 = vmatprep.subr.bf16.mxu1 %v9568_v44  ;;  %v5355_v11 = vpack.c.bf16 %v5320_v48, %v5319_v50  ;;  %v9582_v3 = vld [vmem:[%s11332_s2 + $0x198] sm:$0xff]   ;;  %v9583_v18 = vld [vmem:[%s11332_s2 + $0x1a0] sm:$0xff]  }
 0x448   : > { %v5352_v5 = vld [vmem:[#allocation2 + $0x11c] sm:$0xff] }
 0x449   : > { %v9590_v50 = vld [vmem:[%s11332_s2 + $0x1d8] sm:$0xff]   ;;  %v9591_v48 = vld [vmem:[%s11332_s2 + $0x1e0] sm:$0xff]  }
 0x44a   : > { %8586 = vmatpush3.bf16.msra.mxu1 %v9568_v44  ;;  %v5014_v44 = vld [vmem:[#allocation2 + $0xeb] sm:$0xff] }
 0x44b   : > { %8587 = vmatprep.subr.bf16.mxu1 %v9569_v57 }
 0x44d   : > { %8552 = vmatmul.mubr.bf16.gmra.mrb[12].mxu1 %v10940_v4  ;;  %v4993_v4 = vld [vmem:[#allocation2 + $0x43] sm:$0xff] }
 0x44e   : > { %8555 = vmatprep.mubr.bf16.mxu1 %v4368_v46  ;;  %8588 = vmatpush3.bf16.msra.mxu1 %v9569_v57  ;;  %v5026_v17 = vpack.c.bf16 %v4994_v28, %v4993_v4  ;;  %v4998_v46 = vld [vmem:[#allocation2 + $0x6b] sm:$0xff]  ;;  %v5013_v57 = vld [vmem:[#allocation2 + $0xe3] sm:$0xff] }
 0x44f   : > { %8589 = vmatprep.subr.bf16.mxu1 %v9570_v63  ;;  %v5028_v20 = vpack.c.bf16 %v4998_v46, %v4997_v1  ;;  %v9584_v28 = vld [vmem:[%s11332_s2 + $0x1a8] sm:$0xff]   ;;  %v9585_v4 = vld [vmem:[%s11332_s2 + $0x1b0] sm:$0xff]   ;;  %v9586_v46 = vld [vmem:[%s11332_s2 + $0x1b8] sm:$0xff]  }
 0x450   : > { %v9587_v1 = vld [vmem:[%s11332_s2 + $0x1c0] sm:$0xff]  }
 0x452   : > { %8590 = vmatpush3.bf16.msra.mxu1 %v9570_v63  ;;  %v5036_v63 = vpack.c.bf16 %v5014_v44, %v5013_v57  ;;  %v5353_v44 = vld [vmem:[#allocation2 + $0x124] sm:$0xff]  ;;  %v5354_v57 = vld [vmem:[#allocation2 + $0x12c] sm:$0xff] }
 0x453   : > { %8627 = vmatprep.subr.bf16.mxu1 %v9571_v35 }
 0x455   : > { %8556 = vmatmul.mubr.bf16.gmra.mrb[16].mxu1 %v10947_v51  ;;  %v5000_v51 = vld [vmem:[#allocation2 + $0x7b] sm:$0xff] }
 0x456   : > { %8559 = vmatprep.mubr.bf16.mxu1 %v4370_v49  ;;  %v5029_v49 = vpack.c.bf16 %v5000_v51, %v4999_v39  ;;  %v5339_v39 = vld [vmem:[#allocation2 + $0xb4] sm:$0xff] }
 0x45d   : > { %8560 = vmatmul.mubr.bf16.gmra.mrb[20].mxu1 %v4371_v19  ;;  %v9577_v19 = vld [vmem:[%s11332_s2 + $0x170] sm:$0xff]  }
 0x45e   : > { %8563 = vmatprep.mubr.bf16.mxu1 %v4372_v10  ;;  %v5003_v10 = vld [vmem:[#allocation2 + $0x93] sm:$0xff] }
 0x45f   : > { %v5031_v47 = vpack.c.bf16 %v5004_v15, %v5003_v10  ;;  %v5342_v15 = vld [vmem:[#allocation2 + $0xcc] sm:$0xff]  ;;  %v5341_v10 = vld [vmem:[#allocation2 + $0xc4] sm:$0xff] }
 0x465   : > { %8564 = vmatmul.mubr.bf16.gmra.mrb[24].mxu1 %v4373_v56  ;;  %v9578_v56 = vld [vmem:[%s11332_s2 + $0x178] sm:$0xff]  }
 0x466   : > { %8567 = vmatprep.mubr.bf16.mxu1 %v4374_v40  ;;  %v5005_v40 = vld [vmem:[#allocation2 + $0xa3] sm:$0xff] }
 0x46d   : > { %8568 = vmatmul.mubr.bf16.gmra.mrb[28].mxu1 %v4375_v61  ;;  %v5032_v61 = vpack.c.bf16 %v5006_v62, %v5005_v40  ;;  %v5347_v62 = vld [vmem:[#allocation2 + $0xf4] sm:$0xff]  ;;  %v5345_v40 = vld [vmem:[#allocation2 + $0xe4] sm:$0xff] }
 0x46e   : > { %8571 = vmatprep.mubr.bf16.mxu1 %v4376_v24  ;;  %v5010_v24 = vld [vmem:[#allocation2 + $0xcb] sm:$0xff]  ;;  %v5369_v41 = vpack.c.bf16 %v5348_v42, %v5347_v62  ;;  %v6005_v42 = vld [vmem:[#allocation2 + $0xd5] sm:$0xff] }
 0x46f   : > { %v5034_v43 = vpack.c.bf16 %v5010_v24, %v5009_v26  ;;  %v5351_v24 = vld [vmem:[#allocation2 + $0x114] sm:$0xff]  ;;  %v5349_v26 = vld [vmem:[#allocation2 + $0x104] sm:$0xff] }
 0x475   : > { %8572 = vmatmul.mubr.bf16.gmra.mrb[32].mxu1 %v4708_v25  ;;  %v5322_v25 = vld [vmem:[#allocation2 + $0x2c] sm:$0xff] }
 0x476   : > { %8591 = vmatprep.mubr.bf16.mxu1 %v5023_v58 }
 0x47d   : > { %8592 = vmatmul.mubr.bf16.vlgmr.msra.gmra.mrb[0].mxu1 %v5024_v27  ;;  %v5330_v27 = vld [vmem:[#allocation2 + $0x6c] sm:$0xff] }
 0x47e   : > { %8595 = vmatprep.mubr.bf16.mxu1 %v5025_v37  ;;  %8628 = vmatpush3.bf16.msra.mxu1 %v9571_v35  ;;  %v5017_v35 = vld [vmem:[#allocation2 + $0x103] sm:$0xff] }
 0x47f   : > { %8629 = vmatprep.subr.bf16.mxu1 %v9572_v55  ;;  %v5038_v32 = vpack.c.bf16 %v10845_v54, %v5017_v35  ;;  %v9580_v54 = vld [vmem:[%s11332_s2 + $0x188] sm:$0xff]  }
 0x480   : > { %v5329_v37 = vld [vmem:[#allocation2 + $0x64] sm:$0xff] }
 0x481   : > { %v9588_v35 = vld [vmem:[%s11332_s2 + $0x1c8] sm:$0xff]  }
 0x482   : > { %8630 = vmatpush3.bf16.msra.mxu1 %v9572_v55  ;;  %v5332_v55 = vld [vmem:[#allocation2 + $0x7c] sm:$0xff] }
 0x483   : > { %8631 = vmatprep.subr.bf16.mxu1 %v9573_v22  ;;  %v11047_v0 = vpack.c.bf16 %v5332_v55, %v5331_v36  ;;  %v5989_v36 = vld [vmem:[#allocation2 + $0x55] sm:$0xff]  ;;  %v5990_v55 = vld [vmem:[#allocation2 + $0x5d] sm:$0xff] }
 0x485   : > { %8596 = vmatmul.mubr.bf16.gmra.mrb[4].mxu1 %v5026_v17  ;;  %v5334_v17 = vld [vmem:[#allocation2 + $0x8c] sm:$0xff] }
 0x486   : > { %8599 = vmatprep.mubr.bf16.mxu1 %v5027_v6  ;;  %8632 = vmatpush3.bf16.msra.mxu1 %v9573_v22  ;;  %v11042_v22 = vpack.c.bf16 %v5330_v27, %v5329_v37  ;;  %v5333_v6 = vld [vmem:[#allocation2 + $0x84] sm:$0xff]  ;;  %v9597_v27 = vld [vmem:[%s11332_s2 + $0x210] sm:$0xff]  }
 0x487   : > { %8633 = vmatprep.subr.bf16.mxu1 %v9574_v31  ;;  %v5992_v37 = vld [vmem:[#allocation2 + $0x6d] sm:$0xff] }
 0x48a   : > { %8634 = vmatpush3.bf16.msra.mxu1 %v9574_v31  ;;  %v5336_v31 = vld [vmem:[#allocation2 + $0x9c] sm:$0xff] }
 0x48b   : > { %8635 = vmatprep.subr.bf16.mxu1 %v9575_v23  ;;  %v11059_v51 = vpack.c.bf16 %v5336_v31, %v5335_v53  ;;  %v5993_v53 = vld [vmem:[#allocation2 + $0x75] sm:$0xff]  ;;  %v5994_v31 = vld [vmem:[#allocation2 + $0x7d] sm:$0xff] }
 0x48d   : > { %8600 = vmatmul.mubr.bf16.gmra.mrb[8].mxu1 %v5028_v20  ;;  %v5338_v20 = vld [vmem:[#allocation2 + $0xac] sm:$0xff] }
 0x48e   : > { %8603 = vmatprep.mubr.bf16.mxu1 %v5029_v49  ;;  %8636 = vmatpush3.bf16.msra.mxu1 %v9575_v23  ;;  %v11054_v23 = vpack.c.bf16 %v5334_v17, %v5333_v6  ;;  %v5337_v49 = vld [vmem:[#allocation2 + $0xa4] sm:$0xff]  ;;  %v5996_v6 = vld [vmem:[#allocation2 + $0x8d] sm:$0xff] }
 0x48f   : > { %8637 = vmatprep.subr.bf16.mxu1 %v9576_v8  ;;  %v9599_v17 = vld [vmem:[%s11332_s2 + $0x220] sm:$0xff]  }
 0x492   : > { %8638 = vmatpush3.bf16.msra.mxu1 %v9576_v8  ;;  %v5340_v8 = vld [vmem:[#allocation2 + $0xbc] sm:$0xff] }
 0x493   : > { %8639 = vmatprep.subr.bf16.mxu1 %v9577_v19  ;;  %v11066_v52 = vpack.c.bf16 %v5340_v8, %v5339_v39  ;;  %v5997_v39 = vld [vmem:[#allocation2 + $0x95] sm:$0xff]  ;;  %v5998_v8 = vld [vmem:[#allocation2 + $0x9d] sm:$0xff] }
 0x495   : > { %8604 = vmatmul.mubr.bf16.gmra.mrb[12].mxu1 %v5030_v34  ;;  %v5344_v34 = vld [vmem:[#allocation2 + $0xdc] sm:$0xff] }
 0x496   : > { %8607 = vmatprep.mubr.bf16.mxu1 %v5031_v47  ;;  %8640 = vmatpush3.bf16.msra.mxu1 %v9577_v19  ;;  %v5364_v19 = vpack.c.bf16 %v5338_v20, %v5337_v49  ;;  %v5367_v47 = vpack.c.bf16 %v5344_v34, %v5343_v21  ;;  %v9601_v20 = vld [vmem:[%s11332_s2 + $0x230] sm:$0xff]  }
 0x497   : > { %8641 = vmatprep.subr.bf16.mxu1 %v9578_v56  ;;  %v6000_v49 = vld [vmem:[#allocation2 + $0xad] sm:$0xff]  ;;  %v6001_v34 = vld [vmem:[#allocation2 + $0xb5] sm:$0xff] }
 0x49a   : > { %8642 = vmatpush3.bf16.msra.mxu1 %v9578_v56  ;;  %v5366_v56 = vpack.c.bf16 %v5342_v15, %v5341_v10  ;;  %v9602_v15 = vld [vmem:[%s11332_s2 + $0x238] sm:$0xff]  }
 0x49b   : > { %8679 = vmatprep.subr.bf16.mxu1 %v9579_v33  ;;  %v6002_v10 = vld [vmem:[#allocation2 + $0xbd] sm:$0xff] }
 0x49d   : > { %8608 = vmatmul.mubr.bf16.gmra.mrb[16].mxu1 %v5032_v61 }
 0x49e   : > { %8611 = vmatprep.mubr.bf16.mxu1 %v5033_v59  ;;  %v5350_v59 = vld [vmem:[#allocation2 + $0x10c] sm:$0xff] }
 0x4a5   : > { %8612 = vmatmul.mubr.bf16.gmra.mrb[20].mxu1 %v5034_v43  ;;  %v5370_v43 = vpack.c.bf16 %v5350_v59, %v5349_v26  ;;  %v6007_v59 = vld [vmem:[#allocation2 + $0xe5] sm:$0xff]  ;;  %v6010_v26 = vld [vmem:[#allocation2 + $0xfd] sm:$0xff] }
 0x4a6   : > { %8615 = vmatprep.mubr.bf16.mxu1 %v5035_v16  ;;  %v5371_v16 = vpack.c.bf16 %v5352_v5, %v5351_v24  ;;  %v6009_v5 = vld [vmem:[#allocation2 + $0xf5] sm:$0xff] }
 0x4ad   : > { %8616 = vmatmul.mubr.bf16.gmra.mrb[24].mxu1 %v5036_v63  ;;  %v5372_v63 = vpack.c.bf16 %v5354_v57, %v5353_v44  ;;  %v6011_v44 = vld [vmem:[#allocation2 + $0x105] sm:$0xff] }
 0x4ae   : > { %8619 = vmatprep.mubr.bf16.mxu1 %v5037_v12  ;;  %v11018_v12 = vpack.c.bf16 %v5322_v25, %v5321_v2  ;;  %v9593_v25 = vld [vmem:[%s11332_s2 + $0x1f0] sm:$0xff]  }
 0x4af   : > { %v5685_v2 = vld [vmem:[#allocation2 + $0x134] sm:$0xff] }
 0x4b5   : > { %8620 = vmatmul.mubr.bf16.gmra.mrb[28].mxu1 %v5038_v32  ;;  %v9589_v32 = vld [vmem:[%s11332_s2 + $0x1d0] sm:$0xff]  }
 0x4b6   : > { %8623 = vmatprep.mubr.bf16.mxu1 %v5039_v30  ;;  %v5325_v30 = vld [vmem:[#allocation2 + $0x44] sm:$0xff] }
 0x4b7   : > { %v11030_v58 = vpack.c.bf16 %v5326_v14, %v5325_v30  ;;  %v5988_v30 = vld [vmem:[#allocation2 + $0x4d] sm:$0xff] }
 0x4bd   : > { %8624 = vmatmul.mubr.bf16.gmra.mrb[32].mxu1 %v5040_v29  ;;  %v5328_v29 = vld [vmem:[#allocation2 + $0x5c] sm:$0xff] }
 0x4be   : > { %8643 = vmatprep.mubr.bf16.mxu1 %v5355_v11  ;;  %v11035_v9 = vpack.c.bf16 %v5328_v29, %v5327_v45  ;;  %v9592_v11 = vld [vmem:[%s11332_s2 + $0x1e8] sm:$0xff]   ;;  %v5985_v45 = vld [vmem:[#allocation2 + $0x35] sm:$0xff]  ;;  %v5986_v29 = vld [vmem:[#allocation2 + $0x3d] sm:$0xff] }
 0x4c5   : > { %8644 = vmatmul.mubr.bf16.vlgmr.msra.gmra.mrb[0].mxu1 %v11018_v12 }
 0x4c6   : > { %8647 = vmatprep.mubr.bf16.mxu1 %v11023_v13  ;;  %8680 = vmatpush3.bf16.msra.mxu1 %v9579_v33  ;;  %v5346_v33 = vld [vmem:[#allocation2 + $0xec] sm:$0xff] }
 0x4c7   : > { %8681 = vmatprep.subr.bf16.mxu1 %v9580_v54  ;;  %v5368_v61 = vpack.c.bf16 %v5346_v33, %v5345_v40  ;;  %v6003_v33 = vld [vmem:[#allocation2 + $0xc5] sm:$0xff]  ;;  %v6006_v40 = vld [vmem:[#allocation2 + $0xdd] sm:$0xff] }
 0x4ca   : > { %8682 = vmatpush3.bf16.msra.mxu1 %v9580_v54 }
 0x4cb   : > { %8683 = vmatprep.subr.bf16.mxu1 %v9581_v38 }
 0x4cd   : > { %8648 = vmatmul.mubr.bf16.gmra.mrb[4].mxu1 %v11030_v58 }
 0x4ce   : > { %8651 = vmatprep.mubr.bf16.mxu1 %v11035_v9  ;;  %8684 = vmatpush3.bf16.msra.mxu1 %v9581_v38  ;;  %v5983_v38 = vld [vmem:[#allocation2 + $0x25] sm:$0xff] }
 0x4cf   : > { %8685 = vmatprep.subr.bf16.mxu1 %v9582_v3 }
 0x4d2   : > { %8686 = vmatpush3.bf16.msra.mxu1 %v9582_v3  ;;  %v5987_v3 = vld [vmem:[#allocation2 + $0x45] sm:$0xff] }
 0x4d3   : > { %8687 = vmatprep.subr.bf16.mxu1 %v9583_v18 }
 0x4d5   : > { %8652 = vmatmul.mubr.bf16.gmra.mrb[8].mxu1 %v11042_v22 }
 0x4d6   : > { %8655 = vmatprep.mubr.bf16.mxu1 %v11047_v0  ;;  %8688 = vmatpush3.bf16.msra.mxu1 %v9583_v18  ;;  %v6021_v18 = vpack.c.bf16 %v5988_v30, %v5987_v3  ;;  %v6322_v3 = vld [vmem:[#allocation2 + $0x5e] sm:$0xff] }
 0x4d7   : > { %8689 = vmatprep.subr.bf16.mxu1 %v9584_v28 }
 0x4da   : > { %8690 = vmatpush3.bf16.msra.mxu1 %v9584_v28  ;;  %v5991_v28 = vld [vmem:[#allocation2 + $0x65] sm:$0xff] }
 0x4db   : > { %8691 = vmatprep.subr.bf16.mxu1 %v9585_v4 }
 0x4dd   : > { %8656 = vmatmul.mubr.bf16.gmra.mrb[12].mxu1 %v11054_v23 }
 0x4de   : > { %8659 = vmatprep.mubr.bf16.mxu1 %v11059_v51  ;;  %8692 = vmatpush3.bf16.msra.mxu1 %v9585_v4  ;;  %v6023_v4 = vpack.c.bf16 %v5992_v37, %v5991_v28  ;;  %v6326_v37 = vld [vmem:[#allocation2 + $0x7e] sm:$0xff] }
 0x4df   : > { %8693 = vmatprep.subr.bf16.mxu1 %v9586_v46 }
 0x4e2   : > { %8694 = vmatpush3.bf16.msra.mxu1 %v9586_v46  ;;  %v5995_v46 = vld [vmem:[#allocation2 + $0x85] sm:$0xff] }
 0x4e3   : > { %8731 = vmatprep.subr.bf16.mxu1 %v9587_v1 }
 0x4e5   : > { %8660 = vmatmul.mubr.bf16.gmra.mrb[16].mxu1 %v5364_v19 }
 0x4e6   : > { %8663 = vmatprep.mubr.bf16.mxu1 %v11066_v52 }
 0x4ed   : > { %8664 = vmatmul.mubr.bf16.gmra.mrb[20].mxu1 %v5366_v56 }
 0x4ee   : > { %8667 = vmatprep.mubr.bf16.mxu1 %v5367_v47 }
 0x4f5   : > { %8668 = vmatmul.mubr.bf16.gmra.mrb[24].mxu1 %v5368_v61 }
 0x4f6   : > { %8671 = vmatprep.mubr.bf16.mxu1 %v5369_v41 }
 0x4fd   : > { %8672 = vmatmul.mubr.bf16.gmra.mrb[28].mxu1 %v5370_v43 }
 0x4fe   : > { %8675 = vmatprep.mubr.bf16.mxu1 %v5371_v16 }
 0x505   : > { %8676 = vmatmul.mubr.bf16.gmra.mrb[32].mxu1 %v5372_v63 }
 0x506   : > { %8695 = vmatprep.mubr.bf16.mxu1 %v11018_v12  ;;  %v5686_v12 = vld [vmem:[#allocation2 + $0x13c] sm:$0xff] }
 0x507   : > { %v5704_v54 = vpack.c.bf16 %v5686_v12, %v5685_v2  ;;  %v6316_v2 = vld [vmem:[#allocation2 + $0x2e] sm:$0xff]  ;;  %v6315_v12 = vld [vmem:[#allocation2 + $0x26] sm:$0xff] }
 0x50d   : > { %8696 = vmatmul.mubr.bf16.vlgmr.msra.gmra.mrb[0].mxu1 %v11023_v13  ;;  %v5984_v13 = vld [vmem:[#allocation2 + $0x2d] sm:$0xff] }
 0x50e   : > { %8699 = vmatprep.mubr.bf16.mxu1 %v11030_v58  ;;  %8732 = vmatpush3.bf16.msra.mxu1 %v9587_v1  ;;  %v6019_v14 = vpack.c.bf16 %v5984_v13, %v5983_v38  ;;  %v6020_v58 = vpack.c.bf16 %v5986_v29, %v5985_v45  ;;  %v6025_v1 = vpack.c.bf16 %v5996_v6, %v5995_v46  ;;  %v6317_v13 = vld [vmem:[#allocation2 + $0x36] sm:$0xff]  ;;  %v6318_v38 = vld [vmem:[#allocation2 + $0x3e] sm:$0xff]  ;;  %v6319_v29 = vld [vmem:[#allocation2 + $0x46] sm:$0xff] }
 0x50f   : > { %8733 = vmatprep.subr.bf16.mxu1 %v9588_v35  ;;  %v6352_v45 = vpack.c.bf16 %v6318_v38, %v6317_v13 }
 0x512   : > { %8734 = vmatpush3.bf16.msra.mxu1 %v9588_v35  ;;  %v6014_v35 = vld [vmem:[#allocation2 + $0x11d] sm:$0xff] }
 0x513   : > { %8735 = vmatprep.subr.bf16.mxu1 %v9589_v32 }
 0x515   : > { %8700 = vmatmul.mubr.bf16.gmra.mrb[4].mxu1 %v11035_v9  ;;  %v9596_v9 = vld [vmem:[%s11332_s2 + $0x208] sm:$0xff]  }
 0x516   : > { %8703 = vmatprep.mubr.bf16.mxu1 %v11042_v22  ;;  %8736 = vmatpush3.bf16.msra.mxu1 %v9589_v32  ;;  %v6022_v22 = vpack.c.bf16 %v5990_v55, %v5989_v36  ;;  %v6015_v32 = vld [vmem:[#allocation2 + $0x125] sm:$0xff]  ;;  %v6325_v55 = vld [vmem:[#allocation2 + $0x76] sm:$0xff] }
 0x517   : > { %8737 = vmatprep.subr.bf16.mxu1 %v9590_v50  ;;  %v6356_v28 = vpack.c.bf16 %v6326_v37, %v6325_v55  ;;  %v9608_v55 = vld [vmem:[%s9807_s19 + $0x40] sm:$0xff] }
 0x518   : > { %v6739_v37 = vrot.slane %v9608_v55, 3 }
 0x51a   : > { %8738 = vmatpush3.bf16.msra.mxu1 %v9590_v50  ;;  %v6016_v50 = vld [vmem:[#allocation2 + $0x12d] sm:$0xff] }
 0x51b   : > { %8739 = vmatprep.subr.bf16.mxu1 %v9591_v48 }
 0x51d   : > { %8704 = vmatmul.mubr.bf16.gmra.mrb[8].mxu1 %v11047_v0  ;;  %v9598_v0 = vld [vmem:[%s11332_s2 + $0x218] sm:$0xff]  }
 0x51e   : > { %8707 = vmatprep.mubr.bf16.mxu1 %v11054_v23  ;;  %8740 = vmatpush3.bf16.msra.mxu1 %v9591_v48  ;;  %v6024_v23 = vpack.c.bf16 %v5994_v31, %v5993_v53  ;;  %v6330_v53 = vld [vmem:[#allocation2 + $0x9e] sm:$0xff]  ;;  %v6332_v31 = vld [vmem:[#allocation2 + $0xae] sm:$0xff] }
 0x51f   : > { %8741 = vmatprep.subr.bf16.mxu1 %v9592_v11 }
 0x522   : > { %8742 = vmatpush3.bf16.msra.mxu1 %v9592_v11  ;;  %v6035_v11 = vpack.c.bf16 %v6016_v50, %v6015_v32  ;;  %v9605_v50 = vld [vmem:[%s9807_s19 + $0x10] sm:$0xff] }
 0x523   : > { %8743 = vmatprep.subr.bf16.mxu1 %v9593_v25 }
 0x525   : > { %8708 = vmatmul.mubr.bf16.gmra.mrb[12].mxu1 %v11059_v51  ;;  %v9600_v51 = vld [vmem:[%s11332_s2 + $0x228] sm:$0xff]  }
 0x526   : > { %8711 = vmatprep.mubr.bf16.mxu1 %v5364_v19  ;;  %8744 = vmatpush3.bf16.msra.mxu1 %v9593_v25  ;;  %v6026_v19 = vpack.c.bf16 %v5998_v8, %v5997_v39  ;;  %v6017_v25 = vld [vmem:[#allocation2 + $0x135] sm:$0xff]  ;;  %v6335_v8 = vld [vmem:[#allocation2 + $0xc6] sm:$0xff] }
 0x527   : > { %8745 = vmatprep.subr.bf16.mxu1 %v9594_v60 }
 0x52a   : > { %8746 = vmatpush3.bf16.msra.mxu1 %v9594_v60  ;;  %v6018_v60 = vld [vmem:[#allocation2 + $0x13d] sm:$0xff] }
 0x52b   : > { %8783 = vmatprep.subr.bf16.mxu1 %v9595_v7 }
 0x52d   : > { %8712 = vmatmul.mubr.bf16.gmra.mrb[16].mxu1 %v11066_v52  ;;  %v5999_v52 = vld [vmem:[#allocation2 + $0xa5] sm:$0xff] }
 0x52e   : > { %8715 = vmatprep.mubr.bf16.mxu1 %v5366_v56  ;;  %v6027_v21 = vpack.c.bf16 %v6000_v49, %v5999_v52  ;;  %v6004_v56 = vld [vmem:[#allocation2 + $0xcd] sm:$0xff]  ;;  %v6338_v52 = vld [vmem:[#allocation2 + $0xde] sm:$0xff] }
 0x52f   : > { %v6029_v62 = vpack.c.bf16 %v6004_v56, %v6003_v33  ;;  %v6341_v56 = vld [vmem:[#allocation2 + $0xf6] sm:$0xff]  ;;  %v6344_v33 = vld [vmem:[#allocation2 + $0x10e] sm:$0xff] }
 0x535   : > { %8716 = vmatmul.mubr.bf16.gmra.mrb[20].mxu1 %v5367_v47  ;;  %v6028_v47 = vpack.c.bf16 %v6002_v10, %v6001_v34  ;;  %v6339_v34 = vld [vmem:[#allocation2 + $0xe6] sm:$0xff] }
 0x536   : > { %8719 = vmatprep.mubr.bf16.mxu1 %v5368_v61  ;;  %v6008_v61 = vld [vmem:[#allocation2 + $0xed] sm:$0xff] }
 0x537   : > { %v6031_v24 = vpack.c.bf16 %v6008_v61, %v6007_v59  ;;  %v6345_v61 = vld [vmem:[#allocation2 + $0x116] sm:$0xff]  ;;  %v6347_v59 = vld [vmem:[#allocation2 + $0x126] sm:$0xff] }
 0x53d   : > { %8720 = vmatmul.mubr.bf16.gmra.mrb[24].mxu1 %v5369_v41  ;;  %v6030_v41 = vpack.c.bf16 %v6006_v40, %v6005_v42  ;;  %v6343_v42 = vld [vmem:[#allocation2 + $0x106] sm:$0xff] }
 0x53e   : > { %8723 = vmatprep.mubr.bf16.mxu1 %v5370_v43  ;;  %v6012_v43 = vld [vmem:[#allocation2 + $0x10d] sm:$0xff]  ;;  %v6365_v40 = vpack.c.bf16 %v6344_v33, %v6343_v42  ;;  %v9612_v42 = vld [vmem:[%s9807_s19 + $0x60] sm:$0xff] }
 0x53f   : > { %v6033_v57 = vpack.c.bf16 %v6012_v43, %v6011_v44  ;;  %v6349_v43 = vld [vmem:[#allocation2 + $0x136] sm:$0xff] }
 0x545   : > { %8724 = vmatmul.mubr.bf16.gmra.mrb[28].mxu1 %v5371_v16  ;;  %v6032_v16 = vpack.c.bf16 %v6010_v26, %v6009_v5 }
 0x546   : > { %8727 = vmatprep.mubr.bf16.mxu1 %v5372_v63  ;;  %v6013_v63 = vld [vmem:[#allocation2 + $0x115] sm:$0xff] }
 0x547   : > { %v6034_v48 = vpack.c.bf16 %v6014_v35, %v6013_v63  ;;  %v9604_v35 = vld [vmem:[%s9807_s19 + $0x28] sm:$0xff] }
 0x548   : > { %v6733_v32 = vrot.slane %v9604_v35, 3 }
 0x54d   : > { %8728 = vmatmul.mubr.bf16.gmra.mrb[32].mxu1 %v5704_v54  ;;  %v6351_v54 = vpack.c.bf16 %v6316_v2, %v6315_v12 }
 0x54e   : > { %8747 = vmatprep.mubr.bf16.mxu1 %v6019_v14  ;;  %v6320_v14 = vld [vmem:[#allocation2 + $0x4e] sm:$0xff] }
 0x54f   : > { %v6353_v30 = vpack.c.bf16 %v6320_v14, %v6319_v29 }
 0x555   : > { %8748 = vmatmul.mubr.bf16.vlgmr.msra.gmra.mrb[0].mxu1 %v6020_v58  ;;  %v6321_v58 = vld [vmem:[#allocation2 + $0x56] sm:$0xff] }
 0x556   : > { %8751 = vmatprep.mubr.bf16.mxu1 %v6021_v18  ;;  %8784 = vmatpush3.bf16.msra.mxu1 %v9595_v7  ;;  %v6036_v7 = vpack.c.bf16 %v6018_v60, %v6017_v25  ;;  %v6354_v18 = vpack.c.bf16 %v6322_v3, %v6321_v58  ;;  %v11131_v60 = vld [vmem:[%s11334_s4] ss:$0 sm:$0xff] }
 0x557   : > { %8785 = vmatprep.subr.bf16.mxu1 %v9596_v9 }
 0x55a   : > { %8786 = vmatpush3.bf16.msra.mxu1 %v9596_v9  ;;  %v6324_v9 = vld [vmem:[#allocation2 + $0x6e] sm:$0xff] }
 0x55b   : > { %8787 = vmatprep.subr.bf16.mxu1 %v9597_v27 }
 0x55d   : > { %8752 = vmatmul.mubr.bf16.gmra.mrb[4].mxu1 %v6022_v22  ;;  %v6328_v22 = vld [vmem:[#allocation2 + $0x8e] sm:$0xff] }
 0x55e   : > { %8755 = vmatprep.mubr.bf16.mxu1 %v6023_v4  ;;  %8788 = vmatpush3.bf16.msra.mxu1 %v9597_v27  ;;  %v6323_v27 = vld [vmem:[#allocation2 + $0x66] sm:$0xff] }
 0x55f   : > { %8789 = vmatprep.subr.bf16.mxu1 %v9598_v0  ;;  %v6355_v36 = vpack.c.bf16 %v6324_v9, %v6323_v27 }
 0x562   : > { %8790 = vmatpush3.bf16.msra.mxu1 %v9598_v0  ;;  %v6327_v0 = vld [vmem:[#allocation2 + $0x86] sm:$0xff] }
 0x563   : > { %8791 = vmatprep.subr.bf16.mxu1 %v9599_v17  ;;  %v6357_v4 = vpack.c.bf16 %v6328_v22, %v6327_v0  ;;  %v9609_v22 = vld [vmem:[%s9807_s19 + $0x48] sm:$0xff] }
 0x565   : > { %8756 = vmatmul.mubr.bf16.gmra.mrb[8].mxu1 %v6024_v23  ;;  %v6331_v23 = vld [vmem:[#allocation2 + $0xa6] sm:$0xff] }
 0x566   : > { %8759 = vmatprep.mubr.bf16.mxu1 %v6025_v1  ;;  %8792 = vmatpush3.bf16.msra.mxu1 %v9599_v17  ;;  %v6329_v17 = vld [vmem:[#allocation2 + $0x96] sm:$0xff]  ;;  %v6359_v46 = vpack.c.bf16 %v6332_v31, %v6331_v23  ;;  %v6334_v1 = vld [vmem:[#allocation2 + $0xbe] sm:$0xff] }
 0x567   : > { %8793 = vmatprep.subr.bf16.mxu1 %v9600_v51  ;;  %v6358_v6 = vpack.c.bf16 %v6330_v53, %v6329_v17  ;;  %v9610_v17 = vld [vmem:[%s9807_s19 + $0x38] sm:$0xff]  ;;  %v9611_v23 = vld [vmem:[%s9807_s19 + $0x50] sm:$0xff] }
 0x568   : > { %v6737_v53 = vrot.slane %v9610_v17, 3 }
 0x56a   : > { %8794 = vmatpush3.bf16.msra.mxu1 %v9600_v51  ;;  %v6333_v51 = vld [vmem:[#allocation2 + $0xb6] sm:$0xff] }
 0x56b   : > { %8795 = vmatprep.subr.bf16.mxu1 %v9601_v20  ;;  %v6360_v39 = vpack.c.bf16 %v6334_v1, %v6333_v51 }
 0x56d   : > { %8760 = vmatmul.mubr.bf16.gmra.mrb[12].mxu1 %v6026_v19  ;;  %v6337_v19 = vld [vmem:[#allocation2 + $0xd6] sm:$0xff] }
 0x56e   : > { %8763 = vmatprep.mubr.bf16.mxu1 %v6027_v21  ;;  %8796 = vmatpush3.bf16.msra.mxu1 %v9601_v20  ;;  %v6336_v20 = vld [vmem:[#allocation2 + $0xce] sm:$0xff]  ;;  %v6362_v21 = vpack.c.bf16 %v6338_v52, %v6337_v19 }
 0x56f   : > { %8797 = vmatprep.subr.bf16.mxu1 %v9602_v15  ;;  %v6361_v49 = vpack.c.bf16 %v6336_v20, %v6335_v8 }
 0x572   : > { %8798 = vmatpush3.bf16.msra.mxu1 %v9602_v15  ;;  %v6340_v15 = vld [vmem:[#allocation2 + $0xee] sm:$0xff] }
 0x573   : > { %v6363_v10 = vpack.c.bf16 %v6340_v15, %v6339_v34 }
 0x575   : > { %8764 = vmatmul.mubr.bf16.gmra.mrb[16].mxu1 %v6028_v47  ;;  %v6342_v47 = vld [vmem:[#allocation2 + $0xfe] sm:$0xff] }
 0x576   : > { %8767 = vmatprep.mubr.bf16.mxu1 %v6029_v62  ;;  %v6364_v62 = vpack.c.bf16 %v6342_v47, %v6341_v56  ;;  %v6740_v47 = vsel %vm3005_vm5, %v6737_v53, %v6739_v37 }
 0x57d   : > { %8768 = vmatmul.mubr.bf16.gmra.mrb[20].mxu1 %v6030_v41  ;;  %v6346_v41 = vld [vmem:[#allocation2 + $0x11e] sm:$0xff] }
 0x57e   : > { %8771 = vmatprep.mubr.bf16.mxu1 %v6031_v24  ;;  %v6348_v24 = vld [vmem:[#allocation2 + $0x12e] sm:$0xff]  ;;  %v6366_v5 = vpack.c.bf16 %v6346_v41, %v6345_v61 }
 0x57f   : > { %v6367_v26 = vpack.c.bf16 %v6348_v24, %v6347_v59  ;;  %v9613_v61 = vld [vmem:[%s9807_s19 + $0x68] sm:$0xff] }
 0x580   : > { %v6749_v41 = vrot.slane %v9613_v61, 3 }
 0x585   : > { %8772 = vmatmul.mubr.bf16.gmra.mrb[24].mxu1 %v6032_v16  ;;  %v6350_v16 = vld [vmem:[#allocation2 + $0x13e] sm:$0xff] }
 0x586   : > { %8775 = vmatprep.mubr.bf16.mxu1 %v6033_v57  ;;  %v6368_v44 = vpack.c.bf16 %v6350_v16, %v6349_v43  ;;  %v9603_v57 = vld [vmem:[%s9807_s19 + $0x20] sm:$0xff] }
 0x587   : > { %v6731_v63 = vrot.slane %v9603_v57, 3 }
 0x58d   : > { %8776 = vmatmul.mubr.bf16.gmra.mrb[28].mxu1 %v6034_v48  ;;  %v6728_v48 = vrot.slane %v9605_v50, 3 }
 0x58e   : > { %8779 = vmatprep.mubr.bf16.mxu1 %v6035_v11  ;;  %v9606_v11 = vld [vmem:[%s9807_s19 + $0x18] sm:$0xff] }
 0x58f   : > { %v6729_v25 = vrot.slane %v9606_v11, 3 }
 0x591   : > { %v6730_v14 = vsel %vm3005_vm5, %v6728_v48, %v6729_v25 }
 0x595   : > { %8780 = vmatmul.mubr.bf16.gmra.mrb[32].mxu1 %v6036_v7  ;;  %v9607_v7 = vld [vmem:[%s9807_s19 + $0x30] sm:$0xff] }
 0x596   : > { %8799 = vmatprep.mubr.bf16.mxu1 %v6351_v54  ;;  %v6735_v2 = vrot.slane %v9607_v7, 3  ;;  %v6734_v54 = vsel %vm3005_vm5, %v6731_v63, %v6733_v32 }
 0x598   : > { %v6738_v19 = vsel %vm3005_vm5, %v6735_v2, %v6737_v53 }
 0x59d   : > { %8800 = vmatmul.mubr.bf16.vlgmr.msra.gmra.mrb[0].mxu1 %v6352_v45 }
 0x59e   : > { %8803 = vmatprep.mubr.bf16.mxu1 %v6353_v30  ;;  %v6736_v30 = vsel %vm3005_vm5, %v6733_v32, %v6735_v2 }
 0x5a5   : > { %8804 = vmatmul.mubr.bf16.gmra.mrb[4].mxu1 %v6354_v18  ;;  %v6732_v18 = vsel %vm3005_vm5, %v6729_v25, %v6731_v63 }
 0x5a6   : > { %8807 = vmatprep.mubr.bf16.mxu1 %v6355_v36 }
 0x5ad   : > { %8808 = vmatmul.mubr.bf16.gmra.mrb[8].mxu1 %v6356_v28  ;;  %v6741_v28 = vrot.slane %v9609_v22, 3 }
 0x5ae   : > { %8811 = vmatprep.mubr.bf16.mxu1 %v6357_v4 }
 0x5b5   : > { %8812 = vmatmul.mubr.bf16.gmra.mrb[12].mxu1 %v6358_v6 }
 0x5b6   : > { %8815 = vmatprep.mubr.bf16.mxu1 %v6359_v46  ;;  %v6743_v46 = vrot.slane %v9611_v23, 3 }
 0x5bd   : > { %8816 = vmatmul.mubr.bf16.gmra.mrb[16].mxu1 %v6360_v39  ;;  %v6742_v39 = vsel %vm3005_vm5, %v6739_v37, %v6741_v28 }
 0x5be   : > { %8819 = vmatprep.mubr.bf16.mxu1 %v6361_v49 }
 0x5c5   : > { %8820 = vmatmul.mubr.bf16.gmra.mrb[20].mxu1 %v6362_v21  ;;  %v6744_v21 = vsel %vm3005_vm5, %v6741_v28, %v6743_v46  ;;  %v9619_v28 = vld [vmem:[%s9807_s19 + $0x90] sm:$0xff] }
 0x5c6   : > { %8823 = vmatprep.mubr.bf16.mxu1 %v6363_v10 }
 0x5cd   : > { %8824 = vmatmul.mubr.bf16.gmra.mrb[24].mxu1 %v6364_v62 }
 0x5ce   : > { %8827 = vmatprep.mubr.bf16.mxu1 %v6365_v40  ;;  %v6747_v40 = vrot.slane %v9612_v42, 3 }
 0x5d0   : > { %v6750_v50 = vsel %vm3005_vm5, %v6747_v40, %v6749_v41 }
 0x5d5   : > { %8828 = vmatmul.mubr.bf16.gmra.mrb[28].mxu1 %v6366_v5  ;;  %v9614_v5 = vld [vmem:[%s9807_s19 + $0x58] sm:$0xff] }
 0x5d6   : > { %8831 = vmatprep.mubr.bf16.mxu1 %v6367_v26  ;;  %v6745_v26 = vrot.slane %v9614_v5, 3 }
 0x5d8   : > { %v6746_v25 = vsel %vm3005_vm5, %v6743_v46, %v6745_v26 }
 0x5dd   : > { %8832 = vmatmul.mubr.bf16.gmra.mrb[32].mxu1 %v6368_v44  ;;  %v9615_v44 = vld [vmem:[%s9807_s19 + $0x70] sm:$0xff] }
 0x5de   : > { %v6751_v57 = vrot.slane %v9615_v44, 3 }
 0x670   : > { %v8801_v12 = vpop.f32.mrb[0].mxu1 }
 0x671   : > { %v6656_v13 = vadd.f32 %v8801_v12, %v11131_v60  ;;  %v6468_v38 = vpop.f32.mrb[1].mxu1  ;;  %v6752_v12 = vsel %vm3005_vm5, %v6749_v41, %v6751_v57  ;;  %v9623_v41 = vld [vmem:[%s9807_s19 + $0xb0] sm:$0xff] }
 0x672   : > { %v6654_v45 = vadd.f32 %v11131_v60, %v6468_v38  ;;  %v8802_v29 = vpop.f32.mrb[2].mxu1 }
 0x673   : > { %v6839_v58 = vadd.f32 %v6734_v54, %v6656_v13  ;;  %v6657_v3 = vadd.f32 %v8802_v29, %v11131_v60  ;;  %v6471_v9 = vpop.f32.mrb[3].mxu1 }
 0x674   : > { %v6837_v27 = vadd.f32 %v6730_v14, %v6654_v45  ;;  %v6655_v36 = vadd.f32 %v11131_v60, %v6471_v9  ;;  %v6748_v14 = vsel %vm3005_vm5, %v6745_v26, %v6747_v40 }
 0x675   : > { %v6875_v0 = vmax.f32 %v6839_v58, 0.0  ;;  %v6840_v4 = vadd.f32 %v6736_v30, %v6657_v3  ;;  %v9616_v30 = vld [vmem:[%s9807_s19 + $0x80] sm:$0xff]  ;;  %v9617_v3 = vld [vmem:[%s9807_s19 + $0x88] sm:$0xff] }
 0x676   : > { %v6873_v31 = vmax.f32 %v6837_v27, 0.0  ;;  %v6838_v6 = vadd.f32 %v6732_v18, %v6655_v36  ;;  %v6755_v58 = vrot.slane %v9616_v30, 3  ;;  %v6757_v9 = vrot.slane %v9617_v3, 3  ;;  %v9618_v36 = vld [vmem:[%s9807_s19 + $0x78] sm:$0xff] }
 0x677   : > { %6911 = vst [vmem:[%s11148_s15 + $0x10] sm:$0xff] %v6875_v0  ;;  %v6876_v51 = vmax.f32 %v6840_v4, 0.0  ;;  %v6753_v55 = vrot.slane %v9618_v36, 3  ;;  %v6759_v0 = vrot.slane %v9619_v28, 3 }
 0x678   : > { %6909 = vst [vmem:[%s11148_s15] sm:$0xff] %v6873_v31  ;;  %v6874_v1 = vmax.f32 %v6838_v6, 0.0  ;;  %v8805_v20 = vpop.f32.mrb[4].mxu1  ;;  %v6758_v31 = vsel %vm3005_vm5, %v6755_v58, %v6757_v9 }
 0x679   : > { %6912 = vst [vmem:[%s11148_s15 + $0x18] sm:$0xff] %v6876_v51  ;;  %v6660_v8 = vadd.f32 %v8805_v20, %v11131_v60  ;;  %v6484_v49 = vpop.f32.mrb[5].mxu1  ;;  %v6754_v46 = vsel %vm3005_vm5, %v6751_v57, %v6753_v55  ;;  %v6760_v20 = vsel %vm3005_vm5, %v6757_v9, %v6759_v0  ;;  %v9627_v9 = vld [vmem:[%s9807_s19 + $0xd0] sm:$0xff] }
 0x67a   : > { %6910 = vst [vmem:[%s11148_s15 + $0x8] sm:$0xff] %v6874_v1  ;;  %v6658_v52 = vadd.f32 %v11131_v60, %v6484_v49  ;;  %v8806_v15 = vpop.f32.mrb[6].mxu1 }
 0x67b   : > { %v6843_v34 = vadd.f32 %v6742_v39, %v6660_v8  ;;  %v6661_v10 = vadd.f32 %v8806_v15, %v11131_v60  ;;  %v6487_v56 = vpop.f32.mrb[7].mxu1 }
 0x67c   : > { %v6841_v33 = vadd.f32 %v6738_v19, %v6658_v52  ;;  %v6659_v62 = vadd.f32 %v11131_v60, %v6487_v56  ;;  %v6756_v19 = vsel %vm3005_vm5, %v6753_v55, %v6755_v58 }
 0x67d   : > { %v6879_v59 = vmax.f32 %v6843_v34, 0.0  ;;  %v6844_v24 = vadd.f32 %v6744_v21, %v6661_v10  ;;  %v9620_v21 = vld [vmem:[%s9807_s19 + $0xa0] sm:$0xff]  ;;  %v9621_v10 = vld [vmem:[%s9807_s19 + $0xa8] sm:$0xff] }
 0x67e   : > { %v6877_v43 = vmax.f32 %v6841_v33, 0.0  ;;  %v6842_v16 = vadd.f32 %v6740_v47, %v6659_v62  ;;  %v6763_v34 = vrot.slane %v9620_v21, 3  ;;  %v6765_v56 = vrot.slane %v9621_v10, 3  ;;  %v9622_v62 = vld [vmem:[%s9807_s19 + $0x98] sm:$0xff] }
 0x67f   : > { %6915 = vst [vmem:[%s11148_s15 + $0x30] sm:$0xff] %v6879_v59  ;;  %v6880_v63 = vmax.f32 %v6844_v24, 0.0  ;;  %v6761_v42 = vrot.slane %v9622_v62, 3  ;;  %v6767_v59 = vrot.slane %v9623_v41, 3 }
 0x680   : > { %6913 = vst [vmem:[%s11148_s15 + $0x20] sm:$0xff] %v6877_v43  ;;  %v6878_v35 = vmax.f32 %v6842_v16, 0.0  ;;  %v8809_v32 = vpop.f32.mrb[8].mxu1  ;;  %v6766_v43 = vsel %vm3005_vm5, %v6763_v34, %v6765_v56 }
 0x681   : > { %6916 = vst [vmem:[%s11148_s15 + $0x38] sm:$0xff] %v6880_v63  ;;  %v6664_v48 = vadd.f32 %v8809_v32, %v11131_v60  ;;  %v6500_v11 = vpop.f32.mrb[9].mxu1  ;;  %v6762_v57 = vsel %vm3005_vm5, %v6759_v0, %v6761_v42  ;;  %v6768_v32 = vsel %vm3005_vm5, %v6765_v56, %v6767_v59  ;;  %v9631_v56 = vld [vmem:[%s9807_s19 + $0xf0] sm:$0xff] }
 0x682   : > { %6914 = vst [vmem:[%s11148_s15 + $0x28] sm:$0xff] %v6878_v35  ;;  %v6662_v7 = vadd.f32 %v11131_v60, %v6500_v11  ;;  %v8810_v2 = vpop.f32.mrb[10].mxu1 }
 0x683   : > { %v6847_v54 = vadd.f32 %v6750_v50, %v6664_v48  ;;  %v6665_v13 = vadd.f32 %v8810_v2, %v11131_v60  ;;  %v6503_v38 = vpop.f32.mrb[11].mxu1 }
 0x684   : > { %v6845_v45 = vadd.f32 %v6746_v25, %v6662_v7  ;;  %v6663_v29 = vadd.f32 %v11131_v60, %v6503_v38  ;;  %v6764_v25 = vsel %vm3005_vm5, %v6761_v42, %v6763_v34 }
 0x685   : > { %v6883_v18 = vmax.f32 %v6847_v54, 0.0  ;;  %v6848_v27 = vadd.f32 %v6752_v12, %v6665_v13  ;;  %v9624_v12 = vld [vmem:[%s9807_s19 + $0xc0] sm:$0xff]  ;;  %v9625_v13 = vld [vmem:[%s9807_s19 + $0xc8] sm:$0xff] }
 0x686   : > { %v6881_v37 = vmax.f32 %v6845_v45, 0.0  ;;  %v6846_v22 = vadd.f32 %v6748_v14, %v6663_v29  ;;  %v6771_v54 = vrot.slane %v9624_v12, 3  ;;  %v6773_v38 = vrot.slane %v9625_v13, 3  ;;  %v9626_v29 = vld [vmem:[%s9807_s19 + $0xb8] sm:$0xff] }
 0x687   : > { %6919 = vst [vmem:[%s11148_s15 + $0x50] sm:$0xff] %v6883_v18  ;;  %v6884_v4 = vmax.f32 %v6848_v27, 0.0  ;;  %v6769_v30 = vrot.slane %v9626_v29, 3  ;;  %v6775_v18 = vrot.slane %v9627_v9, 3 }
 0x688   : > { %6917 = vst [vmem:[%s11148_s15 + $0x40] sm:$0xff] %v6881_v37  ;;  %v6882_v17 = vmax.f32 %v6846_v22, 0.0  ;;  %v8813_v53 = vpop.f32.mrb[12].mxu1  ;;  %v6774_v37 = vsel %vm3005_vm5, %v6771_v54, %v6773_v38 }
 0x689   : > { %6920 = vst [vmem:[%s11148_s15 + $0x58] sm:$0xff] %v6884_v4  ;;  %v6668_v6 = vadd.f32 %v8813_v53, %v11131_v60  ;;  %v6516_v23 = vpop.f32.mrb[13].mxu1  ;;  %v6770_v0 = vsel %vm3005_vm5, %v6767_v59, %v6769_v30  ;;  %v6776_v53 = vsel %vm3005_vm5, %v6773_v38, %v6775_v18  ;;  %v9635_v38 = vld [vmem:[%s9807_s19 + $0x110] sm:$0xff] }
 0x68a   : > { %6918 = vst [vmem:[%s11148_s15 + $0x48] sm:$0xff] %v6882_v17  ;;  %v6666_v51 = vadd.f32 %v11131_v60, %v6516_v23  ;;  %v8814_v1 = vpop.f32.mrb[14].mxu1 }
 0x68b   : > { %v6851_v39 = vadd.f32 %v6758_v31, %v6668_v6  ;;  %v6669_v8 = vadd.f32 %v8814_v1, %v11131_v60  ;;  %v6519_v49 = vpop.f32.mrb[15].mxu1 }
 0x68c   : > { %v6849_v52 = vadd.f32 %v6754_v46, %v6666_v51  ;;  %v6667_v15 = vadd.f32 %v11131_v60, %v6519_v49  ;;  %v6772_v46 = vsel %vm3005_vm5, %v6769_v30, %v6771_v54 }
 0x68d   : > { %v6887_v47 = vmax.f32 %v6851_v39, 0.0  ;;  %v6852_v33 = vadd.f32 %v6760_v20, %v6669_v8  ;;  %v9628_v20 = vld [vmem:[%s9807_s19 + $0xe0] sm:$0xff]  ;;  %v9629_v8 = vld [vmem:[%s9807_s19 + $0xe8] sm:$0xff] }
 0x68e   : > { %v6885_v40 = vmax.f32 %v6849_v52, 0.0  ;;  %v6850_v61 = vadd.f32 %v6756_v19, %v6667_v15  ;;  %v6779_v39 = vrot.slane %v9628_v20, 3  ;;  %v6781_v49 = vrot.slane %v9629_v8, 3  ;;  %v9630_v15 = vld [vmem:[%s9807_s19 + $0xd8] sm:$0xff] }
 0x68f   : > { %6923 = vst [vmem:[%s11148_s15 + $0x70] sm:$0xff] %v6887_v47  ;;  %v6888_v24 = vmax.f32 %v6852_v33, 0.0  ;;  %v6777_v21 = vrot.slane %v9630_v15, 3  ;;  %v6783_v47 = vrot.slane %v9631_v56, 3 }
 0x690   : > { %6921 = vst [vmem:[%s11148_s15 + $0x60] sm:$0xff] %v6885_v40  ;;  %v6886_v5 = vmax.f32 %v6850_v61, 0.0  ;;  %v8817_v26 = vpop.f32.mrb[16].mxu1  ;;  %v6782_v40 = vsel %vm3005_vm5, %v6779_v39, %v6781_v49 }
 0x691   : > { %6924 = vst [vmem:[%s11148_s15 + $0x78] sm:$0xff] %v6888_v24  ;;  %v6672_v16 = vadd.f32 %v8817_v26, %v11131_v60  ;;  %v6532_v44 = vpop.f32.mrb[17].mxu1  ;;  %v6778_v59 = vsel %vm3005_vm5, %v6775_v18, %v6777_v21  ;;  %v6784_v26 = vsel %vm3005_vm5, %v6781_v49, %v6783_v47  ;;  %v9639_v49 = vld [vmem:[%s9807_s19 + $0x130] sm:$0xff] }
 0x692   : > { %6922 = vst [vmem:[%s11148_s15 + $0x68] sm:$0xff] %v6886_v5  ;;  %v6670_v63 = vadd.f32 %v11131_v60, %v6532_v44  ;;  %v8818_v35 = vpop.f32.mrb[18].mxu1 }
 0x693   : > { %v6855_v50 = vadd.f32 %v6766_v43, %v6672_v16  ;;  %v6673_v48 = vadd.f32 %v8818_v35, %v11131_v60  ;;  %v6535_v11 = vpop.f32.mrb[19].mxu1 }
 0x694   : > { %v6853_v7 = vadd.f32 %v6762_v57, %v6670_v63  ;;  %v6671_v2 = vadd.f32 %v11131_v60, %v6535_v11  ;;  %v6780_v57 = vsel %vm3005_vm5, %v6777_v21, %v6779_v39 }
 0x695   : > { %v6891_v14 = vmax.f32 %v6855_v50, 0.0  ;;  %v6856_v45 = vadd.f32 %v6768_v32, %v6673_v48  ;;  %v9632_v32 = vld [vmem:[%s9807_s19 + $0x100] sm:$0xff]  ;;  %v9633_v48 = vld [vmem:[%s9807_s19 + $0x108] sm:$0xff] }
 0x696   : > { %v6889_v58 = vmax.f32 %v6853_v7, 0.0  ;;  %v6854_v3 = vadd.f32 %v6764_v25, %v6671_v2  ;;  %v6787_v50 = vrot.slane %v9632_v32, 3  ;;  %v6789_v11 = vrot.slane %v9633_v48, 3  ;;  %v9634_v2 = vld [vmem:[%s9807_s19 + $0xf8] sm:$0xff] }
 0x697   : > { %6927 = vst [vmem:[%s11148_s15 + $0x90] sm:$0xff] %v6891_v14  ;;  %v6892_v27 = vmax.f32 %v6856_v45, 0.0  ;;  %v6785_v12 = vrot.slane %v9634_v2, 3  ;;  %v6791_v14 = vrot.slane %v9635_v38, 3 }
 0x698   : > { %6925 = vst [vmem:[%s11148_s15 + $0x80] sm:$0xff] %v6889_v58  ;;  %v6890_v36 = vmax.f32 %v6854_v3, 0.0  ;;  %v8821_v55 = vpop.f32.mrb[20].mxu1  ;;  %v6790_v58 = vsel %vm3005_vm5, %v6787_v50, %v6789_v11 }
 0x699   : > { %6928 = vst [vmem:[%s11148_s15 + $0x98] sm:$0xff] %v6892_v27  ;;  %v6676_v22 = vadd.f32 %v8821_v55, %v11131_v60  ;;  %v6548_v28 = vpop.f32.mrb[21].mxu1  ;;  %v6786_v18 = vsel %vm3005_vm5, %v6783_v47, %v6785_v12  ;;  %v6792_v55 = vsel %vm3005_vm5, %v6789_v11, %v6791_v14 }
 0x69a   : > { %6926 = vst [vmem:[%s11148_s15 + $0x88] sm:$0xff] %v6890_v36  ;;  %v6674_v4 = vadd.f32 %v11131_v60, %v6548_v28  ;;  %v8822_v17 = vpop.f32.mrb[22].mxu1 }
 0x69b   : > { %v6859_v31 = vadd.f32 %v6774_v37, %v6676_v22  ;;  %v6677_v6 = vadd.f32 %v8822_v17, %v11131_v60  ;;  %v6551_v23 = vpop.f32.mrb[23].mxu1 }
 0x69c   : > { %v6857_v51 = vadd.f32 %v6770_v0, %v6674_v4  ;;  %v6675_v1 = vadd.f32 %v11131_v60, %v6551_v23  ;;  %v6788_v0 = vsel %vm3005_vm5, %v6785_v12, %v6787_v50 }
 0x69d   : > { %v6895_v19 = vmax.f32 %v6859_v31, 0.0  ;;  %v6860_v52 = vadd.f32 %v6776_v53, %v6677_v6  ;;  %v9636_v53 = vld [vmem:[%s9807_s19 + $0x120] sm:$0xff]  ;;  %v9637_v6 = vld [vmem:[%s9807_s19 + $0x128] sm:$0xff] }
 0x69e   : > { %v6893_v34 = vmax.f32 %v6857_v51, 0.0  ;;  %v6858_v10 = vadd.f32 %v6772_v46, %v6675_v1  ;;  %v6795_v31 = vrot.slane %v9636_v53, 3  ;;  %v6797_v23 = vrot.slane %v9637_v6, 3  ;;  %v9638_v1 = vld [vmem:[%s9807_s19 + $0x118] sm:$0xff]  ;;  %s9413_s19 = smul.u32 4608, %s9766_s25  ;;  %s11289_s25 = scalar_lea.sflag [#allocation4], %s242_s11 }
 0x69f   : > { %6931 = vst [vmem:[%s11148_s15 + $0xb0] sm:$0xff] %v6895_v19  ;;  %v6896_v33 = vmax.f32 %v6860_v52, 0.0  ;;  %v6793_v20 = vrot.slane %v9638_v1, 3  ;;  %v6799_v19 = vrot.slane %v9639_v49, 3 }
 0x6a0   : > { %6929 = vst [vmem:[%s11148_s15 + $0xa0] sm:$0xff] %v6893_v34  ;;  %v6894_v62 = vmax.f32 %v6858_v10, 0.0  ;;  %v8825_v42 = vpop.f32.mrb[24].mxu1  ;;  %v6798_v34 = vsel %vm3005_vm5, %v6795_v31, %v6797_v23  ;;  %s11280_s20 = scalar_lea.hbm %s11336_s6, %s9413_s19 }
 0x6a1   : > { %6932 = vst [vmem:[%s11148_s15 + $0xb8] sm:$0xff] %v6896_v33  ;;  %v6680_v61 = vadd.f32 %v8825_v42, %v11131_v60  ;;  %v6564_v41 = vpop.f32.mrb[25].mxu1  ;;  %v6794_v47 = vsel %vm3005_vm5, %v6791_v14, %v6793_v20  ;;  %v6800_v42 = vsel %vm3005_vm5, %v6797_v23, %v6799_v19 }
 0x6a2   : > { %6930 = vst [vmem:[%s11148_s15 + $0xa8] sm:$0xff] %v6894_v62  ;;  %v6678_v24 = vadd.f32 %v11131_v60, %v6564_v41  ;;  %v8826_v5 = vpop.f32.mrb[26].mxu1 }
 0x6a3   : > { %v6863_v43 = vadd.f32 %v6782_v40, %v6680_v61  ;;  %v6681_v16 = vadd.f32 %v8826_v5, %v11131_v60  ;;  %v6567_v44 = vpop.f32.mrb[27].mxu1 }
 0x6a4   : > { %v6861_v63 = vadd.f32 %v6778_v59, %v6678_v24  ;;  %v6679_v35 = vadd.f32 %v11131_v60, %v6567_v44  ;;  %v6796_v59 = vsel %vm3005_vm5, %v6793_v20, %v6795_v31 }
 0x6a5   : > { %v6899_v25 = vmax.f32 %v6863_v43, 0.0  ;;  %v6864_v7 = vadd.f32 %v6784_v26, %v6681_v16 }
 0x6a6   : > { %v6897_v54 = vmax.f32 %v6861_v63, 0.0  ;;  %v6862_v13 = vadd.f32 %v6780_v57, %v6679_v35 }
 0x6a7   : > { %6935 = vst [vmem:[%s11148_s15 + $0xd0] sm:$0xff] %v6899_v25  ;;  %v6900_v45 = vmax.f32 %v6864_v7, 0.0 }
 0x6a8   : > { %6933 = vst [vmem:[%s11148_s15 + $0xc0] sm:$0xff] %v6897_v54  ;;  %v6898_v29 = vmax.f32 %v6862_v13, 0.0  ;;  %v8829_v30 = vpop.f32.mrb[28].mxu1 }
 0x6a9   : > { %6936 = vst [vmem:[%s11148_s15 + $0xd8] sm:$0xff] %v6900_v45  ;;  %v6684_v3 = vadd.f32 %v8829_v30, %v11131_v60  ;;  %v6580_v9 = vpop.f32.mrb[29].mxu1 }
 0x6aa   : > { %6934 = vst [vmem:[%s11148_s15 + $0xc8] sm:$0xff] %v6898_v29  ;;  %v6682_v27 = vadd.f32 %v11131_v60, %v6580_v9  ;;  %v8830_v36 = vpop.f32.mrb[30].mxu1 }
 0x6ab   : > { %v6867_v37 = vadd.f32 %v6790_v58, %v6684_v3  ;;  %v6685_v22 = vadd.f32 %v8830_v36, %v11131_v60  ;;  %v6583_v28 = vpop.f32.mrb[31].mxu1 }
 0x6ac   : > { %v6865_v4 = vadd.f32 %v6786_v18, %v6682_v27  ;;  %v6683_v17 = vadd.f32 %v11131_v60, %v6583_v28 }
 0x6ad   : > { %v6903_v46 = vmax.f32 %v6867_v37, 0.0  ;;  %v6868_v51 = vadd.f32 %v6792_v55, %v6685_v22 }
 0x6ae   : > { %v6901_v39 = vmax.f32 %v6865_v4, 0.0  ;;  %v6866_v8 = vadd.f32 %v6788_v0, %v6683_v17 }
 0x6af   : > { %6939 = vst [vmem:[%s11148_s15 + $0xf0] sm:$0xff] %v6903_v46  ;;  %v6904_v52 = vmax.f32 %v6868_v51, 0.0 }
 0x6b0   : > { %6937 = vst [vmem:[%s11148_s15 + $0xe0] sm:$0xff] %v6901_v39  ;;  %v6902_v15 = vmax.f32 %v6866_v8, 0.0  ;;  %v8833_v21 = vpop.f32.mrb[32].mxu1 }
 0x6b1   : > { %6940 = vst [vmem:[%s11148_s15 + $0xf8] sm:$0xff] %v6904_v52  ;;  %v6688_v10 = vadd.f32 %v8833_v21, %v11131_v60  ;;  %v6596_v56 = vpop.f32.mrb[33].mxu1 }
 0x6b2   : > { %6938 = vst [vmem:[%s11148_s15 + $0xe8] sm:$0xff] %v6902_v15  ;;  %v6686_v33 = vadd.f32 %v11131_v60, %v6596_v56  ;;  %v8834_v62 = vpop.f32.mrb[34].mxu1 }
 0x6b3   : > { %v6871_v40 = vadd.f32 %v6798_v34, %v6688_v10  ;;  %v6689_v61 = vadd.f32 %v8834_v62, %v11131_v60  ;;  %v6599_v41 = vpop.f32.mrb[35].mxu1 }
 0x6b4   : > { %v6869_v24 = vadd.f32 %v6794_v47, %v6686_v33  ;;  %v6687_v5 = vadd.f32 %v11131_v60, %v6599_v41 }
 0x6b5   : > { %v6907_v26 = vmax.f32 %v6871_v40, 0.0  ;;  %v6872_v43 = vadd.f32 %v6800_v42, %v6689_v61 }
 0x6b6   : > { %v6905_v16 = vmax.f32 %v6869_v24, 0.0  ;;  %v6870_v44 = vadd.f32 %v6796_v59, %v6687_v5 }
 0x6b7   : > { %6943 = vst [vmem:[%s11148_s15 + $0x110] sm:$0xff] %v6907_v26  ;;  %v6908_v57 = vmax.f32 %v6872_v43, 0.0 }
 0x6b8   : > { %6941 = vst [vmem:[%s11148_s15 + $0x100] sm:$0xff] %v6905_v16  ;;  %v6906_v63 = vmax.f32 %v6870_v44, 0.0 }
 0x6b9   : > { %6944 = vst [vmem:[%s11148_s15 + $0x118] sm:$0xff] %v6908_v57 }
 0x6ba   : > { %6942 = vst [vmem:[%s11148_s15 + $0x108] sm:$0xff] %v6906_v63 }
 0x6bb   : > { %9653 = shalt.err (!%p9650_p3)
}
 0x6bc   : > { %s9654_s10 = scalar_lea.hbm %s11280_s20, 4608  ;;  %s9658_s13 = scalar_lea.hbm %s11336_s6, 9216 }
 0x6bd   : > { %p9655_p4 = scmp.ne.s32.totalorder %s11280_s20, %s9654_s10  ;;  %p9659_p9 = scmp.lt.u32.totalorder %s11280_s20, %s11336_s6 }
 0x6be   : > { %p9660_p10 = scmp.lt.u32.totalorder %s9658_s13, %s9654_s10  ;;  %p9662_p12 = scmp.lt.u32.totalorder %s9654_s10, %s11280_s20 }
 0x6bf   : > { %p9656_p7 = pnand %p9655_p4, %p9783_p5 }
 0x6c0   : > { %p9661_p11 = por %p9660_p10, %p9659_p9 }
 0x6c1   : > { %p9657_p8 = pneg %p9656_p7 }
 0x6c2   : > { %p9663_p13 = por %p9662_p12, %p9661_p11 }
 0x6c4   : > { %p9664_p0 = pnand %p9663_p13, %p9657_p8 }
 0x6c6   : > { %9667 = shalt.err (!%p9664_p0)
}
 0x6c7   : > { %s9708_s19 = smov 128   ;;  %s9709_s17 = smov 8  }
 0x6c8   : > { %9414 = dma.vmem_to_hbm [thread:$0]  (%p9783_p5), %s11283_s16, 4608, %s11280_s20, %s11289_s25, %s9708_s19, %s9708_s19, %s9709_s17  }
 0x6c9 PF: > { %p9420_p1 = scmp.ge.s32.totalorder %s9702_s24, 2  ;;  %s6974_s18 = sand.u32 1, %s9690_s21  }
 0x6ca   : > { %s6975_s26 = scalar_lea.sflag [#allocation4], %s6974_s18 }
 0x6cb   : > { %p9417_p2 = pnand %p9420_p1, %p9787_p6 }
 0x6cd   : > { %9685 = dma.done.wait (!%p9417_p2), %s6975_s26, 4608  }
 0x6ce   : > { %9687 = vsyncadd (!%p9417_p2), %s6975_s26, 4294962688  ;;  %p16_p3 = scmp.ge.s32.totalorder %s9770_s27, 4   ;;  %s11400_s21 = smov %s9694_s22 }
 0x6cf   : > { %s11401_s22 = smov %s9698_s23  ;;  %s11402_s23 = smov %s9781_s30 }
 0x6d0   : > { %s11403_s24 = smov %s9770_s27  ;;  %18 = sbr.rel (!%p16_p3) target bundleno = 3 (0x3), region = 95 }
 0x6d7   :  { %6980 = vsyncpa [#allocation4], 1 }
 0x6d8   :  { %6982 = vsyncpa [#allocation4 + $0x1], 1 }

</bundles_post_ra>
